<compile_context>
chip_gen: v6e
topology: v6e:2x2x1
jax: 0.10.0
libtpu: 0.0.40
codegen_flags: <defaults>
</compile_context>

<pallas_src>
import jax
import jax.numpy as jnp
from jax.experimental import pallas as pl
from jax.experimental.pallas import tpu as pltpu

_PAD_LEFT = 8  # sublane-aligned left halo offset for the 3x3-conv staging buffer


def _make_residual_kernel(H, W, has_skip):
    HW = H * W

    def kernel(*refs):
        if has_skip:
            (x_ref, s1, t1, w1, b1, s2, t2, w2, b2, s3, t3, w3, b3,
             wsk, bsk, o_ref, vpad) = refs
        else:
            (x_ref, s1, t1, w1, b1, s2, t2, w2, b2, s3, t3, w3, b3,
             o_ref, vpad) = refs

        Cin = x_ref.shape[-1]
        Cmid = w1.shape[-1]
        Cout = w3.shape[-1]

        x = x_ref[0].reshape(HW, Cin).astype(jnp.float32)

        # ---- skip branch: 1x1 conv (bias, no activation) or identity ------------
        if has_skip:
            residual = jnp.dot(x.astype(wsk.dtype), wsk[...],
                               preferred_element_type=jnp.float32)
            residual = residual + bsk[...].astype(jnp.float32)
        else:
            residual = x

        # ---- bn1 -> relu -> conv1 (1x1) -> bn2 -> relu ---------------------------
        h = jnp.maximum(x * s1[...].astype(jnp.float32)
                        + t1[...].astype(jnp.float32), 0.0)
        u = jnp.dot(h.astype(w1.dtype), w1[...],
                    preferred_element_type=jnp.float32)
        u = u + b1[...].astype(jnp.float32)
        v = jnp.maximum(u * s2[...].astype(jnp.float32)
                        + t2[...].astype(jnp.float32), 0.0)

        # ---- build zero-padded halo buffer in VMEM for the 3x3 conv --------------
        vpad[...] = jnp.zeros(vpad.shape, vpad.dtype)
        vpad[1:H + 1, _PAD_LEFT:_PAD_LEFT + W, :] = v.reshape(H, W, Cmid)

        # ---- conv2 (3x3, padding=1) as 9 shifted MXU matmuls ---------------------
        acc = jnp.zeros((HW, Cmid), jnp.float32)
        for ky in range(3):
            for kx in range(3):
                c0 = kx + _PAD_LEFT - 1
                patch = vpad[ky:ky + H, c0:c0 + W, :]
                acc = acc + jnp.dot(patch.reshape(HW, Cmid).astype(w2.dtype),
                                    w2[ky, kx, :, :],
                                    preferred_element_type=jnp.float32)
        acc = acc + b2[...].astype(jnp.float32)

        # ---- bn3 -> relu -> conv3 (1x1) -> + residual ----------------------------
        z = jnp.maximum(acc * s3[...].astype(jnp.float32)
                        + t3[...].astype(jnp.float32), 0.0)
        out = jnp.dot(z.astype(w3.dtype), w3[...],
                      preferred_element_type=jnp.float32)
        out = out + b3[...].astype(jnp.float32) + residual
        o_ref[...] = out.reshape(1, H, W, Cout).astype(o_ref.dtype)

    return kernel


def _fold_bn(gamma, beta, mean, var, eps):
    s = gamma.astype(jnp.float32) * jax.lax.rsqrt(var.astype(jnp.float32) + eps)
    t = beta.astype(jnp.float32) - mean.astype(jnp.float32) * s
    return s.reshape(1, -1), t.reshape(1, -1)


def residual_forward(x_nchw, params, *, eps=1e-5):
    """Pallas-backed Residual forward. x_nchw: (B, Cin, H, W); params in PyTorch layout."""
    B, Cin, H, W = x_nchw.shape
    Cmid = params["conv1_w"].shape[0]
    Cout = params["conv3_w"].shape[0]
    has_skip = "skip_w" in params
    dtype = x_nchw.dtype

    x = jnp.transpose(x_nchw, (0, 2, 3, 1))  # NHWC: channels on the lane axis

    s1, t1 = _fold_bn(params["bn1_gamma"], params["bn1_beta"],
                      params["bn1_mean"], params["bn1_var"], eps)
    s2, t2 = _fold_bn(params["bn2_gamma"], params["bn2_beta"],
                      params["bn2_mean"], params["bn2_var"], eps)
    s3, t3 = _fold_bn(params["bn3_gamma"], params["bn3_beta"],
                      params["bn3_mean"], params["bn3_var"], eps)

    w1 = jnp.transpose(params["conv1_w"][:, :, 0, 0])        # (Cin, Cmid)
    b1 = params["conv1_b"].reshape(1, -1)
    w2 = jnp.transpose(params["conv2_w"], (2, 3, 1, 0))      # (3, 3, Cmid, Cmid)
    b2 = params["conv2_b"].reshape(1, -1)
    w3 = jnp.transpose(params["conv3_w"][:, :, 0, 0])        # (Cmid, Cout)
    b3 = params["conv3_b"].reshape(1, -1)

    inputs = [x, s1, t1, w1, b1, s2, t2, w2, b2, s3, t3, w3, b3]
    if has_skip:
        wsk = jnp.transpose(params["skip_w"][:, :, 0, 0])    # (Cin, Cout)
        bsk = params["skip_b"].reshape(1, -1)
        inputs += [wsk, bsk]

    def bcast_spec(a):
        nd = a.ndim
        return pl.BlockSpec(a.shape, lambda b, _nd=nd: (0,) * _nd)

    in_specs = [pl.BlockSpec((1, H, W, Cin), lambda b: (b, 0, 0, 0))]
    in_specs += [bcast_spec(a) for a in inputs[1:]]

    flops = 2 * B * H * W * (Cin * Cmid + 9 * Cmid * Cmid + Cmid * Cout
                             + (Cin * Cout if has_skip else 0))
    param_bytes = sum(int(a.size) * a.dtype.itemsize for a in inputs[1:])
    bytes_accessed = int(B * H * W * (Cin + Cout) * jnp.dtype(dtype).itemsize
                         + param_bytes)

    out = pl.pallas_call(
        _make_residual_kernel(H, W, has_skip),
        out_shape=jax.ShapeDtypeStruct((B, H, W, Cout), dtype),
        grid_spec=pltpu.PrefetchScalarGridSpec(
            num_scalar_prefetch=0,
            grid=(B,),
            in_specs=in_specs,
            out_specs=pl.BlockSpec((1, H, W, Cout), lambda b: (b, 0, 0, 0)),
            scratch_shapes=[pltpu.VMEM((H + 2, W + _PAD_LEFT + 1, Cmid),
                                       jnp.float32)],
        ),
        compiler_params=pltpu.CompilerParams(
            dimension_semantics=("parallel",)),
        cost_estimate=pl.CostEstimate(flops=flops, transcendentals=0,
                                      bytes_accessed=bytes_accessed),
    )(*inputs)

    return jnp.transpose(out, (0, 3, 1, 2))  # back to NCHW


# ----------------------------- pure-JAX reference ---------------------------------
def _reference_forward(x_nchw, p, *, eps=1e-5):
    x = jnp.transpose(x_nchw, (0, 2, 3, 1)).astype(jnp.float32)  # NHWC

    def bn(v, pre):
        g, b = p[pre + "_gamma"], p[pre + "_beta"]
        m, var = p[pre + "_mean"], p[pre + "_var"]
        return (v - m) * jax.lax.rsqrt(var.astype(jnp.float32) + eps) * g + b

    def conv1x1(v, w, b):
        return jnp.einsum("bhwc,oc->bhwo", v, w[:, :, 0, 0].astype(jnp.float32)) + b

    def conv3x3(v, w, b):
        y = jax.lax.conv_general_dilated(
            v, jnp.transpose(w, (2, 3, 1, 0)).astype(jnp.float32),
            window_strides=(1, 1), padding=((1, 1), (1, 1)),
            dimension_numbers=("NHWC", "HWIO", "NHWC"))
        return y + b

    residual = conv1x1(x, p["skip_w"], p["skip_b"]) if "skip_w" in p else x
    h = conv1x1(jax.nn.relu(bn(x, "bn1")), p["conv1_w"], p["conv1_b"])
    h = conv3x3(jax.nn.relu(bn(h, "bn2")), p["conv2_w"], p["conv2_b"])
    h = conv1x1(jax.nn.relu(bn(h, "bn3")), p["conv3_w"], p["conv3_b"])
    return jnp.transpose(h + residual, (0, 3, 1, 2))


def _make_params(key, inp_dim, out_dim, dtype=jnp.float32):
    mid = out_dim // 2
    keys = iter(jax.random.split(key, 24))

    def conv_w(o, i, k):
        return (0.1 / (i * k * k) ** 0.5) * jax.random.normal(next(keys), (o, i, k, k), dtype)

    def conv_b(o):
        return 0.05 * jax.random.normal(next(keys), (o,), dtype)

    def add_bn(c, pre, p):
        p[pre + "_gamma"] = 1.0 + 0.1 * jax.random.normal(next(keys), (c,), dtype)
        p[pre + "_beta"] = 0.1 * jax.random.normal(next(keys), (c,), dtype)
        p[pre + "_mean"] = 0.1 * jax.random.normal(next(keys), (c,), dtype)
        p[pre + "_var"] = jax.random.uniform(next(keys), (c,), dtype, 0.5, 1.5)

    p = {}
    add_bn(inp_dim, "bn1", p)
    p["conv1_w"], p["conv1_b"] = conv_w(mid, inp_dim, 1), conv_b(mid)
    add_bn(mid, "bn2", p)
    p["conv2_w"], p["conv2_b"] = conv_w(mid, mid, 3), conv_b(mid)
    add_bn(mid, "bn3", p)
    p["conv3_w"], p["conv3_b"] = conv_w(out_dim, mid, 1), conv_b(out_dim)
    if inp_dim != out_dim:
        p["skip_w"], p["skip_b"] = conv_w(out_dim, inp_dim, 1), conv_b(out_dim)
    return p


if __name__ == "__main__":
    B, H, W = 2, 16, 16
    key = jax.random.PRNGKey(0)
    kx1, kp1, kx2, kp2 = jax.random.split(key, 4)

    # Case 1: inp_dim != out_dim -> 1x1 skip conv on the residual path.
    inp_dim, out_dim = 16, 32
    x1 = jax.random.normal(kx1, (B, inp_dim, H, W), dtype=jnp.float32)
    p1 = _make_params(kp1, inp_dim, out_dim)
    out1 = jax.block_until_ready(residual_forward(x1, p1))
    ref1 = _reference_forward(x1, p1)
    assert out1.shape == (B, out_dim, H, W)
    assert jnp.allclose(out1, ref1, atol=1e-3, rtol=1e-3), \
        float(jnp.max(jnp.abs(out1 - ref1)))

    # Case 2: inp_dim == out_dim -> identity residual.
    inp_dim, out_dim = 16, 16
    x2 = jax.random.normal(kx2, (B, inp_dim, H, W), dtype=jnp.float32)
    p2 = _make_params(kp2, inp_dim, out_dim)
    out2 = jax.block_until_ready(residual_forward(x2, p2))
    ref2 = _reference_forward(x2, p2)
    assert out2.shape == (B, out_dim, H, W)
    assert jnp.allclose(out2, ref2, atol=1e-3, rtol=1e-3), \
        float(jnp.max(jnp.abs(out2 - ref2)))

    print("KERNEL_OK")
</pallas_src>

<mosaic_0001>
module attributes {stable_mosaic.version = 11 : i64} {
  func.func @kernel(%arg0: i32, %arg1: memref<1x16x16x16xf32, #tpu.memory_space<vmem>>, %arg2: memref<1x16xf32, #tpu.memory_space<vmem>>, %arg3: memref<1x16xf32, #tpu.memory_space<vmem>>, %arg4: memref<16x16xf32, #tpu.memory_space<vmem>>, %arg5: memref<1x16xf32, #tpu.memory_space<vmem>>, %arg6: memref<1x16xf32, #tpu.memory_space<vmem>>, %arg7: memref<1x16xf32, #tpu.memory_space<vmem>>, %arg8: memref<3x3x16x16xf32, #tpu.memory_space<vmem>>, %arg9: memref<1x16xf32, #tpu.memory_space<vmem>>, %arg10: memref<1x16xf32, #tpu.memory_space<vmem>>, %arg11: memref<1x16xf32, #tpu.memory_space<vmem>>, %arg12: memref<16x32xf32, #tpu.memory_space<vmem>>, %arg13: memref<1x32xf32, #tpu.memory_space<vmem>>, %arg14: memref<16x32xf32, #tpu.memory_space<vmem>>, %arg15: memref<1x32xf32, #tpu.memory_space<vmem>>, %arg16: memref<1x16x16x32xf32, #tpu.memory_space<vmem>>, %arg17: memref<18x25x16xf32, #tpu.memory_space<vmem>>) attributes {dimension_semantics = [#tpu.dimension_semantics<parallel>], iteration_bounds = array<i64: 2>, scalar_prefetch = 0 : i64, scratch_operands = 1 : i64, tpu.core_type = #tpu.core_type<tc>, window_params = [{transform_indices = @transform_0, window_bounds = array<i64: 1, 16, 16, 16>}, {pipeline_mode = #tpu.pipeline_mode<synchronous>, transform_indices = @transform_1, window_bounds = array<i64: 1, 16>}, {pipeline_mode = #tpu.pipeline_mode<synchronous>, transform_indices = @transform_2, window_bounds = array<i64: 1, 16>}, {pipeline_mode = #tpu.pipeline_mode<synchronous>, transform_indices = @transform_3, window_bounds = array<i64: 16, 16>}, {pipeline_mode = #tpu.pipeline_mode<synchronous>, transform_indices = @transform_4, window_bounds = array<i64: 1, 16>}, {pipeline_mode = #tpu.pipeline_mode<synchronous>, transform_indices = @transform_5, window_bounds = array<i64: 1, 16>}, {pipeline_mode = #tpu.pipeline_mode<synchronous>, transform_indices = @transform_6, window_bounds = array<i64: 1, 16>}, {pipeline_mode = #tpu.pipeline_mode<synchronous>, transform_indices = @transform_7, window_bounds = array<i64: 3, 3, 16, 16>}, {pipeline_mode = #tpu.pipeline_mode<synchronous>, transform_indices = @transform_8, window_bounds = array<i64: 1, 16>}, {pipeline_mode = #tpu.pipeline_mode<synchronous>, transform_indices = @transform_9, window_bounds = array<i64: 1, 16>}, {pipeline_mode = #tpu.pipeline_mode<synchronous>, transform_indices = @transform_10, window_bounds = array<i64: 1, 16>}, {pipeline_mode = #tpu.pipeline_mode<synchronous>, transform_indices = @transform_11, window_bounds = array<i64: 16, 32>}, {pipeline_mode = #tpu.pipeline_mode<synchronous>, transform_indices = @transform_12, window_bounds = array<i64: 1, 32>}, {pipeline_mode = #tpu.pipeline_mode<synchronous>, transform_indices = @transform_13, window_bounds = array<i64: 16, 32>}, {pipeline_mode = #tpu.pipeline_mode<synchronous>, transform_indices = @transform_14, window_bounds = array<i64: 1, 32>}, {transform_indices = @transform_15, window_bounds = array<i64: 1, 16, 16, 32>}]} {
    %c0 = arith.constant 0 : index
    %c0_0 = arith.constant 0 : index
    %c0_1 = arith.constant 0 : index
    %c0_2 = arith.constant 0 : index
    %0 = vector.load %arg1[%c0, %c0_0, %c0_1, %c0_2] : memref<1x16x16x16xf32, #tpu.memory_space<vmem>>, vector<1x16x16x16xf32>
    %1 = vector.shape_cast %0 : vector<1x16x16x16xf32> to vector<16x16x16xf32>
    %2 = vector.shape_cast %1 : vector<16x16x16xf32> to vector<256x16xf32>
    %c0_3 = arith.constant 0 : index
    %c0_4 = arith.constant 0 : index
    %3 = vector.load %arg14[%c0_3, %c0_4] : memref<16x32xf32, #tpu.memory_space<vmem>>, vector<16x32xf32>
    %cst = arith.constant dense<0.000000e+00> : vector<256x32xf32>
    %4 = tpu.matmul %2, %3, %cst {dimension_numbers = #tpu.dot_dimension_numbers<[1], [0], [0], [1], [0, 0, 1, 1], [], []>} : vector<256x16xf32>, vector<16x32xf32>, vector<256x32xf32> -> vector<256x32xf32>
    %c0_5 = arith.constant 0 : index
    %c0_6 = arith.constant 0 : index
    %5 = vector.load %arg15[%c0_5, %c0_6] : memref<1x32xf32, #tpu.memory_space<vmem>>, vector<1x32xf32>
    %6 = vector.broadcast %5 : vector<1x32xf32> to vector<256x32xf32>
    %7 = arith.addf %4, %6 : vector<256x32xf32>
    %c0_7 = arith.constant 0 : index
    %c0_8 = arith.constant 0 : index
    %8 = vector.load %arg2[%c0_7, %c0_8] : memref<1x16xf32, #tpu.memory_space<vmem>>, vector<1x16xf32>
    %9 = vector.broadcast %8 : vector<1x16xf32> to vector<256x16xf32>
    %10 = arith.mulf %2, %9 : vector<256x16xf32>
    %c0_9 = arith.constant 0 : index
    %c0_10 = arith.constant 0 : index
    %11 = vector.load %arg3[%c0_9, %c0_10] : memref<1x16xf32, #tpu.memory_space<vmem>>, vector<1x16xf32>
    %12 = vector.broadcast %11 : vector<1x16xf32> to vector<256x16xf32>
    %13 = arith.addf %10, %12 : vector<256x16xf32>
    %cst_11 = arith.constant 0.000000e+00 : f32
    %14 = vector.broadcast %cst_11 : f32 to vector<256x16xf32>
    %15 = arith.maximumf %13, %14 : vector<256x16xf32>
    %c0_12 = arith.constant 0 : index
    %c0_13 = arith.constant 0 : index
    %16 = vector.load %arg4[%c0_12, %c0_13] : memref<16x16xf32, #tpu.memory_space<vmem>>, vector<16x16xf32>
    %cst_14 = arith.constant dense<0.000000e+00> : vector<256x16xf32>
    %17 = tpu.matmul %15, %16, %cst_14 {dimension_numbers = #tpu.dot_dimension_numbers<[1], [0], [0], [1], [0, 0, 1, 1], [], []>} : vector<256x16xf32>, vector<16x16xf32>, vector<256x16xf32> -> vector<256x16xf32>
    %c0_15 = arith.constant 0 : index
    %c0_16 = arith.constant 0 : index
    %18 = vector.load %arg5[%c0_15, %c0_16] : memref<1x16xf32, #tpu.memory_space<vmem>>, vector<1x16xf32>
    %19 = vector.broadcast %18 : vector<1x16xf32> to vector<256x16xf32>
    %20 = arith.addf %17, %19 : vector<256x16xf32>
    %c0_17 = arith.constant 0 : index
    %c0_18 = arith.constant 0 : index
    %21 = vector.load %arg6[%c0_17, %c0_18] : memref<1x16xf32, #tpu.memory_space<vmem>>, vector<1x16xf32>
    %22 = vector.broadcast %21 : vector<1x16xf32> to vector<256x16xf32>
    %23 = arith.mulf %20, %22 : vector<256x16xf32>
    %c0_19 = arith.constant 0 : index
    %c0_20 = arith.constant 0 : index
    %24 = vector.load %arg7[%c0_19, %c0_20] : memref<1x16xf32, #tpu.memory_space<vmem>>, vector<1x16xf32>
    %25 = vector.broadcast %24 : vector<1x16xf32> to vector<256x16xf32>
    %26 = arith.addf %23, %25 : vector<256x16xf32>
    %cst_21 = arith.constant 0.000000e+00 : f32
    %27 = vector.broadcast %cst_21 : f32 to vector<256x16xf32>
    %28 = arith.maximumf %26, %27 : vector<256x16xf32>
    %cst_22 = arith.constant 0.000000e+00 : f32
    %29 = vector.broadcast %cst_22 : f32 to vector<18x25x16xf32>
    %c0_23 = arith.constant 0 : index
    %c0_24 = arith.constant 0 : index
    %c0_25 = arith.constant 0 : index
    %30 = vector.load %arg17[%c0_23, %c0_24, %c0_25] : memref<18x25x16xf32, #tpu.memory_space<vmem>>, vector<18x25x16xf32>
    tpu.vector_store %arg17[%c0_23, %c0_24, %c0_25], %29 {strides = array<i32>} : memref<18x25x16xf32, #tpu.memory_space<vmem>>, vector<18x25x16xf32>,
    %31 = vector.shape_cast %28 : vector<256x16xf32> to vector<16x16x16xf32>
    %c1 = arith.constant 1 : index
    %c8 = arith.constant 8 : index
    %c0_26 = arith.constant 0 : index
    %32 = vector.load %arg17[%c1, %c8, %c0_26] : memref<18x25x16xf32, #tpu.memory_space<vmem>>, vector<16x16x16xf32>
    tpu.vector_store %arg17[%c1, %c8, %c0_26], %31 {strides = array<i32>} : memref<18x25x16xf32, #tpu.memory_space<vmem>>, vector<16x16x16xf32>,
    %cst_27 = arith.constant 0.000000e+00 : f32
    %33 = vector.broadcast %cst_27 : f32 to vector<256x16xf32>
    %c0_28 = arith.constant 0 : index
    %c7 = arith.constant 7 : index
    %c0_29 = arith.constant 0 : index
    %34 = vector.load %arg17[%c0_28, %c7, %c0_29] : memref<18x25x16xf32, #tpu.memory_space<vmem>>, vector<16x16x16xf32>
    %35 = vector.shape_cast %34 : vector<16x16x16xf32> to vector<256x16xf32>
    %c0_30 = arith.constant 0 : index
    %c0_31 = arith.constant 0 : index
    %c0_32 = arith.constant 0 : index
    %c0_33 = arith.constant 0 : index
    %36 = vector.load %arg8[%c0_30, %c0_31, %c0_32, %c0_33] : memref<3x3x16x16xf32, #tpu.memory_space<vmem>>, vector<1x1x16x16xf32>
    %37 = vector.shape_cast %36 : vector<1x1x16x16xf32> to vector<16x16xf32>
    %cst_34 = arith.constant dense<0.000000e+00> : vector<256x16xf32>
    %38 = tpu.matmul %35, %37, %cst_34 {dimension_numbers = #tpu.dot_dimension_numbers<[1], [0], [0], [1], [0, 0, 1, 1], [], []>} : vector<256x16xf32>, vector<16x16xf32>, vector<256x16xf32> -> vector<256x16xf32>
    %39 = arith.addf %33, %38 : vector<256x16xf32>
    %c0_35 = arith.constant 0 : index
    %c8_36 = arith.constant 8 : index
    %c0_37 = arith.constant 0 : index
    %40 = vector.load %arg17[%c0_35, %c8_36, %c0_37] : memref<18x25x16xf32, #tpu.memory_space<vmem>>, vector<16x16x16xf32>
    %41 = vector.shape_cast %40 : vector<16x16x16xf32> to vector<256x16xf32>
    %c0_38 = arith.constant 0 : index
    %c1_39 = arith.constant 1 : index
    %c0_40 = arith.constant 0 : index
    %c0_41 = arith.constant 0 : index
    %42 = vector.load %arg8[%c0_38, %c1_39, %c0_40, %c0_41] : memref<3x3x16x16xf32, #tpu.memory_space<vmem>>, vector<1x1x16x16xf32>
    %43 = vector.shape_cast %42 : vector<1x1x16x16xf32> to vector<16x16xf32>
    %cst_42 = arith.constant dense<0.000000e+00> : vector<256x16xf32>
    %44 = tpu.matmul %41, %43, %cst_42 {dimension_numbers = #tpu.dot_dimension_numbers<[1], [0], [0], [1], [0, 0, 1, 1], [], []>} : vector<256x16xf32>, vector<16x16xf32>, vector<256x16xf32> -> vector<256x16xf32>
    %45 = arith.addf %39, %44 : vector<256x16xf32>
    %c0_43 = arith.constant 0 : index
    %c9 = arith.constant 9 : index
    %c0_44 = arith.constant 0 : index
    %46 = vector.load %arg17[%c0_43, %c9, %c0_44] : memref<18x25x16xf32, #tpu.memory_space<vmem>>, vector<16x16x16xf32>
    %47 = vector.shape_cast %46 : vector<16x16x16xf32> to vector<256x16xf32>
    %c0_45 = arith.constant 0 : index
    %c2 = arith.constant 2 : index
    %c0_46 = arith.constant 0 : index
    %c0_47 = arith.constant 0 : index
    %48 = vector.load %arg8[%c0_45, %c2, %c0_46, %c0_47] : memref<3x3x16x16xf32, #tpu.memory_space<vmem>>, vector<1x1x16x16xf32>
    %49 = vector.shape_cast %48 : vector<1x1x16x16xf32> to vector<16x16xf32>
    %cst_48 = arith.constant dense<0.000000e+00> : vector<256x16xf32>
    %50 = tpu.matmul %47, %49, %cst_48 {dimension_numbers = #tpu.dot_dimension_numbers<[1], [0], [0], [1], [0, 0, 1, 1], [], []>} : vector<256x16xf32>, vector<16x16xf32>, vector<256x16xf32> -> vector<256x16xf32>
    %51 = arith.addf %45, %50 : vector<256x16xf32>
    %c1_49 = arith.constant 1 : index
    %c7_50 = arith.constant 7 : index
    %c0_51 = arith.constant 0 : index
    %52 = vector.load %arg17[%c1_49, %c7_50, %c0_51] : memref<18x25x16xf32, #tpu.memory_space<vmem>>, vector<16x16x16xf32>
    %53 = vector.shape_cast %52 : vector<16x16x16xf32> to vector<256x16xf32>
    %c1_52 = arith.constant 1 : index
    %c0_53 = arith.constant 0 : index
    %c0_54 = arith.constant 0 : index
    %c0_55 = arith.constant 0 : index
    %54 = vector.load %arg8[%c1_52, %c0_53, %c0_54, %c0_55] : memref<3x3x16x16xf32, #tpu.memory_space<vmem>>, vector<1x1x16x16xf32>
    %55 = vector.shape_cast %54 : vector<1x1x16x16xf32> to vector<16x16xf32>
    %cst_56 = arith.constant dense<0.000000e+00> : vector<256x16xf32>
    %56 = tpu.matmul %53, %55, %cst_56 {dimension_numbers = #tpu.dot_dimension_numbers<[1], [0], [0], [1], [0, 0, 1, 1], [], []>} : vector<256x16xf32>, vector<16x16xf32>, vector<256x16xf32> -> vector<256x16xf32>
    %57 = arith.addf %51, %56 : vector<256x16xf32>
    %c1_57 = arith.constant 1 : index
    %c8_58 = arith.constant 8 : index
    %c0_59 = arith.constant 0 : index
    %58 = vector.load %arg17[%c1_57, %c8_58, %c0_59] : memref<18x25x16xf32, #tpu.memory_space<vmem>>, vector<16x16x16xf32>
    %59 = vector.shape_cast %58 : vector<16x16x16xf32> to vector<256x16xf32>
    %c1_60 = arith.constant 1 : index
    %c1_61 = arith.constant 1 : index
    %c0_62 = arith.constant 0 : index
    %c0_63 = arith.constant 0 : index
    %60 = vector.load %arg8[%c1_60, %c1_61, %c0_62, %c0_63] : memref<3x3x16x16xf32, #tpu.memory_space<vmem>>, vector<1x1x16x16xf32>
    %61 = vector.shape_cast %60 : vector<1x1x16x16xf32> to vector<16x16xf32>
    %cst_64 = arith.constant dense<0.000000e+00> : vector<256x16xf32>
    %62 = tpu.matmul %59, %61, %cst_64 {dimension_numbers = #tpu.dot_dimension_numbers<[1], [0], [0], [1], [0, 0, 1, 1], [], []>} : vector<256x16xf32>, vector<16x16xf32>, vector<256x16xf32> -> vector<256x16xf32>
    %63 = arith.addf %57, %62 : vector<256x16xf32>
    %c1_65 = arith.constant 1 : index
    %c9_66 = arith.constant 9 : index
    %c0_67 = arith.constant 0 : index
    %64 = vector.load %arg17[%c1_65, %c9_66, %c0_67] : memref<18x25x16xf32, #tpu.memory_space<vmem>>, vector<16x16x16xf32>
    %65 = vector.shape_cast %64 : vector<16x16x16xf32> to vector<256x16xf32>
    %c1_68 = arith.constant 1 : index
    %c2_69 = arith.constant 2 : index
    %c0_70 = arith.constant 0 : index
    %c0_71 = arith.constant 0 : index
    %66 = vector.load %arg8[%c1_68, %c2_69, %c0_70, %c0_71] : memref<3x3x16x16xf32, #tpu.memory_space<vmem>>, vector<1x1x16x16xf32>
    %67 = vector.shape_cast %66 : vector<1x1x16x16xf32> to vector<16x16xf32>
    %cst_72 = arith.constant dense<0.000000e+00> : vector<256x16xf32>
    %68 = tpu.matmul %65, %67, %cst_72 {dimension_numbers = #tpu.dot_dimension_numbers<[1], [0], [0], [1], [0, 0, 1, 1], [], []>} : vector<256x16xf32>, vector<16x16xf32>, vector<256x16xf32> -> vector<256x16xf32>
    %69 = arith.addf %63, %68 : vector<256x16xf32>
    %c2_73 = arith.constant 2 : index
    %c7_74 = arith.constant 7 : index
    %c0_75 = arith.constant 0 : index
    %70 = vector.load %arg17[%c2_73, %c7_74, %c0_75] : memref<18x25x16xf32, #tpu.memory_space<vmem>>, vector<16x16x16xf32>
    %71 = vector.shape_cast %70 : vector<16x16x16xf32> to vector<256x16xf32>
    %c2_76 = arith.constant 2 : index
    %c0_77 = arith.constant 0 : index
    %c0_78 = arith.constant 0 : index
    %c0_79 = arith.constant 0 : index
    %72 = vector.load %arg8[%c2_76, %c0_77, %c0_78, %c0_79] : memref<3x3x16x16xf32, #tpu.memory_space<vmem>>, vector<1x1x16x16xf32>
    %73 = vector.shape_cast %72 : vector<1x1x16x16xf32> to vector<16x16xf32>
    %cst_80 = arith.constant dense<0.000000e+00> : vector<256x16xf32>
    %74 = tpu.matmul %71, %73, %cst_80 {dimension_numbers = #tpu.dot_dimension_numbers<[1], [0], [0], [1], [0, 0, 1, 1], [], []>} : vector<256x16xf32>, vector<16x16xf32>, vector<256x16xf32> -> vector<256x16xf32>
    %75 = arith.addf %69, %74 : vector<256x16xf32>
    %c2_81 = arith.constant 2 : index
    %c8_82 = arith.constant 8 : index
    %c0_83 = arith.constant 0 : index
    %76 = vector.load %arg17[%c2_81, %c8_82, %c0_83] : memref<18x25x16xf32, #tpu.memory_space<vmem>>, vector<16x16x16xf32>
    %77 = vector.shape_cast %76 : vector<16x16x16xf32> to vector<256x16xf32>
    %c2_84 = arith.constant 2 : index
    %c1_85 = arith.constant 1 : index
    %c0_86 = arith.constant 0 : index
    %c0_87 = arith.constant 0 : index
    %78 = vector.load %arg8[%c2_84, %c1_85, %c0_86, %c0_87] : memref<3x3x16x16xf32, #tpu.memory_space<vmem>>, vector<1x1x16x16xf32>
    %79 = vector.shape_cast %78 : vector<1x1x16x16xf32> to vector<16x16xf32>
    %cst_88 = arith.constant dense<0.000000e+00> : vector<256x16xf32>
    %80 = tpu.matmul %77, %79, %cst_88 {dimension_numbers = #tpu.dot_dimension_numbers<[1], [0], [0], [1], [0, 0, 1, 1], [], []>} : vector<256x16xf32>, vector<16x16xf32>, vector<256x16xf32> -> vector<256x16xf32>
    %81 = arith.addf %75, %80 : vector<256x16xf32>
    %c2_89 = arith.constant 2 : index
    %c9_90 = arith.constant 9 : index
    %c0_91 = arith.constant 0 : index
    %82 = vector.load %arg17[%c2_89, %c9_90, %c0_91] : memref<18x25x16xf32, #tpu.memory_space<vmem>>, vector<16x16x16xf32>
    %83 = vector.shape_cast %82 : vector<16x16x16xf32> to vector<256x16xf32>
    %c2_92 = arith.constant 2 : index
    %c2_93 = arith.constant 2 : index
    %c0_94 = arith.constant 0 : index
    %c0_95 = arith.constant 0 : index
    %84 = vector.load %arg8[%c2_92, %c2_93, %c0_94, %c0_95] : memref<3x3x16x16xf32, #tpu.memory_space<vmem>>, vector<1x1x16x16xf32>
    %85 = vector.shape_cast %84 : vector<1x1x16x16xf32> to vector<16x16xf32>
    %cst_96 = arith.constant dense<0.000000e+00> : vector<256x16xf32>
    %86 = tpu.matmul %83, %85, %cst_96 {dimension_numbers = #tpu.dot_dimension_numbers<[1], [0], [0], [1], [0, 0, 1, 1], [], []>} : vector<256x16xf32>, vector<16x16xf32>, vector<256x16xf32> -> vector<256x16xf32>
    %87 = arith.addf %81, %86 : vector<256x16xf32>
    %c0_97 = arith.constant 0 : index
    %c0_98 = arith.constant 0 : index
    %88 = vector.load %arg9[%c0_97, %c0_98] : memref<1x16xf32, #tpu.memory_space<vmem>>, vector<1x16xf32>
    %89 = vector.broadcast %88 : vector<1x16xf32> to vector<256x16xf32>
    %90 = arith.addf %87, %89 : vector<256x16xf32>
    %c0_99 = arith.constant 0 : index
    %c0_100 = arith.constant 0 : index
    %91 = vector.load %arg10[%c0_99, %c0_100] : memref<1x16xf32, #tpu.memory_space<vmem>>, vector<1x16xf32>
    %92 = vector.broadcast %91 : vector<1x16xf32> to vector<256x16xf32>
    %93 = arith.mulf %90, %92 : vector<256x16xf32>
    %c0_101 = arith.constant 0 : index
    %c0_102 = arith.constant 0 : index
    %94 = vector.load %arg11[%c0_101, %c0_102] : memref<1x16xf32, #tpu.memory_space<vmem>>, vector<1x16xf32>
    %95 = vector.broadcast %94 : vector<1x16xf32> to vector<256x16xf32>
    %96 = arith.addf %93, %95 : vector<256x16xf32>
    %cst_103 = arith.constant 0.000000e+00 : f32
    %97 = vector.broadcast %cst_103 : f32 to vector<256x16xf32>
    %98 = arith.maximumf %96, %97 : vector<256x16xf32>
    %c0_104 = arith.constant 0 : index
    %c0_105 = arith.constant 0 : index
    %99 = vector.load %arg12[%c0_104, %c0_105] : memref<16x32xf32, #tpu.memory_space<vmem>>, vector<16x32xf32>
    %cst_106 = arith.constant dense<0.000000e+00> : vector<256x32xf32>
    %100 = tpu.matmul %98, %99, %cst_106 {dimension_numbers = #tpu.dot_dimension_numbers<[1], [0], [0], [1], [0, 0, 1, 1], [], []>} : vector<256x16xf32>, vector<16x32xf32>, vector<256x32xf32> -> vector<256x32xf32>
    %c0_107 = arith.constant 0 : index
    %c0_108 = arith.constant 0 : index
    %101 = vector.load %arg13[%c0_107, %c0_108] : memref<1x32xf32, #tpu.memory_space<vmem>>, vector<1x32xf32>
    %102 = vector.broadcast %101 : vector<1x32xf32> to vector<256x32xf32>
    %103 = arith.addf %100, %102 : vector<256x32xf32>
    %104 = arith.addf %103, %7 : vector<256x32xf32>
    %105 = vector.shape_cast %104 : vector<256x32xf32> to vector<1x16x16x32xf32>
    %c0_109 = arith.constant 0 : index
    %c0_110 = arith.constant 0 : index
    %c0_111 = arith.constant 0 : index
    %c0_112 = arith.constant 0 : index
    %106 = vector.load %arg16[%c0_109, %c0_110, %c0_111, %c0_112] : memref<1x16x16x32xf32, #tpu.memory_space<vmem>>, vector<1x16x16x32xf32>
    tpu.vector_store %arg16[%c0_109, %c0_110, %c0_111, %c0_112], %105 {strides = array<i32>} : memref<1x16x16x32xf32, #tpu.memory_space<vmem>>, vector<1x16x16x32xf32>,
    return
  }
  func.func @transform_0(%arg0: i32) -> (i32, i32, i32, i32) {
    %c0_i32 = arith.constant 0 : i32
    %c0_i32_0 = arith.constant 0 : i32
    %c0_i32_1 = arith.constant 0 : i32
    %c0_i32_2 = arith.constant 0 : i32
    return %arg0, %c0_i32, %c0_i32_0, %c0_i32_1 : i32, i32, i32, i32
  }
  func.func @transform_1(%arg0: i32) -> (i32, i32) {
    %c0_i32 = arith.constant 0 : i32
    %c0_i32_0 = arith.constant 0 : i32
    %c0_i32_1 = arith.constant 0 : i32
    return %c0_i32, %c0_i32_0 : i32, i32
  }
  func.func @transform_2(%arg0: i32) -> (i32, i32) {
    %c0_i32 = arith.constant 0 : i32
    %c0_i32_0 = arith.constant 0 : i32
    %c0_i32_1 = arith.constant 0 : i32
    return %c0_i32, %c0_i32_0 : i32, i32
  }
  func.func @transform_3(%arg0: i32) -> (i32, i32) {
    %c0_i32 = arith.constant 0 : i32
    %c0_i32_0 = arith.constant 0 : i32
    %c0_i32_1 = arith.constant 0 : i32
    return %c0_i32, %c0_i32_0 : i32, i32
  }
  func.func @transform_4(%arg0: i32) -> (i32, i32) {
    %c0_i32 = arith.constant 0 : i32
    %c0_i32_0 = arith.constant 0 : i32
    %c0_i32_1 = arith.constant 0 : i32
    return %c0_i32, %c0_i32_0 : i32, i32
  }
  func.func @transform_5(%arg0: i32) -> (i32, i32) {
    %c0_i32 = arith.constant 0 : i32
    %c0_i32_0 = arith.constant 0 : i32
    %c0_i32_1 = arith.constant 0 : i32
    return %c0_i32, %c0_i32_0 : i32, i32
  }
  func.func @transform_6(%arg0: i32) -> (i32, i32) {
    %c0_i32 = arith.constant 0 : i32
    %c0_i32_0 = arith.constant 0 : i32
    %c0_i32_1 = arith.constant 0 : i32
    return %c0_i32, %c0_i32_0 : i32, i32
  }
  func.func @transform_7(%arg0: i32) -> (i32, i32, i32, i32) {
    %c0_i32 = arith.constant 0 : i32
    %c0_i32_0 = arith.constant 0 : i32
    %c0_i32_1 = arith.constant 0 : i32
    %c0_i32_2 = arith.constant 0 : i32
    %c0_i32_3 = arith.constant 0 : i32
    return %c0_i32, %c0_i32_0, %c0_i32_1, %c0_i32_2 : i32, i32, i32, i32
  }
  func.func @transform_8(%arg0: i32) -> (i32, i32) {
    %c0_i32 = arith.constant 0 : i32
    %c0_i32_0 = arith.constant 0 : i32
    %c0_i32_1 = arith.constant 0 : i32
    return %c0_i32, %c0_i32_0 : i32, i32
  }
  func.func @transform_9(%arg0: i32) -> (i32, i32) {
    %c0_i32 = arith.constant 0 : i32
    %c0_i32_0 = arith.constant 0 : i32
    %c0_i32_1 = arith.constant 0 : i32
    return %c0_i32, %c0_i32_0 : i32, i32
  }
  func.func @transform_10(%arg0: i32) -> (i32, i32) {
    %c0_i32 = arith.constant 0 : i32
    %c0_i32_0 = arith.constant 0 : i32
    %c0_i32_1 = arith.constant 0 : i32
    return %c0_i32, %c0_i32_0 : i32, i32
  }
  func.func @transform_11(%arg0: i32) -> (i32, i32) {
    %c0_i32 = arith.constant 0 : i32
    %c0_i32_0 = arith.constant 0 : i32
    %c0_i32_1 = arith.constant 0 : i32
    return %c0_i32, %c0_i32_0 : i32, i32
  }
  func.func @transform_12(%arg0: i32) -> (i32, i32) {
    %c0_i32 = arith.constant 0 : i32
    %c0_i32_0 = arith.constant 0 : i32
    %c0_i32_1 = arith.constant 0 : i32
    return %c0_i32, %c0_i32_0 : i32, i32
  }
  func.func @transform_13(%arg0: i32) -> (i32, i32) {
    %c0_i32 = arith.constant 0 : i32
    %c0_i32_0 = arith.constant 0 : i32
    %c0_i32_1 = arith.constant 0 : i32
    return %c0_i32, %c0_i32_0 : i32, i32
  }
  func.func @transform_14(%arg0: i32) -> (i32, i32) {
    %c0_i32 = arith.constant 0 : i32
    %c0_i32_0 = arith.constant 0 : i32
    %c0_i32_1 = arith.constant 0 : i32
    return %c0_i32, %c0_i32_0 : i32, i32
  }
  func.func @transform_15(%arg0: i32) -> (i32, i32, i32, i32) {
    %c0_i32 = arith.constant 0 : i32
    %c0_i32_0 = arith.constant 0 : i32
    %c0_i32_1 = arith.constant 0 : i32
    %c0_i32_2 = arith.constant 0 : i32
    return %arg0, %c0_i32, %c0_i32_0, %c0_i32_1 : i32, i32, i32, i32
  }
}

</mosaic_0001>

<bundles_post_ra>
// kernel: tpu_custom_call.1
= control target key start
LH: loop header
LB: loop body
LE: loop exit
PB: predicated region body
PF: predicated region fallthrough
CT: control target
= control target key end

     0   :  { %s10171_s0 = inlined_call_operand.hbm [shape: f32[2,16,16,16], index: 0, kind: input, shape index: {}]   ;;  %s10172_s1 = inlined_call_operand.vmem [shape: f32[1,16], index: 1, kind: input, shape index: {}]   ;;  %s10173_s2 = inlined_call_operand.vmem [shape: f32[1,16], index: 2, kind: input, shape index: {}]   ;;  %s10174_s3 = inlined_call_operand.hbm [shape: f32[16,16], index: 3, kind: input, shape index: {}]   ;;  %s10175_s4 = inlined_call_operand.vmem [shape: f32[1,16], index: 4, kind: input, shape index: {}]   ;;  %s10176_s5 = inlined_call_operand.vmem [shape: f32[1,16], index: 5, kind: input, shape index: {}]   ;;  %s10177_s6 = inlined_call_operand.hbm [shape: f32[1,16], index: 6, kind: input, shape index: {}]   ;;  %s10178_s7 = inlined_call_operand.hbm [shape: f32[3,3,16,16], index: 7, kind: input, shape index: {}]   ;;  %s10179_s8 = inlined_call_operand.hbm [shape: f32[1,16], index: 8, kind: input, shape index: {}]   ;;  %s10180_s9 = inlined_call_operand.hbm [shape: f32[1,16], index: 9, kind: input, shape index: {}]   ;;  %s10181_s10 = inlined_call_operand.hbm [shape: f32[1,16], index: 10, kind: input, shape index: {}]   ;;  %s10182_s11 = inlined_call_operand.vmem [shape: f32[16,32], index: 11, kind: input, shape index: {}]   ;;  %s10183_s12 = inlined_call_operand.vmem [shape: f32[1,32], index: 12, kind: input, shape index: {}]   ;;  %s10184_s13 = inlined_call_operand.hbm [shape: f32[16,32], index: 13, kind: input, shape index: {}]   ;;  %s10185_s14 = inlined_call_operand.vmem [shape: f32[1,32], index: 14, kind: input, shape index: {}]   ;;  %s10186_s15 = inlined_call_operand.hbm [shape: f32[2,16,16,32], index: 15, kind: output, shape index: {}]  }
   0x1   :  { %10203 = sst [smem:[#allocation90_spill]] %s10174_s3 }
   0x2   :  { %10204 = sst [smem:[#allocation91_spill]] %s10177_s6 }
   0x3   :  { %10205 = sst [smem:[#allocation92_spill]] %s10178_s7 }
   0x4   :  { %10206 = sst [smem:[#allocation93_spill]] %s10179_s8 }
   0x5   :  { %10207 = sst [smem:[#allocation94_spill]] %s10180_s9 }
   0x6   :  { %10208 = sst [smem:[#allocation95_spill]] %s10181_s10 }
   0x7   :  { %10209 = sst [smem:[#allocation96_spill]] %s10183_s12 }
   0x8   :  { %10210 = sst [smem:[#allocation97_spill]] %s10184_s13 }
   0x9   :  { %10211 = sst [smem:[#allocation98_spill]] %s10186_s15 }
   0xa   :  { %20 = vsyncpa [#allocation4], 0 }
   0xb   :  { %22 = vsyncpa [#allocation4 + $0x1], 0 }
   0xc   :  { %23 = vsyncpa [#allocation7], 0 }
   0xd   :  { %24 = vsyncpa [#allocation10], 0 }
   0xe   :  { %25 = vsyncpa [#allocation13], 0 }
   0xf   :  { %26 = vsyncpa [#allocation16], 0 }
  0x10   :  { %27 = vsyncpa [#allocation5], 0 }
  0x11   :  { %29 = vsyncpa [#allocation5 + $0x1], 0  ;;  %s7716_s18 = smov 0   ;;  %s7718_s19 = smov 0  }
  0x12   :  { %s7720_s20 = smov 0   ;;  %s7722_s21 = smov 0  }
  0x13 LB: > { %10212 = sst [smem:[#allocation24_spill]] %s7616_s20  ;;  %s7622_s22 = smov [#allocation6]   ;;  %s7620_s21 = sphi %s7722_s21, %s10396_s21   ;;  %s7616_s20 = sphi %s7720_s20, %s10393_s20   ;;  %s7612_s19 = sphi %s7718_s19, %s10395_s19   ;;  %s7608_s18 = sphi %s7716_s18, %s10394_s18  }
  0x14   : > { %s404_s23 = sshll.u32 %s7622_s22, 4  ;;  %s7737_s24 = sadd.s32 4294967295, %s7620_s21   ;;  %s405_s23 = int_to_ptr.vmem [resolvable:$true] %s404_s23 }
  0x15   : > { %p5753_p0 = scmp.ge.s32.totalorder %s7620_s21, 1  ;;  %p10192_p1 = scmp.eq.s32.totalorder %s7737_s24, 0 }
  0x16   : > { %p386_p2 = scmp.lt.s32.totalorder %s7620_s21, 3  ;;  %s7623_s26 = smov [#allocation9]  }
  0x17   : > { %s434_s27 = sshll.u32 %s7623_s26, 4  ;;  %s7624_s29 = smov [#allocation12]   ;;  %s7755_s27 = int_to_ptr.vmem [resolvable:$true] %s434_s27 }
  0x18   : > { %p7742_p3 = pnand %p5753_p0, %p386_p2  ;;  %s459_s30 = sshll.u32 %s7624_s29, 4  ;;  %s7757_s30 = int_to_ptr.vmem [resolvable:$true] %s459_s30 }
  0x19   : > { %s7341_s17 = scalar_lea.vmem %s405_s23, 256  ;;  %p7349_p11 = scmp.lt.s32.totalorder %s405_s23, %s405_s23 }
  0x1a   : > { %s10213_s25 = scalar_select %p7742_p3, 1, 0 }
  0x1b   : > { %p7240_p5 = pneg %p7742_p3  ;;  %p7342_p8 = scmp.ne.s32.totalorder %s405_s23, %s7341_s17 }
  0x1c   : > { %p7350_p12 = scmp.lt.s32.totalorder %s7341_s17, %s7341_s17 }
  0x1d   : > { %p7751_p6 = pnand %p7240_p5, %p10192_p1 }
  0x1e   : > { %p7351_p13 = por %p7350_p12, %p7349_p11 }
  0x1f   : > { %p7761_p7 = pneg %p7751_p6 }
  0x21   : > { %p7344_p9 = pnand %p7342_p8, %p7761_p7 }
  0x23   : > { %p7345_p10 = pneg %p7344_p9 }
  0x25   : > { %p7352_p0 = pnand %p7351_p13, %p7345_p10 }
  0x27   : > { %7355 = shalt.err (!%p7352_p0)
}
  0x28   : > { %s10188_s22 = smov 128   ;;  %s10190_s26 = smov 8  }
  0x29   : > { %s10216_s3 = sld [smem:[#allocation90_spill]]  ;;  %s7367_s12 = scalar_lea.vmem %s7755_s27, 2304 }
  0x2a   : > { %p7368_p2 = scmp.ne.s32.totalorder %s7755_s27, %s7367_s12  ;;  %p7375_p9 = scmp.lt.s32.totalorder %s7755_s27, %s7755_s27 }
  0x2b   : > { %p7376_p10 = scmp.lt.s32.totalorder %s7367_s12, %s7367_s12 }
  0x2c   : > { %p7370_p5 = pnand %p7368_p2, %p7761_p7 }
  0x2d   : > { %p7377_p11 = por %p7376_p10, %p7375_p9 }
  0x2e   : > { %p7371_p8 = pneg %p7370_p5 }
  0x2f   : > { %7243 = dma.hbm_to_vmem [thread:$0]  (!%p7751_p6), %s10216_s3, 256, %s405_s23, [#allocation7], %s10188_s22, %s10188_s22, %s10190_s26  }
  0x30   : > { %p7378_p12 = pnand %p7377_p11, %p7371_p8 }
  0x32   : > { %7381 = shalt.err (!%p7378_p12)
}
  0x33   : > { %s10217_s7 = sld [smem:[#allocation92_spill]]  ;;  %s7393_s23 = scalar_lea.vmem %s7757_s30, 16 }
  0x34   : > { %p7394_p13 = scmp.ne.s32.totalorder %s7757_s30, %s7393_s23  ;;  %s7400_s12 = scalar_lea.vmem %s7757_s30, 32 }
  0x35   : > { %p7401_p5 = scmp.lt.s32.totalorder %s7757_s30, %s7757_s30  ;;  %p7402_p8 = scmp.lt.s32.totalorder %s7400_s12, %s7393_s23 }
  0x36   : > { %p7396_p0 = pnand %p7394_p13, %p7761_p7 }
  0x37   : > { %p7403_p9 = por %p7402_p8, %p7401_p5 }
  0x38   : > { %p7397_p2 = pneg %p7396_p0 }
  0x39   : > { %7249 = dma.hbm_to_vmem [thread:$0]  (!%p7751_p6), %s10217_s7, 2304, %s7755_s27, [#allocation10], %s10188_s22, %s10188_s22, %s10190_s26  }
  0x3a   : > { %p7404_p10 = pnand %p7403_p9, %p7397_p2 }
  0x3c   : > { %7407 = shalt.err (!%p7404_p10)
}
  0x3d   : > { %s10218_s9 = sld [smem:[#allocation94_spill]]  ;;  %s7627_s27 = smov [#allocation8]  }
  0x3e   : > { %s424_s15 = sshll.u32 %s7627_s27, 4  ;;  %s7628_s22 = smov [#allocation11]   ;;  %s425_s15 = int_to_ptr.vmem [resolvable:$true] %s424_s15 }
  0x3f   : > { %s448_s26 = sshll.u32 %s7628_s22, 4  ;;  %s7419_s3 = scalar_lea.vmem %s425_s15, 16  ;;  %s449_s26 = int_to_ptr.vmem [resolvable:$true] %s448_s26 }
  0x40   : > { %p7420_p11 = scmp.ne.s32.totalorder %s425_s15, %s7419_s3  ;;  %s7426_s23 = scalar_lea.vmem %s425_s15, 32 }
  0x41   : > { %p7427_p0 = scmp.lt.s32.totalorder %s425_s15, %s425_s15  ;;  %p7428_p2 = scmp.lt.s32.totalorder %s7426_s23, %s7419_s3 }
  0x42   : > { %p7422_p12 = pnand %p7420_p11, %p7761_p7 }
  0x43   : > { %7255 = dma.hbm_to_vmem [thread:$0]  (!%p7751_p6), %s10218_s9, 16, %s7757_s30, [#allocation13]  }
  0x44   : > { %p7423_p13 = pneg %p7422_p12  ;;  %p7429_p5 = por %p7428_p2, %p7427_p0 }
  0x46   : > { %p7430_p8 = pnand %p7429_p5, %p7423_p13 }
  0x48   : > { %7433 = shalt.err (!%p7430_p8)
}
  0x49   : > { %s10219_s6 = sld [smem:[#allocation91_spill]]  ;;  %s7445_s22 = scalar_lea.vmem %s449_s26, 16 }
  0x4a   : > { %p7446_p9 = scmp.ne.s32.totalorder %s449_s26, %s7445_s22  ;;  %s7452_s29 = scalar_lea.vmem %s449_s26, 32 }
  0x4b   : > { %p7453_p12 = scmp.lt.s32.totalorder %s449_s26, %s449_s26  ;;  %p7454_p4 = scmp.lt.s32.totalorder %s7452_s29, %s7445_s22 }
  0x4c   : > { %p7448_p10 = pnand %p7446_p9, %p7761_p7 }
  0x4d   : > { %p7455_p1 = por %p7454_p4, %p7453_p12 }
  0x4e   : > { %p7449_p11 = pneg %p7448_p10 }
  0x4f   : > { %7246 = dma.hbm_to_vmem [thread:$0]  (!%p7751_p6), %s10219_s6, 16, %s425_s15, [#allocation7]  }
  0x50   : > { %p7456_p0 = pnand %p7455_p1, %p7449_p11 }
  0x52   : > { %7459 = shalt.err (!%p7456_p0)
}
  0x53   : > { %s10220_s8 = sld [smem:[#allocation93_spill]]  ;;  %s7629_s27 = smov [#allocation14]  }
  0x54   : > { %s470_s15 = sshll.u32 %s7629_s27, 4  ;;  %s7630_s23 = smov [#allocation15]   ;;  %s471_s15 = int_to_ptr.vmem [resolvable:$true] %s470_s15 }
  0x55   : > { %s486_s12 = sshll.u32 %s7630_s23, 4  ;;  %s7471_s30 = scalar_lea.vmem %s471_s15, 16  ;;  %s487_s12 = int_to_ptr.vmem [resolvable:$true] %s486_s12 }
  0x56   : > { %p7472_p13 = scmp.ne.s32.totalorder %s471_s15, %s7471_s30  ;;  %s7478_s22 = scalar_lea.vmem %s471_s15, 32 }
  0x57   : > { %p7479_p1 = scmp.lt.s32.totalorder %s471_s15, %s471_s15  ;;  %p7480_p4 = scmp.lt.s32.totalorder %s7478_s22, %s7471_s30 }
  0x58   : > { %p7474_p2 = pnand %p7472_p13, %p7761_p7 }
  0x59   : > { %7252 = dma.hbm_to_vmem [thread:$0]  (!%p7751_p6), %s10220_s8, 16, %s449_s26, [#allocation10]  }
  0x5a   : > { %p7475_p5 = pneg %p7474_p2  ;;  %p7481_p8 = por %p7480_p4, %p7479_p1 }
  0x5c   : > { %p7482_p9 = pnand %p7481_p8, %p7475_p5 }
  0x5e   : > { %7485 = shalt.err (!%p7482_p9)
}
  0x5f   : > { %s10221_s10 = sld [smem:[#allocation95_spill]]  ;;  %s7497_s3 = scalar_lea.vmem %s487_s12, 256 }
  0x60   : > { %p7498_p10 = scmp.ne.s32.totalorder %s487_s12, %s7497_s3  ;;  %p7505_p0 = scmp.lt.s32.totalorder %s487_s12, %s487_s12 }
  0x61   : > { %p7506_p13 = scmp.lt.s32.totalorder %s7497_s3, %s7497_s3 }
  0x62   : > { %p7500_p11 = pnand %p7498_p10, %p7761_p7 }
  0x63   : > { %p7507_p2 = por %p7506_p13, %p7505_p0 }
  0x64   : > { %p7501_p12 = pneg %p7500_p11 }
  0x65   : > { %7258 = dma.hbm_to_vmem [thread:$0]  (!%p7751_p6), %s10221_s10, 16, %s471_s15, [#allocation13]  }
  0x66   : > { %p7508_p3 = pnand %p7507_p2, %p7501_p12 }
  0x68   : > { %7511 = shalt.err (!%p7508_p3)
}
  0x69   : > { %s10222_s17 = smov 8   ;;  %s10223_s27 = smov 128  }
  0x6a   : > { %s10224_s13 = sld [smem:[#allocation97_spill]]  ;;  %s5752_s28 = sadd.s32 4294967294, %s7620_s21  }
  0x6b   : > { %s7836_s16 = sadd.s32 1, %s7620_s21   ;;  %s42_s15 = sadd.s32 1, %s7616_s20 }
  0x6c   : > { %s39_s22 = ssub.s32 %s7620_s21, %s7836_s16  ;;  %p49_p3 = scmp.ne.s32.totalorder %s7616_s20, %s7612_s19 }
  0x6d   : > { %p40_p7 = scmp.eq.s32.totalorder %s39_s22, 0  ;;  %p50_p5 = scmp.eq.s32.totalorder %s7620_s21, 0 }
  0x6e   : > { %p55_p1 = scmp.ne.s32.totalorder %s7612_s19, %s7608_s18  ;;  %p373_p4 = scmp.eq.s32.totalorder %s7737_s24, 1 }
  0x6f   : > { %s7848_s29 = scalar_select %p40_p7, %s7616_s20, %s42_s15  }
  0x70   : > { %7261 = dma.hbm_to_vmem [thread:$0]  (!%p7751_p6), %s10224_s13, 256, %s487_s12, [#allocation16], %s10223_s27, %s10223_s27, %s10222_s17  }
  0x71   : > { %10225 = sst [smem:[#allocation25_spill]] %s7848_s29  ;;  %p51_p8 = por %p50_p5, %p49_p3 }
  0x72   : > { %p10226_p9 = scmp.eq.s32.totalorder %s7737_s24, 0  ;;  %p7856_p6 = por %p373_p4, %p49_p3 }
  0x73   : > { %p379_p11 = scmp.eq.s32.totalorder %s5752_s28, 1  ;;  %p7277_p12 = scmp.lt.s32.totalorder %s7620_s21, 2 }
  0x74   : > { %p7852_p10 = por %p10226_p9, %p55_p1  ;;  %s503_s3 = sand.u32 1, %s7616_s20  }
  0x75   : > { %s10228_s12 = scalar_select %p7856_p6, 1, 0 }
  0x76   : > { %s10227_s26 = scalar_select %p7852_p10, 1, 0 }
  0x77   : > { %p7862_p0 = por %p379_p11, %p55_p1  ;;  %s5762_s30 = sshll.u32 %s503_s3, 8 }
  0x78   : > { %s6174_s15 = sshll.u32 %s7620_s21, 12  ;;  %s507_s8 = scalar_lea.vmem [#allocation3], %s5762_s30 }
  0x79   : > { %s10229_s23 = scalar_select %p7862_p0, 1, 0 }
  0x7a   : > { %s7870_s7 = scalar_lea.hbm %s10171_s0, %s6174_s15  ;;  %s514_s9 = sshll.u32 %s507_s8, 4  ;;  %s7876_s9 = int_to_ptr.vmem [resolvable:$true] %s514_s9 }
  0x7b   : > { %p7872_p13 = pnand %p7277_p12, %p51_p8  ;;  %s7878_s10 = scalar_lea.sflag [#allocation4], %s503_s3 }
  0x7c   : > { %s7512_s13 = scalar_lea.hbm %s7870_s7, 4096  ;;  %s7517_s30 = scalar_lea.hbm %s10171_s0, 8192 }
  0x7d   : > { %p7513_p2 = scmp.ne.s32.totalorder %s7870_s7, %s7512_s13  ;;  %p7514_p3 = pneg %p7872_p13 }
  0x7e   : > { %p7518_p1 = scmp.lt.s32.totalorder %s7870_s7, %s10171_s0  ;;  %p7519_p4 = scmp.lt.s32.totalorder %s7517_s30, %s7512_s13 }
  0x7f   : > { %p7515_p7 = pnand %p7514_p3, %p7513_p2 }
  0x80   : > { %p7520_p8 = por %p7519_p4, %p7518_p1 }
  0x81   : > { %p7516_p5 = pneg %p7515_p7 }
  0x83   : > { %p7521_p9 = pnand %p7520_p8, %p7516_p5 }
  0x85   : > { %7524 = shalt.err (!%p7521_p9)
}
  0x86   : > { %s7525_s3 = scalar_lea.vmem %s7876_s9, 4096  ;;  %s7631_s29 = smov [#allocation3]  }
  0x87   : > { %p7526_p11 = scmp.ne.s32.totalorder %s7876_s9, %s7525_s3  ;;  %s7530_s20 = sshll.u32 %s7631_s29, 4  ;;  %s7531_s20 = int_to_ptr.vmem [resolvable:$false] %s7530_s20 }
  0x88   : > { %s7532_s6 = scalar_lea.vmem %s7531_s20, 8192  ;;  %p7533_p7 = scmp.lt.s32.totalorder %s7876_s9, %s7531_s20 }
  0x89   : > { %p7528_p12 = pnand %p7526_p11, %p7514_p3  ;;  %p7534_p0 = scmp.lt.s32.totalorder %s7532_s6, %s7525_s3 }
  0x8b   : > { %p7529_p2 = pneg %p7528_p12  ;;  %p7535_p6 = por %p7534_p0, %p7533_p7 }
  0x8d   : > { %p7536_p10 = pnand %p7535_p6, %p7529_p2 }
  0x8f   : > { %7539 = shalt.err (!%p7536_p10)
}
  0x90   : > { %7265 = dma.hbm_to_vmem [thread:$0]  (!%p7872_p13), %s7870_s7, 4096, %s7876_s9, %s7878_s10, %s10223_s27, %s10223_s27, %s10222_s17  }
  0x91   : > { %p10231_p3 = scmp.ne.s32.totalorder %s10213_s25, 0 }
  0x93   : > { %526 = sbr.rel (%p10231_p3) target bundleno = 1124 (0x464), region = 80 }
  0x98   : > { %s7905_s13 = sand.u32 1, %s7612_s19   ;;  %p10232_p10 = scmp.ne.s32.totalorder %s10227_s26, 0 }
  0x99   : > { %s5766_s20 = sshll.u32 %s7905_s13, 8  ;;  %s529_s29 = scalar_lea.sflag [#allocation4], %s7905_s13 }
  0x9a   : > { %s7911_s28 = scalar_lea.vmem [#allocation3], %s5766_s20 }
  0x9b   : > { %7583 = dma.done.wait (%p10232_p10), %s529_s29, 4096  }
  0x9c   : > { %7585 = vsyncadd (%p10232_p10), %s529_s29, 4294963200  ;;  %p10233_p6 = scmp.eq.s32.totalorder %s7737_s24, 0 }
  0x9e   : > { %7587 = dma.done.wait (%p10233_p6), [#allocation7], 272   ;;  %p10234_p0 = pmov %p10233_p6 }
  0xa0   : > { %7589 = vsyncadd (%p10234_p0), [#allocation7], 4294967024  ;;  %p10235_p13 = pmov %p10234_p0 }
  0xa1   : > { %p10236_p5 = pmov %p10234_p0 }
  0xa2   : > { %7591 = dma.done.wait (%p10235_p13), [#allocation10], 2320  }
  0xa3   : > { %7593 = vsyncadd (%p10236_p5), [#allocation10], 4294964976  ;;  %p10237_p1 = pmov %p10234_p0 }
  0xa4   : > { %p10238_p4 = pmov %p10234_p0 }
  0xa5   : > { %7595 = dma.done.wait (%p10237_p1), [#allocation13], 32  }
  0xa6   : > { %7597 = vsyncadd (%p10238_p4), [#allocation13], 4294967264  ;;  %p10239_p8 = pmov %p10234_p0 }
  0xa7   : > { %p10240_p9 = pmov %p10234_p0 }
  0xa8   : > { %7599 = dma.done.wait (%p10239_p8), [#allocation16], 256  }
  0xa9   : > { %7601 = vsyncadd (%p10240_p9), [#allocation16], 4294967040  ;;  %v1081_v0 = vld [vmem:[#allocation6 + $0x8] sm:$0xff]  ;;  %v1080_v1 = vld [vmem:[#allocation6] sm:$0xff]  ;;  %vm648_vm0 = vcmask 130048   ;;  %vm1523_vm1 = vcmask 122880  }
  0xaa   : > { %v607_v2 = vld [vmem:[%s7911_s28] sm:$0xff]  ;;  %6636 = vmatprep.subr.mxu1 %v1081_v0  ;;  %v7945_v5 = vld [vmem:[%s7911_s28 + $0x8] sm:$0xff]  ;;  %v7952_v8 = vld [vmem:[%s7911_s28 + $0x10] sm:$0xff]  ;;  %s10355_s9 = sld [smem:[#allocation96_spill]]  ;;  %vm5565_vm2 = vcmask 261120   ;;  %s9967_s10 = scalar_lea.vmem [#allocation17], %s5766_s20 }
  0xab   : > { %v7937_v3 = vld [vmem:[%s10172_s1] ss:$0 sm:$0xff]  ;;  %6588 = vmatprep.mubr.msk.f32.mxu0 %vm648_vm0, %v607_v2  ;;  %6637 = vmatpush3.msra.mxu1 %v1081_v0  ;;  %v7955_v9 = vld [vmem:[%s7911_s28 + $0x18] sm:$0xff]  ;;  %v7967_v14 = vld [vmem:[%s7911_s28 + $0x28] sm:$0xff]  ;;  %s6175_s20 = sshll.u32 %s7737_s24, 12  ;;  %s5612_s25 = sshll.u32 %s9967_s10, 4  ;;  %s10124_s25 = int_to_ptr.vmem [resolvable:$true] %s5612_s25 }
  0xac   : > { %v7942_v4 = vld [vmem:[%s10173_s2] ss:$0 sm:$0xff]  ;;  %v977_v6 = vmul.f32 %v7937_v3, %v607_v2  ;;  %v978_v7 = vmul.f32 %v7937_v3, %v7945_v5  ;;  %6638 = vmatprep.subr.mxu1 %v1080_v1  ;;  %v979_v11 = vmul.f32 %v7937_v3, %v7952_v8  ;;  %v980_v12 = vmul.f32 %v7937_v3, %v7955_v9  ;;  %v7970_v15 = vld [vmem:[%s7911_s28 + $0x30] sm:$0xff]  ;;  %v7982_v25 = vld [vmem:[%s7911_s28 + $0x38] sm:$0xff]  ;;  %s10388_s26 = sld [smem:[#allocation98_spill]]  ;;  %s5599_s24 = scalar_lea.sflag [#allocation5], %s7905_s13 }
  0xad   : > { %v7958_v10 = vld [vmem:[%s7911_s28 + $0x20] sm:$0xff]  ;;  %6639 = vmatpush3.msra.mxu1 %v1080_v1  ;;  %v982_v20 = vmul.f32 %v7937_v3, %v7967_v14  ;;  %v983_v24 = vmul.f32 %v7937_v3, %v7970_v15  ;;  %v984_v30 = vmul.f32 %v7937_v3, %v7982_v25  ;;  %v7997_v34 = vld [vmem:[%s7911_s28 + $0x48] sm:$0xff]  ;;  %v8000_v35 = vld [vmem:[%s7911_s28 + $0x50] sm:$0xff]  ;;  %s7540_s30 = scalar_lea.vmem %s10124_s25, 4096  ;;  %p10389_p12 = scmp.ne.s32.totalorder %s10228_s12, 0 }
  0xae   : > { %v981_v13 = vmul.f32 %v7937_v3, %v7958_v10  ;;  %v1016_v16 = vadd.f32 %v7942_v4, %v977_v6  ;;  %v1017_v17 = vadd.f32 %v7942_v4, %v978_v7  ;;  %v1018_v18 = vadd.f32 %v7942_v4, %v979_v11  ;;  %v7985_v27 = vld [vmem:[%s7911_s28 + $0x40] sm:$0xff]  ;;  %v640_v36 = vld [vmem:[#allocation15 + $0x8] sm:$0xff]  ;;  %v639_v37 = vld [vmem:[#allocation15] sm:$0xff]  ;;  %p7541_p11 = scmp.ne.s32.totalorder %s10124_s25, %s7540_s30  ;;  %s7633_s8 = smov [#allocation17]  }
  0xaf   : > { %v1019_v19 = vadd.f32 %v7942_v4, %v980_v12  ;;  %v1021_v29 = vadd.f32 %v7942_v4, %v982_v20  ;;  %v1022_v32 = vadd.f32 %v7942_v4, %v983_v24  ;;  %v985_v33 = vmul.f32 %v7937_v3, %v7985_v27  ;;  %6584 = vmatprep.subr.mxu0 %v640_v36  ;;  %v8011_v44 = vld [vmem:[%s7911_s28 + $0x58] sm:$0xff]  ;;  %v8014_v45 = vld [vmem:[%s7911_s28 + $0x60] sm:$0xff]  ;;  %v1694_v46 = vld [vmem:[#allocation9 + $0x18] sm:$0xff]  ;;  %s7544_s22 = sshll.u32 %s7633_s8, 4  ;;  %s7545_s22 = int_to_ptr.vmem [resolvable:$false] %s7544_s22 }
  0xb0   : > { %v1048_v21 = vmax.f32 %v1016_v16, 0.0  ;;  %v1049_v22 = vmax.f32 %v1017_v17, 0.0  ;;  %v1020_v23 = vadd.f32 %v7942_v4, %v981_v13  ;;  %v1050_v26 = vmax.f32 %v1018_v18, 0.0  ;;  %6585 = vmatpush3.msra.mxu0 %v640_v36  ;;  %v8025_v53 = vld [vmem:[%s7911_s28 + $0x68] sm:$0xff]  ;;  %v8030_v55 = vld [vmem:[%s7911_s28 + $0x70] sm:$0xff]  ;;  %v8043_v62 = vld [vmem:[%s7911_s28 + $0x78] sm:$0xff]  ;;  %p7542_p2 = pnand %p7541_p11, %p10389_p12  ;;  %p7547_p3 = scmp.lt.s32.totalorder %s10124_s25, %s7545_s22 }
  0xb1   : > { %v1051_v28 = vmax.f32 %v1019_v19, 0.0  ;;  %v1053_v38 = vmax.f32 %v1021_v29, 0.0  ;;  %v1023_v39 = vadd.f32 %v7942_v4, %v984_v30  ;;  %v986_v40 = vmul.f32 %v7937_v3, %v7997_v34  ;;  %6586 = vmatprep.subr.mxu0 %v639_v37  ;;  %v1693_v54 = vld [vmem:[#allocation9 + $0x10] sm:$0xff]  ;;  %v8079_v17 = vld [vmem:[%s7911_s28 + $0x98] sm:$0xff]  ;;  %s7546_s3 = scalar_lea.vmem %s7545_s22, 8192 }
  0xb2   : > { %6640 = vmatprep.mubr.msk.f32.mxu1 %vm648_vm0, %v1048_v21  ;;  %v1052_v31 = vmax.f32 %v1020_v23, 0.0  ;;  %v1054_v41 = vmax.f32 %v1022_v32, 0.0  ;;  %v1024_v42 = vadd.f32 %v7942_v4, %v985_v33  ;;  %v987_v43 = vmul.f32 %v7937_v3, %v8000_v35  ;;  %6587 = vmatpush3.msra.mxu0 %v639_v37  ;;  %v8046_v63 = vld [vmem:[%s7911_s28 + $0x80] sm:$0xff]  ;;  %v8097_v24 = vld [vmem:[%s7911_s28 + $0xa8] sm:$0xff]  ;;  %v8115_v32 = vld [vmem:[%s7911_s28 + $0xb8] sm:$0xff]  ;;  %s10122_s15 = scalar_lea.hbm %s10388_s26, %s6175_s20  ;;  %p7543_p7 = pneg %p7542_p2 }
  0xb3   : > { %6641 = vmatmul.mubr.msk.f32.vlgmr.msra.gmra.mxu1 %vm648_vm0, %v1049_v22  ;;  %v1055_v47 = vmax.f32 %v1023_v39, 0.0  ;;  %v1025_v48 = vadd.f32 %v7942_v4, %v986_v40  ;;  %v988_v49 = vmul.f32 %v7937_v3, %v8011_v44  ;;  %v989_v52 = vmul.f32 %v7937_v3, %v8014_v45  ;;  %6589 = vmatmul.mubr.msk.f32.vlgmr.msra.gmra.mxu0 %vm648_vm0, %v7945_v5  ;;  %v8118_v33 = vld [vmem:[%s7911_s28 + $0xc0] sm:$0xff]  ;;  %v632_v40 = vld [vmem:[%s7911_s28 + $0xc8] sm:$0xff]  ;;  %p7548_p10 = scmp.lt.s32.totalorder %s7546_s3, %s7540_s30 }
  0xb4   : > { %6643 = vmatprep.mubr.msk.f32.mxu1 %vm648_vm0, %v1050_v26  ;;  %v1056_v50 = vmax.f32 %v1024_v42, 0.0  ;;  %v1026_v51 = vadd.f32 %v7942_v4, %v987_v43  ;;  %6688 = vmatprep.subr.mxu0 %v1694_v46  ;;  %v990_v58 = vmul.f32 %v7937_v3, %v8025_v53  ;;  %v991_v61 = vmul.f32 %v7937_v3, %v8030_v55 }
  0xb5   : > { %6591 = vmatprep.mubr.msk.f32.mxu0 %vm648_vm0, %v7952_v8  ;;  %6689 = vmatpush3.msra.mxu0 %v1694_v46  ;;  %v1057_v56 = vmax.f32 %v1025_v48, 0.0  ;;  %v1027_v57 = vadd.f32 %v7942_v4, %v988_v49  ;;  %v1028_v60 = vadd.f32 %v7942_v4, %v989_v52  ;;  %v992_v2 = vmul.f32 %v7937_v3, %v8043_v62  ;;  %v8061_v8 = vld [vmem:[%s7911_s28 + $0x88] sm:$0xff]  ;;  %v634_v48 = vld [vmem:[%s7911_s28 + $0xd8] sm:$0xff]  ;;  %v635_v49 = vld [vmem:[%s7911_s28 + $0xe0] sm:$0xff]  ;;  %p7549_p6 = por %p7548_p10, %p7547_p3 }
  0xb6   : > { %6690 = vmatprep.subr.mxu0 %v1693_v54  ;;  %v1058_v59 = vmax.f32 %v1026_v51, 0.0  ;;  %v1029_v1 = vadd.f32 %v7942_v4, %v990_v58  ;;  %v1030_v6 = vadd.f32 %v7942_v4, %v991_v61  ;;  %v993_v7 = vmul.f32 %v7937_v3, %v8046_v63 }
  0xb7   : > { %6644 = vmatmul.mubr.msk.f32.gmra.mxu1 %vm648_vm0, %v1051_v28  ;;  %6592 = vmatmul.mubr.msk.f32.gmra.mxu0 %vm648_vm0, %v7955_v9  ;;  %v1059_v0 = vmax.f32 %v1027_v57, 0.0  ;;  %v1060_v5 = vmax.f32 %v1028_v60, 0.0  ;;  %v8064_v9 = vld [vmem:[%s7911_s28 + $0x90] sm:$0xff]  ;;  %v1031_v11 = vadd.f32 %v7942_v4, %v992_v2  ;;  %v994_v12 = vmul.f32 %v7937_v3, %v8061_v8  ;;  %p7550_p0 = pnand %p7549_p6, %p7543_p7 }
  0xb8   : > { %6646 = vmatprep.mubr.msk.f32.mxu1 %vm648_vm0, %v1052_v31  ;;  %6594 = vmatprep.mubr.msk.f32.mxu0 %vm648_vm0, %v7958_v10  ;;  %v1061_v10 = vmax.f32 %v1029_v1, 0.0  ;;  %v1062_v13 = vmax.f32 %v1030_v6, 0.0  ;;  %v1032_v16 = vadd.f32 %v7942_v4, %v993_v7  ;;  %v996_v20 = vmul.f32 %v7937_v3, %v8079_v17  ;;  %v637_v57 = vld [vmem:[%s7911_s28 + $0xf0] sm:$0xff] }
  0xb9   : > { %6691 = vmatpush3.msra.mxu0 %v1693_v54  ;;  %v1063_v18 = vmax.f32 %v1031_v11, 0.0  ;;  %v1033_v19 = vadd.f32 %v7942_v4, %v994_v12  ;;  %v998_v28 = vmul.f32 %v7937_v3, %v8097_v24  ;;  %v1000_v36 = vmul.f32 %v7937_v3, %v8115_v32  ;;  %v1659_v11 = vld [vmem:[#allocation9 + $0x8] sm:$0xff]  ;;  %v1658_v12 = vld [vmem:[#allocation9] sm:$0xff] }
  0xba   : > { %v1064_v21 = vmax.f32 %v1032_v16, 0.0  ;;  %v1001_v39 = vmul.f32 %v7937_v3, %v8118_v33  ;;  %v1004_v52 = vmul.f32 %v7937_v3, %v634_v48  ;;  %6740 = vmatprep.subr.mxu1 %v1659_v11 }
  0xbb   : > { %6647 = vmatmul.mubr.msk.f32.gmra.mxu1 %vm648_vm0, %v1053_v38  ;;  %6595 = vmatmul.mubr.msk.f32.gmra.mxu0 %vm648_vm0, %v7967_v14  ;;  %v995_v14 = vmul.f32 %v7937_v3, %v8064_v9  ;;  %v1065_v26 = vmax.f32 %v1033_v19, 0.0  ;;  %v1039_v43 = vadd.f32 %v7942_v4, %v1000_v36  ;;  %v2759_v19 = vld [vmem:[#allocation9 + $0x38] sm:$0xff] }
  0xbc   : > { %6649 = vmatprep.mubr.msk.f32.mxu1 %vm648_vm0, %v1054_v41  ;;  %6597 = vmatprep.mubr.msk.f32.mxu0 %vm648_vm0, %v7970_v15  ;;  %v8082_v15 = vld [vmem:[%s7911_s28 + $0xa0] sm:$0xff]  ;;  %v633_v41 = vld [vmem:[%s7911_s28 + $0xd0] sm:$0xff]  ;;  %v1040_v46 = vadd.f32 %v7942_v4, %v1001_v39 }
  0xbd   : > { %v1034_v22 = vadd.f32 %v7942_v4, %v995_v14  ;;  %v997_v23 = vmul.f32 %v7937_v3, %v8082_v15  ;;  %6741 = vmatpush3.msra.mxu1 %v1659_v11 }
  0xbe   : > { %6742 = vmatprep.subr.mxu1 %v1658_v12 }
  0xbf   : > { %6650 = vmatmul.mubr.msk.f32.gmra.mxu1 %vm648_vm0, %v1055_v47  ;;  %6598 = vmatmul.mubr.msk.f32.gmra.mxu0 %vm648_vm0, %v7982_v25  ;;  %v8100_v25 = vld [vmem:[%s7911_s28 + $0xb0] sm:$0xff]  ;;  %v1066_v29 = vmax.f32 %v1034_v22, 0.0  ;;  %v1036_v30 = vadd.f32 %v7942_v4, %v997_v23  ;;  %v1003_v47 = vmul.f32 %v7937_v3, %v633_v41  ;;  %v8357_v22 = vld [vmem:[%s10175_s4] ss:$0 sm:$0xff] }
  0xc0   : > { %6652 = vmatprep.mubr.msk.f32.mxu1 %vm648_vm0, %v1056_v50  ;;  %6600 = vmatprep.mubr.msk.f32.mxu0 %vm648_vm0, %v7985_v27  ;;  %v1035_v27 = vadd.f32 %v7942_v4, %v996_v20  ;;  %v999_v31 = vmul.f32 %v7937_v3, %v8100_v25  ;;  %v1071_v50 = vmax.f32 %v1039_v43, 0.0  ;;  %v2758_v20 = vld [vmem:[#allocation9 + $0x30] sm:$0xff] }
  0xc1   : > { %v1068_v37 = vmax.f32 %v1036_v30, 0.0  ;;  %v1042_v54 = vadd.f32 %v7942_v4, %v1003_v47  ;;  %6743 = vmatpush3.msra.mxu1 %v1658_v12 }
  0xc2   : > { %v1038_v38 = vadd.f32 %v7942_v4, %v999_v31  ;;  %6844 = vmatprep.subr.mxu1 %v2759_v19 }
  0xc3   : > { %6653 = vmatmul.mubr.msk.f32.gmra.mxu1 %vm648_vm0, %v1057_v56  ;;  %6601 = vmatmul.mubr.msk.f32.gmra.mxu0 %vm648_vm0, %v7997_v34  ;;  %v1067_v34 = vmax.f32 %v1035_v27, 0.0  ;;  %v636_v56 = vld [vmem:[%s7911_s28 + $0xe8] sm:$0xff]  ;;  %v1074_v61 = vmax.f32 %v1042_v54, 0.0 }
  0xc4   : > { %6655 = vmatprep.mubr.msk.f32.mxu1 %vm648_vm0, %v1058_v59  ;;  %6603 = vmatprep.mubr.msk.f32.mxu0 %vm648_vm0, %v8000_v35  ;;  %v1037_v35 = vadd.f32 %v7942_v4, %v998_v28  ;;  %v1043_v59 = vadd.f32 %v7942_v4, %v1004_v52  ;;  %v1006_v60 = vmul.f32 %v7937_v3, %v636_v56 }
  0xc6   : > { %v1069_v42 = vmax.f32 %v1037_v35, 0.0  ;;  %v1075_v1 = vmax.f32 %v1043_v59, 0.0  ;;  %v1045_v2 = vadd.f32 %v7942_v4, %v1006_v60 }
  0xc7   : > { %6656 = vmatmul.mubr.msk.f32.gmra.mxu1 %vm648_vm0, %v1059_v0  ;;  %6604 = vmatmul.mubr.msk.f32.gmra.mxu0 %vm648_vm0, %v8011_v44  ;;  %v1002_v44 = vmul.f32 %v7937_v3, %v632_v40  ;;  %v8169_v0 = vld [vmem:[%s7911_s28 + $0xf8] sm:$0xff] }
  0xc8   : > { %6658 = vmatprep.mubr.msk.f32.mxu1 %vm648_vm0, %v1060_v5  ;;  %6606 = vmatprep.mubr.msk.f32.mxu0 %vm648_vm0, %v8014_v45  ;;  %v1070_v45 = vmax.f32 %v1038_v38, 0.0  ;;  %v1008_v5 = vmul.f32 %v7937_v3, %v8169_v0 }
  0xc9   : > { %v1041_v51 = vadd.f32 %v7942_v4, %v1002_v44 }
  0xcb   : > { %6659 = vmatmul.mubr.msk.f32.gmra.mxu1 %vm648_vm0, %v1061_v10  ;;  %6607 = vmatmul.mubr.msk.f32.gmra.mxu0 %vm648_vm0, %v8025_v53  ;;  %v1072_v53 = vmax.f32 %v1040_v46, 0.0  ;;  %v1073_v58 = vmax.f32 %v1041_v51, 0.0 }
  0xcc   : > { %6661 = vmatprep.mubr.msk.f32.mxu1 %vm648_vm0, %v1062_v13  ;;  %6609 = vmatprep.mubr.msk.f32.mxu0 %vm648_vm0, %v8030_v55  ;;  %v1005_v55 = vmul.f32 %v7937_v3, %v635_v49 }
  0xcf   : > { %6662 = vmatmul.mubr.msk.f32.gmra.mxu1 %vm648_vm0, %v1063_v18  ;;  %6610 = vmatmul.mubr.msk.f32.gmra.mxu0 %vm648_vm0, %v8043_v62  ;;  %v1044_v62 = vadd.f32 %v7942_v4, %v1005_v55  ;;  %v2370_v18 = vld [vmem:[#allocation9 + $0x20] sm:$0xff] }
  0xd0   : > { %6664 = vmatprep.mubr.msk.f32.mxu1 %vm648_vm0, %v1064_v21  ;;  %6612 = vmatprep.mubr.msk.f32.mxu0 %vm648_vm0, %v8046_v63  ;;  %v1007_v63 = vmul.f32 %v7937_v3, %v637_v57  ;;  %v8351_v21 = vld [vmem:[#allocation9 + $0x48] sm:$0xff] }
  0xd1   : > { %v1076_v6 = vmax.f32 %v1044_v62, 0.0 }
  0xd2   : > { %v1046_v7 = vadd.f32 %v7942_v4, %v1007_v63 }
  0xd3   : > { %6665 = vmatmul.mubr.msk.f32.gmra.mxu1 %vm648_vm0, %v1065_v26  ;;  %6613 = vmatmul.mubr.msk.f32.gmra.mxu0 %vm648_vm0, %v8061_v8  ;;  %v1077_v8 = vmax.f32 %v1045_v2, 0.0  ;;  %v8365_v26 = vld [vmem:[#allocation8] ss:$0 sm:$0xff] }
  0xd4   : > { %6667 = vmatprep.mubr.msk.f32.mxu1 %vm648_vm0, %v1066_v29  ;;  %6615 = vmatprep.mubr.msk.f32.mxu0 %vm648_vm0, %v8064_v9  ;;  %v1047_v9 = vadd.f32 %v7942_v4, %v1008_v5  ;;  %v1078_v10 = vmax.f32 %v1046_v7, 0.0  ;;  %v7632_v4 = vmov 0.0  }
  0xd5   : > { %1527 = vst.msk [vmem:[#allocation2 + $0x30] sm:$0xff] %vm648_vm0, %v7632_v4  ;;  %1520 = vst.msk [vmem:[#allocation2] sm:$0xff] %vm648_vm0, %v7632_v4 }
  0xd6   : > { %v1079_v3 = vmax.f32 %v1047_v9, 0.0  ;;  %1521 = vst.msk [vmem:[#allocation2 + $0x8] sm:$0xff] %vm648_vm0, %v7632_v4  ;;  %1522 = vst.msk [vmem:[#allocation2 + $0x10] sm:$0xff] %vm648_vm0, %v7632_v4 }
  0xd7   : > { %6668 = vmatmul.mubr.msk.f32.gmra.mxu1 %vm648_vm0, %v1067_v34  ;;  %6616 = vmatmul.mubr.msk.f32.gmra.mxu0 %vm648_vm0, %v8079_v17  ;;  %1525 = vst.msk [vmem:[#allocation2 + $0x20] sm:$0xff] %vm648_vm0, %v7632_v4  ;;  %1526 = vst.msk [vmem:[#allocation2 + $0x28] sm:$0xff] %vm648_vm0, %v7632_v4 }
  0xd8   : > { %6670 = vmatprep.mubr.msk.f32.mxu1 %vm648_vm0, %v1068_v37  ;;  %6618 = vmatprep.mubr.msk.f32.mxu0 %vm648_vm0, %v8082_v15  ;;  %1529 = vst.msk [vmem:[#allocation2 + $0x40] sm:$0xff] %vm648_vm0, %v7632_v4  ;;  %1530 = vst.msk [vmem:[#allocation2 + $0x48] sm:$0xff] %vm648_vm0, %v7632_v4  ;;  %v2371_v15 = vld [vmem:[#allocation9 + $0x28] sm:$0xff] }
  0xd9   : > { %1531 = vst.msk [vmem:[#allocation2 + $0x50] sm:$0xff] %vm648_vm0, %v7632_v4  ;;  %1533 = vst.msk [vmem:[#allocation2 + $0x60] sm:$0xff] %vm648_vm0, %v7632_v4  ;;  %6792 = vmatprep.subr.mxu0 %v2371_v15 }
  0xda   : > { %1534 = vst.msk [vmem:[#allocation2 + $0x68] sm:$0xff] %vm648_vm0, %v7632_v4  ;;  %1535 = vst.msk [vmem:[#allocation2 + $0x70] sm:$0xff] %vm648_vm0, %v7632_v4 }
  0xdb   : > { %6671 = vmatmul.mubr.msk.f32.gmra.mxu1 %vm648_vm0, %v1069_v42  ;;  %6619 = vmatmul.mubr.msk.f32.gmra.mxu0 %vm648_vm0, %v8097_v24  ;;  %1537 = vst.msk [vmem:[#allocation2 + $0x80] sm:$0xff] %vm648_vm0, %v7632_v4  ;;  %1538 = vst.msk [vmem:[#allocation2 + $0x88] sm:$0xff] %vm648_vm0, %v7632_v4  ;;  %v8362_v24 = vld [vmem:[%s10176_s5] ss:$0 sm:$0xff] }
  0xdc   : > { %6673 = vmatprep.mubr.msk.f32.mxu1 %vm648_vm0, %v1070_v45  ;;  %6621 = vmatprep.mubr.msk.f32.mxu0 %vm648_vm0, %v8100_v25  ;;  %1539 = vst.msk [vmem:[#allocation2 + $0x90] sm:$0xff] %vm648_vm0, %v7632_v4  ;;  %1541 = vst.msk [vmem:[#allocation2 + $0xa0] sm:$0xff] %vm648_vm0, %v7632_v4 }
  0xdd   : > { %1542 = vst.msk [vmem:[#allocation2 + $0xa8] sm:$0xff] %vm648_vm0, %v7632_v4  ;;  %1543 = vst.msk [vmem:[#allocation2 + $0xb0] sm:$0xff] %vm648_vm0, %v7632_v4  ;;  %v1660_v13 = vld [vmem:[#allocation2 + $0x8] sm:$0xff]  ;;  %v1661_v14 = vld [vmem:[#allocation2 + $0x10] sm:$0xff] }
  0xde   : > { %1545 = vst.msk [vmem:[#allocation2 + $0xc0] sm:$0xff] %vm648_vm0, %v7632_v4  ;;  %1546 = vst.msk [vmem:[#allocation2 + $0xc8] sm:$0xff] %vm648_vm0, %v7632_v4  ;;  %v1626_v16 = vld [vmem:[#allocation2 + $0x7] sm:$0xff]  ;;  %v1627_v17 = vld [vmem:[#allocation2 + $0xf] sm:$0xff] }
  0xdf   : > { %6674 = vmatmul.mubr.msk.f32.gmra.mxu1 %vm648_vm0, %v1071_v50  ;;  %6622 = vmatmul.mubr.msk.f32.gmra.mxu0 %vm648_vm0, %v8115_v32  ;;  %1547 = vst.msk [vmem:[#allocation2 + $0xd0] sm:$0xff] %vm648_vm0, %v7632_v4  ;;  %1549 = vst.msk [vmem:[#allocation2 + $0xe0] sm:$0xff] %vm648_vm0, %v7632_v4  ;;  %v8383_v50 = vld [vmem:[#allocation9 + $0x58] sm:$0xff] }
  0xe0   : > { %6676 = vmatprep.mubr.msk.f32.mxu1 %vm648_vm0, %v1072_v53  ;;  %6624 = vmatprep.mubr.msk.f32.mxu0 %vm648_vm0, %v8118_v33  ;;  %1550 = vst.msk [vmem:[#allocation2 + $0xe8] sm:$0xff] %vm648_vm0, %v7632_v4  ;;  %1551 = vst.msk [vmem:[#allocation2 + $0xf0] sm:$0xff] %vm648_vm0, %v7632_v4 }
  0xe1   : > { %1553 = vst.msk [vmem:[#allocation2 + $0x100] sm:$0xff] %vm648_vm0, %v7632_v4  ;;  %1554 = vst.msk [vmem:[#allocation2 + $0x108] sm:$0xff] %vm648_vm0, %v7632_v4 }
  0xe2   : > { %1555 = vst.msk [vmem:[#allocation2 + $0x110] sm:$0xff] %vm648_vm0, %v7632_v4  ;;  %1557 = vst.msk [vmem:[#allocation2 + $0x120] sm:$0xff] %vm648_vm0, %v7632_v4 }
  0xe3   : > { %6677 = vmatmul.mubr.msk.f32.gmra.mxu1 %vm648_vm0, %v1073_v58  ;;  %6625 = vmatmul.mubr.msk.f32.gmra.mxu0 %vm648_vm0, %v632_v40  ;;  %1558 = vst.msk [vmem:[#allocation2 + $0x128] sm:$0xff] %vm648_vm0, %v7632_v4  ;;  %1559 = vst.msk [vmem:[#allocation2 + $0x130] sm:$0xff] %vm648_vm0, %v7632_v4 }
  0xe4   : > { %6679 = vmatprep.mubr.msk.f32.mxu1 %vm648_vm0, %v1074_v61  ;;  %6627 = vmatprep.mubr.msk.f32.mxu0 %vm648_vm0, %v633_v41  ;;  %1561 = vst.msk [vmem:[#allocation2 + $0x140] sm:$0xff] %vm648_vm0, %v7632_v4  ;;  %1562 = vst.msk [vmem:[#allocation2 + $0x148] sm:$0xff] %vm648_vm0, %v7632_v4 }
  0xe5   : > { %1563 = vst.msk [vmem:[#allocation2 + $0x150] sm:$0xff] %vm648_vm0, %v7632_v4  ;;  %1565 = vst.msk [vmem:[#allocation2 + $0x160] sm:$0xff] %vm648_vm0, %v7632_v4 }
  0xe6   : > { %1566 = vst.msk [vmem:[#allocation2 + $0x168] sm:$0xff] %vm648_vm0, %v7632_v4  ;;  %1567 = vst.msk [vmem:[#allocation2 + $0x170] sm:$0xff] %vm648_vm0, %v7632_v4 }
  0xe7   : > { %6680 = vmatmul.mubr.msk.f32.gmra.mxu1 %vm648_vm0, %v1075_v1  ;;  %6628 = vmatmul.mubr.msk.f32.gmra.mxu0 %vm648_vm0, %v634_v48  ;;  %1569 = vst.msk [vmem:[#allocation2 + $0x180] sm:$0xff] %vm648_vm0, %v7632_v4  ;;  %1570 = vst.msk [vmem:[#allocation2 + $0x188] sm:$0xff] %vm648_vm0, %v7632_v4 }
  0xe8   : > { %6682 = vmatprep.mubr.msk.f32.mxu1 %vm648_vm0, %v1076_v6  ;;  %6630 = vmatprep.mubr.msk.f32.mxu0 %vm648_vm0, %v635_v49  ;;  %1571 = vst.msk [vmem:[#allocation2 + $0x190] sm:$0xff] %vm648_vm0, %v7632_v4  ;;  %1573 = vst.msk [vmem:[#allocation2 + $0x1a0] sm:$0xff] %vm648_vm0, %v7632_v4 }
  0xe9   : > { %1574 = vst.msk [vmem:[#allocation2 + $0x1a8] sm:$0xff] %vm648_vm0, %v7632_v4  ;;  %1575 = vst.msk [vmem:[#allocation2 + $0x1b0] sm:$0xff] %vm648_vm0, %v7632_v4 }
  0xea   : > { %1577 = vst.msk [vmem:[#allocation2 + $0x1c0] sm:$0xff] %vm648_vm0, %v7632_v4  ;;  %1578 = vst.msk [vmem:[#allocation2 + $0x1c8] sm:$0xff] %vm648_vm0, %v7632_v4 }
  0xeb   : > { %6683 = vmatmul.mubr.msk.f32.gmra.mxu1 %vm648_vm0, %v1077_v8  ;;  %6631 = vmatmul.mubr.msk.f32.gmra.mxu0 %vm648_vm0, %v636_v56  ;;  %1579 = vst.msk [vmem:[#allocation2 + $0x1d0] sm:$0xff] %vm648_vm0, %v7632_v4  ;;  %1581 = vst.msk [vmem:[#allocation2 + $0x1e0] sm:$0xff] %vm648_vm0, %v7632_v4 }
  0xec   : > { %6685 = vmatprep.mubr.msk.f32.mxu1 %vm648_vm0, %v1078_v10  ;;  %6633 = vmatprep.mubr.msk.f32.mxu0 %vm648_vm0, %v637_v57  ;;  %1582 = vst.msk [vmem:[#allocation2 + $0x1e8] sm:$0xff] %vm648_vm0, %v7632_v4  ;;  %1583 = vst.msk [vmem:[#allocation2 + $0x1f0] sm:$0xff] %vm648_vm0, %v7632_v4 }
  0xed   : > { %1585 = vst.msk [vmem:[#allocation2 + $0x200] sm:$0xff] %vm648_vm0, %v7632_v4  ;;  %1586 = vst.msk [vmem:[#allocation2 + $0x208] sm:$0xff] %vm648_vm0, %v7632_v4 }
  0xee   : > { %1587 = vst.msk [vmem:[#allocation2 + $0x210] sm:$0xff] %vm648_vm0, %v7632_v4  ;;  %1589 = vst.msk [vmem:[#allocation2 + $0x220] sm:$0xff] %vm648_vm0, %v7632_v4 }
  0xef   : > { %6686 = vmatmul.mubr.msk.f32.gmra.mxu1 %vm648_vm0, %v1079_v3  ;;  %1590 = vst.msk [vmem:[#allocation2 + $0x228] sm:$0xff] %vm648_vm0, %v7632_v4  ;;  %1591 = vst.msk [vmem:[#allocation2 + $0x230] sm:$0xff] %vm648_vm0, %v7632_v4  ;;  %6634 = vmatmul.mubr.msk.f32.gmra.mxu0 %vm648_vm0, %v8169_v0 }
  0xf0   : > { %1524 = vst.msk [vmem:[#allocation2 + $0x18] sm:$0x1] %vm1523_vm1, %v7632_v4  ;;  %1528 = vst.msk [vmem:[#allocation2 + $0x38] sm:$0x1] %vm1523_vm1, %v7632_v4  ;;  %6692 = vmatprep.mubr.msk.f32.mxu0 %vm648_vm0, %v1660_v13  ;;  %6744 = vmatprep.mubr.msk.f32.mxu1 %vm648_vm0, %v1626_v16 }
  0xf1   : > { %1532 = vst.msk [vmem:[#allocation2 + $0x58] sm:$0x1] %vm1523_vm1, %v7632_v4  ;;  %1536 = vst.msk [vmem:[#allocation2 + $0x78] sm:$0x1] %vm1523_vm1, %v7632_v4 }
  0xf2   : > { %1540 = vst.msk [vmem:[#allocation2 + $0x98] sm:$0x1] %vm1523_vm1, %v7632_v4  ;;  %1544 = vst.msk [vmem:[#allocation2 + $0xb8] sm:$0x1] %vm1523_vm1, %v7632_v4 }
  0xf3   : > { %1548 = vst.msk [vmem:[#allocation2 + $0xd8] sm:$0x1] %vm1523_vm1, %v7632_v4  ;;  %1552 = vst.msk [vmem:[#allocation2 + $0xf8] sm:$0x1] %vm1523_vm1, %v7632_v4  ;;  %6693 = vmatmul.mubr.msk.f32.vlgmr.msra.gmra.mxu0 %vm648_vm0, %v1661_v14  ;;  %6745 = vmatmul.mubr.msk.f32.vlgmr.msra.gmra.mxu1 %vm648_vm0, %v1627_v17 }
  0xf4   : > { %1556 = vst.msk [vmem:[#allocation2 + $0x118] sm:$0x1] %vm1523_vm1, %v7632_v4  ;;  %1560 = vst.msk [vmem:[#allocation2 + $0x138] sm:$0x1] %vm1523_vm1, %v7632_v4  ;;  %6793 = vmatpush3.msra.mxu0 %v2371_v15  ;;  %6845 = vmatpush3.msra.mxu1 %v2759_v19 }
  0xf5   : > { %1564 = vst.msk [vmem:[#allocation2 + $0x158] sm:$0x1] %vm1523_vm1, %v7632_v4  ;;  %1568 = vst.msk [vmem:[#allocation2 + $0x178] sm:$0x1] %vm1523_vm1, %v7632_v4  ;;  %6794 = vmatprep.subr.mxu0 %v2370_v18  ;;  %6846 = vmatprep.subr.mxu1 %v2758_v20 }
  0xf6   : > { %1572 = vst.msk [vmem:[#allocation2 + $0x198] sm:$0x1] %vm1523_vm1, %v7632_v4  ;;  %1576 = vst.msk [vmem:[#allocation2 + $0x1b8] sm:$0x1] %vm1523_vm1, %v7632_v4  ;;  %6795 = vmatpush3.msra.mxu0 %v2370_v18  ;;  %6847 = vmatpush3.msra.mxu1 %v2758_v20 }
  0xf7   : > { %1580 = vst.msk [vmem:[#allocation2 + $0x1d8] sm:$0x1] %vm1523_vm1, %v7632_v4  ;;  %1584 = vst.msk [vmem:[#allocation2 + $0x1f8] sm:$0x1] %vm1523_vm1, %v7632_v4  ;;  %6896 = vmatprep.subr.mxu0 %v8351_v21  ;;  %6948 = vmatprep.subr.mxu1 %v8383_v50 }
  0xf8   : > { %1588 = vst.msk [vmem:[#allocation2 + $0x218] sm:$0x1] %vm1523_vm1, %v7632_v4  ;;  %1592 = vst.msk [vmem:[#allocation2 + $0x238] sm:$0x1] %vm1523_vm1, %v7632_v4 }
 0x173   : > { %v6642_v23 = vpop.f32.mrf.mxu1  ;;  %v8390_v55 = vpop.f32.mrf.mxu0 }
 0x174   : > { %v1257_v25 = vadd.f32 %v6642_v23, %v8357_v22  ;;  %10241 = vst [vmem:[#allocation26_spill] sm:$0xff] %v8390_v55 }
 0x175   : > { %v1251_v27 = vpop.f32.mrf.mxu1  ;;  %v8396_v61 = vpop.f32.mrf.mxu0 }
 0x176   : > { %v1418_v28 = vmul.f32 %v8362_v24, %v1257_v25  ;;  %v1252_v29 = vadd.f32 %v8357_v22, %v1251_v27  ;;  %10242 = vst [vmem:[#allocation27_spill] sm:$0xff] %v8396_v61 }
 0x177   : > { %v6645_v30 = vpop.f32.mrf.mxu1  ;;  %v8408_v9 = vpop.f32.mrf.mxu0 }
 0x178   : > { %v1457_v31 = vadd.f32 %v8365_v26, %v1418_v28  ;;  %v1417_v32 = vmul.f32 %v8362_v24, %v1252_v29  ;;  %v1267_v33 = vadd.f32 %v6645_v30, %v8357_v22  ;;  %10243 = vst [vmem:[#allocation28_spill] sm:$0xff] %v8408_v9 }
 0x179   : > { %v1261_v34 = vpop.f32.mrf.mxu1  ;;  %v8424_v16 = vpop.f32.mrf.mxu0 }
 0x17a   : > { %v1489_v35 = vmax.f32 %v1457_v31, 0.0  ;;  %v1456_v36 = vadd.f32 %v8365_v26, %v1417_v32  ;;  %v1420_v37 = vmul.f32 %v8362_v24, %v1267_v33  ;;  %v1262_v38 = vadd.f32 %v8357_v22, %v1261_v34  ;;  %10244 = vst [vmem:[#allocation29_spill] sm:$0xff] %v8424_v16 }
 0x17b   : > { %v6648_v39 = vpop.f32.mrf.mxu1  ;;  %v8436_v27 = vpop.f32.mrf.mxu0 }
 0x17c   : > { %1595 = vst.msk [vmem:[#allocation2 + $0x30] sm:$0xff] %vm648_vm0, %v1489_v35  ;;  %v1488_v40 = vmax.f32 %v1456_v36, 0.0  ;;  %v1459_v41 = vadd.f32 %v8365_v26, %v1420_v37  ;;  %v1419_v42 = vmul.f32 %v8362_v24, %v1262_v38  ;;  %v1277_v43 = vadd.f32 %v6648_v39, %v8357_v22  ;;  %10245 = vst [vmem:[#allocation30_spill] sm:$0xff] %v8436_v27 }
 0x17d   : > { %v1271_v44 = vpop.f32.mrf.mxu1  ;;  %v8452_v34 = vpop.f32.mrf.mxu0 }
 0x17e   : > { %1594 = vst.msk [vmem:[#allocation2 + $0x28] sm:$0xff] %vm648_vm0, %v1488_v40  ;;  %v1491_v45 = vmax.f32 %v1459_v41, 0.0  ;;  %v1458_v46 = vadd.f32 %v8365_v26, %v1419_v42  ;;  %v1422_v47 = vmul.f32 %v8362_v24, %v1277_v43  ;;  %v1272_v48 = vadd.f32 %v8357_v22, %v1271_v44  ;;  %10246 = vst [vmem:[#allocation31_spill] sm:$0xff] %v8452_v34 }
 0x17f   : > { %v6651_v49 = vpop.f32.mrf.mxu1  ;;  %v8464_v43 = vpop.f32.mrf.mxu0 }
 0x180   : > { %1597 = vst.msk [vmem:[#allocation2 + $0x50] sm:$0xff] %vm648_vm0, %v1491_v45  ;;  %v1490_v51 = vmax.f32 %v1458_v46, 0.0  ;;  %v1461_v52 = vadd.f32 %v8365_v26, %v1422_v47  ;;  %v1421_v53 = vmul.f32 %v8362_v24, %v1272_v48  ;;  %v1287_v54 = vadd.f32 %v6651_v49, %v8357_v22  ;;  %10247 = vst [vmem:[#allocation32_spill] sm:$0xff] %v8464_v43 }
 0x181   : > { %v1281_v56 = vpop.f32.mrf.mxu1 }
 0x182   : > { %1596 = vst.msk [vmem:[#allocation2 + $0x48] sm:$0xff] %vm648_vm0, %v1490_v51  ;;  %v1493_v57 = vmax.f32 %v1461_v52, 0.0  ;;  %v1460_v58 = vadd.f32 %v8365_v26, %v1421_v53  ;;  %v1424_v59 = vmul.f32 %v8362_v24, %v1287_v54  ;;  %v1282_v60 = vadd.f32 %v8357_v22, %v1281_v56  ;;  %v8480_v51 = vpop.f32.mrf.mxu0 }
 0x183   : > { %v6654_v62 = vpop.f32.mrf.mxu1  ;;  %v8418_v12 = vld [vmem:[#allocation2 + $0x30] sm:$0xff]  ;;  %10248 = vst [vmem:[#allocation33_spill] sm:$0xff] %v8480_v51 }
 0x184   : > { %1599 = vst.msk [vmem:[#allocation2 + $0x70] sm:$0xff] %vm648_vm0, %v1493_v57  ;;  %v1492_v63 = vmax.f32 %v1460_v58, 0.0  ;;  %v1463_v0 = vadd.f32 %v8365_v26, %v1424_v59  ;;  %v1423_v1 = vmul.f32 %v8362_v24, %v1282_v60  ;;  %v1297_v2 = vadd.f32 %v6654_v62, %v8357_v22  ;;  %v8492_v62 = vpop.f32.mrf.mxu0 }
 0x185   : > { %v1291_v5 = vpop.f32.mrf.mxu1  ;;  %v8402_v6 = vld [vmem:[#allocation2 + $0x28] sm:$0xff]  ;;  %10249 = vst [vmem:[#allocation34_spill] sm:$0xff] %v8492_v62 }
 0x186   : > { %v8404_v7 = vld [vmem:[#allocation2 + $0x27] sm:$0xff]  ;;  %v8406_v8 = vld [vmem:[#allocation2 + $0x2f] sm:$0xff]  ;;  %1598 = vst.msk [vmem:[#allocation2 + $0x68] sm:$0xff] %vm648_vm0, %v1492_v63  ;;  %v1495_v10 = vmax.f32 %v1463_v0, 0.0  ;;  %v1462_v3 = vadd.f32 %v8365_v26, %v1423_v1  ;;  %v1426_v4 = vmul.f32 %v8362_v24, %v1297_v2  ;;  %v1292_v11 = vadd.f32 %v8357_v22, %v1291_v5  ;;  %6695 = vmatprep.mubr.msk.f32.mxu0 %vm648_vm0, %v8402_v6 }
 0x187   : > { %6747 = vmatprep.mubr.msk.f32.mxu1 %vm648_vm0, %v8404_v7  ;;  %v6657_v13 = vpop.f32.mrf.mxu1  ;;  %6696 = vmatmul.mubr.msk.f32.gmra.mxu0 %vm648_vm0, %v8418_v12  ;;  %v8446_v32 = vld [vmem:[#allocation2 + $0x50] sm:$0xff] }
 0x188   : > { %6748 = vmatmul.mubr.msk.f32.gmra.mxu1 %vm648_vm0, %v8406_v8  ;;  %1601 = vst.msk [vmem:[#allocation2 + $0x90] sm:$0xff] %vm648_vm0, %v1495_v10  ;;  %v1494_v14 = vmax.f32 %v1462_v3, 0.0  ;;  %v1465_v17 = vadd.f32 %v8365_v26, %v1426_v4  ;;  %v1425_v15 = vmul.f32 %v8362_v24, %v1292_v11  ;;  %v1307_v18 = vadd.f32 %v6657_v13, %v8357_v22  ;;  %v8508_v3 = vpop.f32.mrf.mxu0 }
 0x189   : > { %v1301_v19 = vpop.f32.mrf.mxu1  ;;  %v8430_v20 = vld [vmem:[#allocation2 + $0x48] sm:$0xff]  ;;  %10250 = vst [vmem:[#allocation35_spill] sm:$0xff] %v8508_v3 }
 0x18a   : > { %v8432_v23 = vld [vmem:[#allocation2 + $0x47] sm:$0xff]  ;;  %v8434_v25 = vld [vmem:[#allocation2 + $0x4f] sm:$0xff]  ;;  %1600 = vst.msk [vmem:[#allocation2 + $0x88] sm:$0xff] %vm648_vm0, %v1494_v14  ;;  %v1497_v28 = vmax.f32 %v1465_v17, 0.0  ;;  %v1464_v29 = vadd.f32 %v8365_v26, %v1425_v15  ;;  %v1428_v30 = vmul.f32 %v8362_v24, %v1307_v18  ;;  %v1302_v31 = vadd.f32 %v8357_v22, %v1301_v19  ;;  %6698 = vmatprep.mubr.msk.f32.mxu0 %vm648_vm0, %v8430_v20 }
 0x18b   : > { %6750 = vmatprep.mubr.msk.f32.mxu1 %vm648_vm0, %v8432_v23  ;;  %v6660_v33 = vpop.f32.mrf.mxu1  ;;  %6699 = vmatmul.mubr.msk.f32.gmra.mxu0 %vm648_vm0, %v8446_v32  ;;  %v8474_v48 = vld [vmem:[#allocation2 + $0x70] sm:$0xff] }
 0x18c   : > { %6751 = vmatmul.mubr.msk.f32.gmra.mxu1 %vm648_vm0, %v8434_v25  ;;  %1603 = vst.msk [vmem:[#allocation2 + $0xb0] sm:$0xff] %vm648_vm0, %v1497_v28  ;;  %v1496_v35 = vmax.f32 %v1464_v29, 0.0  ;;  %v1467_v36 = vadd.f32 %v8365_v26, %v1428_v30  ;;  %v1427_v37 = vmul.f32 %v8362_v24, %v1302_v31  ;;  %v1317_v38 = vadd.f32 %v6660_v33, %v8357_v22  ;;  %v8520_v28 = vpop.f32.mrf.mxu0 }
 0x18d   : > { %v1311_v39 = vpop.f32.mrf.mxu1  ;;  %v8458_v40 = vld [vmem:[#allocation2 + $0x68] sm:$0xff]  ;;  %10251 = vst [vmem:[#allocation36_spill] sm:$0xff] %v8520_v28 }
 0x18e   : > { %v8460_v41 = vld [vmem:[#allocation2 + $0x67] sm:$0xff]  ;;  %v8462_v42 = vld [vmem:[#allocation2 + $0x6f] sm:$0xff]  ;;  %1602 = vst.msk [vmem:[#allocation2 + $0xa8] sm:$0xff] %vm648_vm0, %v1496_v35  ;;  %v1499_v44 = vmax.f32 %v1467_v36, 0.0  ;;  %v1466_v45 = vadd.f32 %v8365_v26, %v1427_v37  ;;  %v1430_v46 = vmul.f32 %v8362_v24, %v1317_v38  ;;  %v1312_v47 = vadd.f32 %v8357_v22, %v1311_v39  ;;  %6701 = vmatprep.mubr.msk.f32.mxu0 %vm648_vm0, %v8458_v40  ;;  %v8536_v37 = vpop.f32.mrf.mxu0 }
 0x18f   : > { %6753 = vmatprep.mubr.msk.f32.mxu1 %vm648_vm0, %v8460_v41  ;;  %v6663_v49 = vpop.f32.mrf.mxu1  ;;  %6702 = vmatmul.mubr.msk.f32.gmra.mxu0 %vm648_vm0, %v8474_v48  ;;  %v8502_v5 = vld [vmem:[#allocation2 + $0x90] sm:$0xff]  ;;  %10252 = vst [vmem:[#allocation37_spill] sm:$0xff] %v8536_v37 }
 0x190   : > { %6754 = vmatmul.mubr.msk.f32.gmra.mxu1 %vm648_vm0, %v8462_v42  ;;  %1605 = vst.msk [vmem:[#allocation2 + $0xd0] sm:$0xff] %vm648_vm0, %v1499_v44  ;;  %v1498_v52 = vmax.f32 %v1466_v45, 0.0  ;;  %v1469_v53 = vadd.f32 %v8365_v26, %v1430_v46  ;;  %v1429_v54 = vmul.f32 %v8362_v24, %v1312_v47  ;;  %v1327_v56 = vadd.f32 %v6663_v49, %v8357_v22 }
 0x191   : > { %v1321_v57 = vpop.f32.mrf.mxu1  ;;  %v8486_v58 = vld [vmem:[#allocation2 + $0x88] sm:$0xff] }
 0x192   : > { %v8488_v59 = vld [vmem:[#allocation2 + $0x87] sm:$0xff]  ;;  %v8490_v60 = vld [vmem:[#allocation2 + $0x8f] sm:$0xff]  ;;  %1604 = vst.msk [vmem:[#allocation2 + $0xc8] sm:$0xff] %vm648_vm0, %v1498_v52  ;;  %v1501_v63 = vmax.f32 %v1469_v53, 0.0  ;;  %v1468_v0 = vadd.f32 %v8365_v26, %v1429_v54  ;;  %v1432_v1 = vmul.f32 %v8362_v24, %v1327_v56  ;;  %v1322_v2 = vadd.f32 %v8357_v22, %v1321_v57  ;;  %6704 = vmatprep.mubr.msk.f32.mxu0 %vm648_vm0, %v8486_v58  ;;  %v8548_v53 = vpop.f32.mrf.mxu0 }
 0x193   : > { %6756 = vmatprep.mubr.msk.f32.mxu1 %vm648_vm0, %v8488_v59  ;;  %v6666_v10 = vpop.f32.mrf.mxu1  ;;  %6705 = vmatmul.mubr.msk.f32.gmra.mxu0 %vm648_vm0, %v8502_v5  ;;  %v8530_v35 = vld [vmem:[#allocation2 + $0xb0] sm:$0xff]  ;;  %10253 = vst [vmem:[#allocation38_spill] sm:$0xff] %v8548_v53 }
 0x194   : > { %6757 = vmatmul.mubr.msk.f32.gmra.mxu1 %vm648_vm0, %v8490_v60  ;;  %1607 = vst.msk [vmem:[#allocation2 + $0xf0] sm:$0xff] %vm648_vm0, %v1501_v63  ;;  %v1500_v4 = vmax.f32 %v1468_v0, 0.0  ;;  %v1471_v11 = vadd.f32 %v8365_v26, %v1432_v1  ;;  %v1431_v13 = vmul.f32 %v8362_v24, %v1322_v2  ;;  %v1337_v14 = vadd.f32 %v6666_v10, %v8357_v22  ;;  %v8564_v2 = vpop.f32.mrf.mxu0 }
 0x195   : > { %v1331_v17 = vpop.f32.mrf.mxu1  ;;  %v8514_v15 = vld [vmem:[#allocation2 + $0xa8] sm:$0xff]  ;;  %10254 = vst [vmem:[#allocation39_spill] sm:$0xff] %v8564_v2 }
 0x196   : > { %v8516_v18 = vld [vmem:[#allocation2 + $0xa7] sm:$0xff]  ;;  %v8518_v19 = vld [vmem:[#allocation2 + $0xaf] sm:$0xff]  ;;  %1606 = vst.msk [vmem:[#allocation2 + $0xe8] sm:$0xff] %vm648_vm0, %v1500_v4  ;;  %v1503_v29 = vmax.f32 %v1471_v11, 0.0  ;;  %v1470_v30 = vadd.f32 %v8365_v26, %v1431_v13  ;;  %v1434_v31 = vmul.f32 %v8362_v24, %v1337_v14  ;;  %v1332_v33 = vadd.f32 %v8357_v22, %v1331_v17  ;;  %6707 = vmatprep.mubr.msk.f32.mxu0 %vm648_vm0, %v8514_v15 }
 0x197   : > { %6759 = vmatprep.mubr.msk.f32.mxu1 %vm648_vm0, %v8516_v18  ;;  %v6669_v36 = vpop.f32.mrf.mxu1  ;;  %6708 = vmatmul.mubr.msk.f32.gmra.mxu0 %vm648_vm0, %v8530_v35  ;;  %v8558_v0 = vld [vmem:[#allocation2 + $0xd0] sm:$0xff] }
 0x198   : > { %6760 = vmatmul.mubr.msk.f32.gmra.mxu1 %vm648_vm0, %v8518_v19  ;;  %1609 = vst.msk [vmem:[#allocation2 + $0x110] sm:$0xff] %vm648_vm0, %v1503_v29  ;;  %v1502_v38 = vmax.f32 %v1470_v30, 0.0  ;;  %v1473_v39 = vadd.f32 %v8365_v26, %v1434_v31  ;;  %v1433_v44 = vmul.f32 %v8362_v24, %v1332_v33  ;;  %v1347_v45 = vadd.f32 %v6669_v36, %v8357_v22  ;;  %v8576_v31 = vpop.f32.mrf.mxu0 }
 0x199   : > { %v1341_v46 = vpop.f32.mrf.mxu1  ;;  %v8542_v47 = vld [vmem:[#allocation2 + $0xc8] sm:$0xff]  ;;  %10255 = vst [vmem:[#allocation40_spill] sm:$0xff] %v8576_v31 }
 0x19a   : > { %v8544_v49 = vld [vmem:[#allocation2 + $0xc7] sm:$0xff]  ;;  %v8546_v52 = vld [vmem:[#allocation2 + $0xcf] sm:$0xff]  ;;  %1608 = vst.msk [vmem:[#allocation2 + $0x108] sm:$0xff] %vm648_vm0, %v1502_v38  ;;  %v1505_v54 = vmax.f32 %v1473_v39, 0.0  ;;  %v1472_v56 = vadd.f32 %v8365_v26, %v1433_v44  ;;  %v1436_v57 = vmul.f32 %v8362_v24, %v1347_v45  ;;  %v1342_v63 = vadd.f32 %v8357_v22, %v1341_v46  ;;  %6710 = vmatprep.mubr.msk.f32.mxu0 %vm648_vm0, %v8542_v47  ;;  %v8592_v46 = vpop.f32.mrf.mxu0 }
 0x19b   : > { %6762 = vmatprep.mubr.msk.f32.mxu1 %vm648_vm0, %v8544_v49  ;;  %v6672_v1 = vpop.f32.mrf.mxu1  ;;  %6711 = vmatmul.mubr.msk.f32.gmra.mxu0 %vm648_vm0, %v8558_v0  ;;  %v8586_v44 = vld [vmem:[#allocation2 + $0xf0] sm:$0xff]  ;;  %10256 = vst [vmem:[#allocation41_spill] sm:$0xff] %v8592_v46 }
 0x19c   : > { %6763 = vmatmul.mubr.msk.f32.gmra.mxu1 %vm648_vm0, %v8546_v52  ;;  %1611 = vst.msk [vmem:[#allocation2 + $0x130] sm:$0xff] %vm648_vm0, %v1505_v54  ;;  %v1504_v10 = vmax.f32 %v1472_v56, 0.0  ;;  %v1475_v4 = vadd.f32 %v8365_v26, %v1436_v57  ;;  %v1435_v11 = vmul.f32 %v8362_v24, %v1342_v63  ;;  %v1357_v13 = vadd.f32 %v6672_v1, %v8357_v22 }
 0x19d   : > { %v1351_v14 = vpop.f32.mrf.mxu1  ;;  %v8570_v17 = vld [vmem:[#allocation2 + $0xe8] sm:$0xff] }
 0x19e   : > { %v8572_v29 = vld [vmem:[#allocation2 + $0xe7] sm:$0xff]  ;;  %v8574_v30 = vld [vmem:[#allocation2 + $0xef] sm:$0xff]  ;;  %1610 = vst.msk [vmem:[#allocation2 + $0x128] sm:$0xff] %vm648_vm0, %v1504_v10  ;;  %v1507_v33 = vmax.f32 %v1475_v4, 0.0  ;;  %v1474_v36 = vadd.f32 %v8365_v26, %v1435_v11  ;;  %v1438_v38 = vmul.f32 %v8362_v24, %v1357_v13  ;;  %v1352_v39 = vadd.f32 %v8357_v22, %v1351_v14  ;;  %6713 = vmatprep.mubr.msk.f32.mxu0 %vm648_vm0, %v8570_v17  ;;  %v8604_v13 = vpop.f32.mrf.mxu0 }
 0x19f   : > { %6765 = vmatprep.mubr.msk.f32.mxu1 %vm648_vm0, %v8572_v29  ;;  %v6675_v45 = vpop.f32.mrf.mxu1  ;;  %6714 = vmatmul.mubr.msk.f32.gmra.mxu0 %vm648_vm0, %v8586_v44  ;;  %10257 = vst [vmem:[#allocation42_spill] sm:$0xff] %v8604_v13 }
 0x1a0   : > { %6766 = vmatmul.mubr.msk.f32.gmra.mxu1 %vm648_vm0, %v8574_v30  ;;  %1613 = vst.msk [vmem:[#allocation2 + $0x150] sm:$0xff] %vm648_vm0, %v1507_v33  ;;  %v1506_v54 = vmax.f32 %v1474_v36, 0.0  ;;  %v1477_v56 = vadd.f32 %v8365_v26, %v1438_v38  ;;  %v1437_v57 = vmul.f32 %v8362_v24, %v1352_v39  ;;  %v1367_v63 = vadd.f32 %v6675_v45, %v8357_v22  ;;  %v8614_v39 = vld [vmem:[#allocation2 + $0x110] sm:$0xff] }
 0x1a1   : > { %v1361_v1 = vpop.f32.mrf.mxu1  ;;  %v8598_v10 = vld [vmem:[#allocation2 + $0x108] sm:$0xff] }
 0x1a2   : > { %v8600_v4 = vld [vmem:[#allocation2 + $0x107] sm:$0xff]  ;;  %v8602_v11 = vld [vmem:[#allocation2 + $0x10f] sm:$0xff]  ;;  %1612 = vst.msk [vmem:[#allocation2 + $0x148] sm:$0xff] %vm648_vm0, %v1506_v54  ;;  %v1509_v14 = vmax.f32 %v1477_v56, 0.0  ;;  %v1476_v33 = vadd.f32 %v8365_v26, %v1437_v57  ;;  %v1440_v36 = vmul.f32 %v8362_v24, %v1367_v63  ;;  %v1362_v38 = vadd.f32 %v8357_v22, %v1361_v1  ;;  %6716 = vmatprep.mubr.msk.f32.mxu0 %vm648_vm0, %v8598_v10  ;;  %v8620_v54 = vpop.f32.mrf.mxu0 }
 0x1a3   : > { %6768 = vmatprep.mubr.msk.f32.mxu1 %vm648_vm0, %v8600_v4  ;;  %v6678_v45 = vpop.f32.mrf.mxu1  ;;  %6717 = vmatmul.mubr.msk.f32.gmra.mxu0 %vm648_vm0, %v8614_v39  ;;  %10258 = vst [vmem:[#allocation43_spill] sm:$0xff] %v8620_v54 }
 0x1a4   : > { %6769 = vmatmul.mubr.msk.f32.gmra.mxu1 %vm648_vm0, %v8602_v11  ;;  %1615 = vst.msk [vmem:[#allocation2 + $0x170] sm:$0xff] %vm648_vm0, %v1509_v14  ;;  %v1508_v56 = vmax.f32 %v1476_v33, 0.0  ;;  %v1479_v57 = vadd.f32 %v8365_v26, %v1440_v36  ;;  %v1439_v63 = vmul.f32 %v8362_v24, %v1362_v38  ;;  %v1377_v1 = vadd.f32 %v6678_v45, %v8357_v22  ;;  %v8632_v53 = vpop.f32.mrf.mxu0  ;;  %v8642_v38 = vld [vmem:[#allocation2 + $0x130] sm:$0xff] }
 0x1a5   : > { %v1371_v13 = vpop.f32.mrf.mxu1  ;;  %v8626_v46 = vld [vmem:[#allocation2 + $0x128] sm:$0xff]  ;;  %10259 = vst [vmem:[#allocation44_spill] sm:$0xff] %v8632_v53 }
 0x1a6   : > { %v8628_v31 = vld [vmem:[#allocation2 + $0x127] sm:$0xff]  ;;  %v8630_v2 = vld [vmem:[#allocation2 + $0x12f] sm:$0xff]  ;;  %1614 = vst.msk [vmem:[#allocation2 + $0x168] sm:$0xff] %vm648_vm0, %v1508_v56  ;;  %v1511_v54 = vmax.f32 %v1479_v57, 0.0  ;;  %v1478_v14 = vadd.f32 %v8365_v26, %v1439_v63  ;;  %v1442_v33 = vmul.f32 %v8362_v24, %v1377_v1  ;;  %v1372_v36 = vadd.f32 %v8357_v22, %v1371_v13  ;;  %6719 = vmatprep.mubr.msk.f32.mxu0 %vm648_vm0, %v8626_v46  ;;  %v8648_v56 = vpop.f32.mrf.mxu0 }
 0x1a7   : > { %6771 = vmatprep.mubr.msk.f32.mxu1 %vm648_vm0, %v8628_v31  ;;  %v6681_v45 = vpop.f32.mrf.mxu1  ;;  %6720 = vmatmul.mubr.msk.f32.gmra.mxu0 %vm648_vm0, %v8642_v38  ;;  %10260 = vst [vmem:[#allocation45_spill] sm:$0xff] %v8648_v56 }
 0x1a8   : > { %6772 = vmatmul.mubr.msk.f32.gmra.mxu1 %vm648_vm0, %v8630_v2  ;;  %1617 = vst.msk [vmem:[#allocation2 + $0x190] sm:$0xff] %vm648_vm0, %v1511_v54  ;;  %v1510_v13 = vmax.f32 %v1478_v14, 0.0  ;;  %v1481_v57 = vadd.f32 %v8365_v26, %v1442_v33  ;;  %v1441_v63 = vmul.f32 %v8362_v24, %v1372_v36  ;;  %v1387_v1 = vadd.f32 %v6681_v45, %v8357_v22  ;;  %v8660_v62 = vpop.f32.mrf.mxu0  ;;  %v8670_v36 = vld [vmem:[#allocation2 + $0x150] sm:$0xff] }
 0x1a9   : > { %v1381_v53 = vpop.f32.mrf.mxu1  ;;  %v8654_v37 = vld [vmem:[#allocation2 + $0x148] sm:$0xff]  ;;  %10261 = vst [vmem:[#allocation46_spill] sm:$0xff] %v8660_v62 }
 0x1aa   : > { %v8656_v28 = vld [vmem:[#allocation2 + $0x147] sm:$0xff]  ;;  %v8658_v3 = vld [vmem:[#allocation2 + $0x14f] sm:$0xff]  ;;  %1616 = vst.msk [vmem:[#allocation2 + $0x188] sm:$0xff] %vm648_vm0, %v1510_v13  ;;  %v1513_v56 = vmax.f32 %v1481_v57, 0.0  ;;  %v1480_v54 = vadd.f32 %v8365_v26, %v1441_v63  ;;  %v1444_v14 = vmul.f32 %v8362_v24, %v1387_v1  ;;  %v1382_v33 = vadd.f32 %v8357_v22, %v1381_v53  ;;  %6722 = vmatprep.mubr.msk.f32.mxu0 %vm648_vm0, %v8654_v37  ;;  %v8676_v13 = vpop.f32.mrf.mxu0 }
 0x1ab   : > { %6774 = vmatprep.mubr.msk.f32.mxu1 %vm648_vm0, %v8656_v28  ;;  %v6684_v45 = vpop.f32.mrf.mxu1  ;;  %6723 = vmatmul.mubr.msk.f32.gmra.mxu0 %vm648_vm0, %v8670_v36  ;;  %10262 = vst [vmem:[#allocation47_spill] sm:$0xff] %v8676_v13 }
 0x1ac   : > { %6775 = vmatmul.mubr.msk.f32.gmra.mxu1 %vm648_vm0, %v8658_v3  ;;  %1619 = vst.msk [vmem:[#allocation2 + $0x1b0] sm:$0xff] %vm648_vm0, %v1513_v56  ;;  %v1512_v53 = vmax.f32 %v1480_v54, 0.0  ;;  %v1483_v57 = vadd.f32 %v8365_v26, %v1444_v14  ;;  %v1443_v63 = vmul.f32 %v8362_v24, %v1382_v33  ;;  %v1397_v1 = vadd.f32 %v6684_v45, %v8357_v22  ;;  %v8688_v27 = vpop.f32.mrf.mxu0  ;;  %v8698_v33 = vld [vmem:[#allocation2 + $0x170] sm:$0xff] }
 0x1ad   : > { %v1391_v62 = vpop.f32.mrf.mxu1  ;;  %v8682_v51 = vld [vmem:[#allocation2 + $0x168] sm:$0xff]  ;;  %10263 = vst [vmem:[#allocation48_spill] sm:$0xff] %v8688_v27 }
 0x1ae   : > { %v8684_v43 = vld [vmem:[#allocation2 + $0x167] sm:$0xff]  ;;  %v8686_v34 = vld [vmem:[#allocation2 + $0x16f] sm:$0xff]  ;;  %1618 = vst.msk [vmem:[#allocation2 + $0x1a8] sm:$0xff] %vm648_vm0, %v1512_v53  ;;  %v1515_v13 = vmax.f32 %v1483_v57, 0.0  ;;  %v1482_v56 = vadd.f32 %v8365_v26, %v1443_v63  ;;  %v1446_v54 = vmul.f32 %v8362_v24, %v1397_v1  ;;  %v1392_v14 = vadd.f32 %v8357_v22, %v1391_v62  ;;  %6725 = vmatprep.mubr.msk.f32.mxu0 %vm648_vm0, %v8682_v51  ;;  %v8704_v53 = vpop.f32.mrf.mxu0 }
 0x1af   : > { %6777 = vmatprep.mubr.msk.f32.mxu1 %vm648_vm0, %v8684_v43  ;;  %6726 = vmatmul.mubr.msk.f32.gmra.mxu0 %vm648_vm0, %v8698_v33  ;;  %v6687_v45 = vpop.f32.mrf.mxu1  ;;  %10264 = vst [vmem:[#allocation49_spill] sm:$0xff] %v8704_v53 }
 0x1b0   : > { %6778 = vmatmul.mubr.msk.f32.gmra.mxu1 %vm648_vm0, %v8686_v34  ;;  %1621 = vst.msk [vmem:[#allocation2 + $0x1d0] sm:$0xff] %vm648_vm0, %v1515_v13  ;;  %v1514_v62 = vmax.f32 %v1482_v56, 0.0  ;;  %v1485_v57 = vadd.f32 %v8365_v26, %v1446_v54  ;;  %v1445_v63 = vmul.f32 %v8362_v24, %v1392_v14  ;;  %v1407_v1 = vadd.f32 %v6687_v45, %v8357_v22  ;;  %v8716_v55 = vpop.f32.mrf.mxu0  ;;  %v8724_v56 = vld [vmem:[#allocation2 + $0x190] sm:$0xff] }
 0x1b1   : > { %v8710_v27 = vld [vmem:[#allocation2 + $0x188] sm:$0xff]  ;;  %v1401_v61 = vpop.f32.mrf.mxu1  ;;  %10265 = vst [vmem:[#allocation50_spill] sm:$0xff] %v8716_v55 }
 0x1b2   : > { %v8712_v16 = vld [vmem:[#allocation2 + $0x187] sm:$0xff]  ;;  %v8714_v9 = vld [vmem:[#allocation2 + $0x18f] sm:$0xff]  ;;  %1620 = vst.msk [vmem:[#allocation2 + $0x1c8] sm:$0xff] %vm648_vm0, %v1514_v62  ;;  %v1517_v53 = vmax.f32 %v1485_v57, 0.0  ;;  %v1484_v13 = vadd.f32 %v8365_v26, %v1445_v63  ;;  %6728 = vmatprep.mubr.msk.f32.mxu0 %vm648_vm0, %v8710_v27  ;;  %v1448_v54 = vmul.f32 %v8362_v24, %v1407_v1  ;;  %v1402_v14 = vadd.f32 %v8357_v22, %v1401_v61  ;;  %v8732_v45 = vpop.f32.mrf.mxu0 }
 0x1b3   : > { %6780 = vmatprep.mubr.msk.f32.mxu1 %vm648_vm0, %v8712_v16  ;;  %6729 = vmatmul.mubr.msk.f32.gmra.mxu0 %vm648_vm0, %v8724_v56  ;;  %10266 = vst [vmem:[#allocation51_spill] sm:$0xff] %v8732_v45 }
 0x1b4   : > { %6781 = vmatmul.mubr.msk.f32.gmra.mxu1 %vm648_vm0, %v8714_v9  ;;  %1623 = vst.msk [vmem:[#allocation2 + $0x1f0] sm:$0xff] %vm648_vm0, %v1517_v53  ;;  %v1516_v62 = vmax.f32 %v1484_v13, 0.0  ;;  %v1487_v57 = vadd.f32 %v8365_v26, %v1448_v54  ;;  %v1447_v63 = vmul.f32 %v8362_v24, %v1402_v14  ;;  %v8743_v61 = vpop.f32.mrf.mxu0  ;;  %v8750_v53 = vld [vmem:[#allocation2 + $0x1b0] sm:$0xff] }
 0x1b5   : > { %v8737_v55 = vld [vmem:[#allocation2 + $0x1a8] sm:$0xff]  ;;  %10268 = vst [vmem:[#allocation53_spill] sm:$0xff] %v8743_v61  ;;  %10269 = vst [vmem:[#allocation54_spill] sm:$0xff] %v8750_v53 }
 0x1b6   : > { %10267 = vst [vmem:[#allocation52_spill] sm:$0xff] %v8737_v55  ;;  %v8739_v1 = vld [vmem:[#allocation2 + $0x1a7] sm:$0xff]  ;;  %v8741_v22 = vld [vmem:[#allocation2 + $0x1af] sm:$0xff]  ;;  %1622 = vst.msk [vmem:[#allocation2 + $0x1e8] sm:$0xff] %vm648_vm0, %v1516_v62  ;;  %6731 = vmatprep.mubr.msk.f32.mxu0 %vm648_vm0, %v8737_v55  ;;  %v1519_v13 = vmax.f32 %v1487_v57, 0.0  ;;  %v1486_v24 = vadd.f32 %v8365_v26, %v1447_v63  ;;  %v8757_v54 = vpop.f32.mrf.mxu0 }
 0x1b7   : > { %6783 = vmatprep.mubr.msk.f32.mxu1 %vm648_vm0, %v8739_v1  ;;  %6732 = vmatmul.mubr.msk.f32.gmra.mxu0 %vm648_vm0, %v8750_v53  ;;  %10270 = vst [vmem:[#allocation55_spill] sm:$0xff] %v8757_v54  ;;  %v8772_v26 = vld [vmem:[#allocation2 + $0x1d0] sm:$0xff]  ;;  %v6746_v53 = vpop.f32.mrf.mxu1 }
 0x1b8   : > { %6784 = vmatmul.mubr.msk.f32.gmra.mxu1 %vm648_vm0, %v8741_v22  ;;  %1625 = vst.msk [vmem:[#allocation2 + $0x210] sm:$0xff] %vm648_vm0, %v1519_v13  ;;  %v1518_v14 = vmax.f32 %v1486_v24, 0.0  ;;  %v8766_v57 = vpop.f32.mrf.mxu0  ;;  %10273 = vst [vmem:[#allocation58_spill] sm:$0xff] %v8772_v26  ;;  %v2337_v13 = vld [vmem:[#allocation2 + $0x9] sm:$0xff] }
 0x1b9   : > { %v8760_v62 = vld [vmem:[#allocation2 + $0x1c8] sm:$0xff]  ;;  %10272 = vst [vmem:[#allocation57_spill] sm:$0xff] %v8766_v57 }
 0x1ba   : > { %10271 = vst [vmem:[#allocation56_spill] sm:$0xff] %v8760_v62  ;;  %v8762_v61 = vld [vmem:[#allocation2 + $0x1c7] sm:$0xff]  ;;  %v8764_v45 = vld [vmem:[#allocation2 + $0x1cf] sm:$0xff]  ;;  %6734 = vmatprep.mubr.msk.f32.mxu0 %vm648_vm0, %v8760_v62  ;;  %1624 = vst.msk [vmem:[#allocation2 + $0x208] sm:$0xff] %vm648_vm0, %v1518_v14  ;;  %v8779_v63 = vpop.f32.mrf.mxu0 }
 0x1bb   : > { %6786 = vmatprep.mubr.msk.f32.mxu1 %vm648_vm0, %v8762_v61  ;;  %6735 = vmatmul.mubr.msk.f32.gmra.mxu0 %vm648_vm0, %v8772_v26  ;;  %10274 = vst [vmem:[#allocation59_spill] sm:$0xff] %v8779_v63  ;;  %v8793_v14 = vld [vmem:[#allocation2 + $0x1f0] sm:$0xff] }
 0x1bc   : > { %6787 = vmatmul.mubr.msk.f32.gmra.mxu1 %vm648_vm0, %v8764_v45  ;;  %v8787_v62 = vpop.f32.mrf.mxu0  ;;  %10277 = vst [vmem:[#allocation62_spill] sm:$0xff] %v8793_v14 }
 0x1bd   : > { %v8781_v24 = vld [vmem:[#allocation2 + $0x1e8] sm:$0xff]  ;;  %10276 = vst [vmem:[#allocation61_spill] sm:$0xff] %v8787_v62  ;;  %v2338_v62 = vld [vmem:[#allocation2 + $0x11] sm:$0xff] }
 0x1be   : > { %10275 = vst [vmem:[#allocation60_spill] sm:$0xff] %v8781_v24  ;;  %v8783_v57 = vld [vmem:[#allocation2 + $0x1e7] sm:$0xff]  ;;  %v8785_v54 = vld [vmem:[#allocation2 + $0x1ef] sm:$0xff]  ;;  %6737 = vmatprep.mubr.msk.f32.mxu0 %vm648_vm0, %v8781_v24  ;;  %v8799_v63 = vpop.f32.mrf.mxu0 }
 0x1bf   : > { %6789 = vmatprep.mubr.msk.f32.mxu1 %vm648_vm0, %v8783_v57  ;;  %6738 = vmatmul.mubr.msk.f32.gmra.mxu0 %vm648_vm0, %v8793_v14  ;;  %10278 = vst [vmem:[#allocation63_spill] sm:$0xff] %v8799_v63  ;;  %v3146_v24 = vld [vmem:[#allocation9 + $0x40] sm:$0xff]  ;;  %v8807_v14 = vld [vmem:[#allocation2 + $0x29] sm:$0xff] }
 0x1c0   : > { %6790 = vmatmul.mubr.msk.f32.gmra.mxu1 %vm648_vm0, %v8785_v54  ;;  %6796 = vmatprep.mubr.msk.f32.mxu0 %vm648_vm0, %v2337_v13  ;;  %v6694_v26 = vpop.f32.mrf.mxu0  ;;  %v9015_v13 = vld [vmem:[#allocation9 + $0x88] sm:$0xff]  ;;  %v4684_v63 = vld [vmem:[#allocation2 + $0x169] sm:$0xff] }
 0x1c1   : > { %6848 = vmatprep.mubr.msk.f32.mxu1 %vm648_vm0, %v8404_v7  ;;  %v8809_v55 = vadd.f32 %v6746_v53, %v6694_v26  ;;  %v8816_v7 = vld [vmem:[#allocation2 + $0x31] sm:$0xff]  ;;  %v8853_v53 = vld [vmem:[#allocation2 + $0x89] sm:$0xff] }
 0x1c2   : > { %v8981_v26 = vld [vmem:[#allocation2 + $0x1d1] sm:$0xff] }
 0x1c3   : > { %6797 = vmatmul.mubr.msk.f32.vlgmr.msra.gmra.mxu0 %vm648_vm0, %v2338_v62  ;;  %v3534_v62 = vld [vmem:[#allocation9 + $0x50] sm:$0xff] }
 0x1c4   : > { %6849 = vmatmul.mubr.msk.f32.vlgmr.msra.gmra.mxu1 %vm648_vm0, %v8406_v8  ;;  %6897 = vmatpush3.msra.mxu0 %v8351_v21  ;;  %v8819_v8 = vld [vmem:[#allocation9 + $0x68] sm:$0xff]  ;;  %v8825_v21 = vld [vmem:[#allocation2 + $0x49] sm:$0xff] }
 0x1c5   : > { %6799 = vmatprep.mubr.msk.f32.mxu0 %vm648_vm0, %v8807_v14  ;;  %6851 = vmatprep.mubr.msk.f32.mxu1 %vm648_vm0, %v8432_v23  ;;  %v8834_v23 = vld [vmem:[#allocation9 + $0x78] sm:$0xff] }
 0x1c6   : > { %6898 = vmatprep.subr.mxu0 %v3146_v24  ;;  %6949 = vmatpush3.msra.mxu1 %v8383_v50  ;;  %v8832_v50 = vld [vmem:[#allocation2 + $0x51] sm:$0xff] }
 0x1c7   : > { %6899 = vmatpush3.msra.mxu0 %v3146_v24  ;;  %6950 = vmatprep.subr.mxu1 %v3534_v62  ;;  %v3894_v24 = vld [vmem:[#allocation2 + $0x87] sm:$0xff] }
 0x1c8   : > { %6800 = vmatmul.mubr.msk.f32.gmra.mxu0 %vm648_vm0, %v8816_v7  ;;  %6852 = vmatmul.mubr.msk.f32.gmra.mxu1 %vm648_vm0, %v8434_v25  ;;  %v8840_v25 = vld [vmem:[#allocation2 + $0x69] sm:$0xff] }
 0x1c9   : > { %6802 = vmatprep.mubr.msk.f32.mxu0 %vm648_vm0, %v8825_v21  ;;  %6854 = vmatprep.mubr.msk.f32.mxu1 %vm648_vm0, %v8460_v41  ;;  %v8847_v41 = vld [vmem:[#allocation2 + $0x71] sm:$0xff] }
 0x1ca   : > { %7000 = vmatprep.subr.mxu0 %v8819_v8  ;;  %6951 = vmatpush3.msra.mxu1 %v3534_v62 }
 0x1cb   : > { %7052 = vmatprep.subr.mxu1 %v8834_v23 }
 0x1cc   : > { %6803 = vmatmul.mubr.msk.f32.gmra.mxu0 %vm648_vm0, %v8832_v50  ;;  %6855 = vmatmul.mubr.msk.f32.gmra.mxu1 %vm648_vm0, %v8462_v42  ;;  %v8859_v42 = vld [vmem:[#allocation2 + $0x91] sm:$0xff] }
 0x1cd   : > { %6805 = vmatprep.mubr.msk.f32.mxu0 %vm648_vm0, %v8840_v25  ;;  %6857 = vmatprep.mubr.msk.f32.mxu1 %vm648_vm0, %v8488_v59  ;;  %v8865_v59 = vld [vmem:[#allocation2 + $0xa9] sm:$0xff] }
 0x1d0   : > { %6806 = vmatmul.mubr.msk.f32.gmra.mxu0 %vm648_vm0, %v8847_v41  ;;  %6858 = vmatmul.mubr.msk.f32.gmra.mxu1 %vm648_vm0, %v8490_v60  ;;  %v8871_v60 = vld [vmem:[#allocation2 + $0xb1] sm:$0xff] }
 0x1d1   : > { %6808 = vmatprep.mubr.msk.f32.mxu0 %vm648_vm0, %v8853_v53  ;;  %6860 = vmatprep.mubr.msk.f32.mxu1 %vm648_vm0, %v8516_v18  ;;  %v8877_v18 = vld [vmem:[#allocation2 + $0xc9] sm:$0xff] }
 0x1d4   : > { %6809 = vmatmul.mubr.msk.f32.gmra.mxu0 %vm648_vm0, %v8859_v42  ;;  %6861 = vmatmul.mubr.msk.f32.gmra.mxu1 %vm648_vm0, %v8518_v19  ;;  %v8883_v19 = vld [vmem:[#allocation2 + $0xd1] sm:$0xff] }
 0x1d5   : > { %6811 = vmatprep.mubr.msk.f32.mxu0 %vm648_vm0, %v8865_v59  ;;  %6863 = vmatprep.mubr.msk.f32.mxu1 %vm648_vm0, %v8544_v49  ;;  %v8889_v49 = vld [vmem:[#allocation2 + $0xe9] sm:$0xff] }
 0x1d8   : > { %6812 = vmatmul.mubr.msk.f32.gmra.mxu0 %vm648_vm0, %v8871_v60  ;;  %6864 = vmatmul.mubr.msk.f32.gmra.mxu1 %vm648_vm0, %v8546_v52  ;;  %v8895_v52 = vld [vmem:[#allocation2 + $0xf1] sm:$0xff] }
 0x1d9   : > { %6814 = vmatprep.mubr.msk.f32.mxu0 %vm648_vm0, %v8877_v18  ;;  %6866 = vmatprep.mubr.msk.f32.mxu1 %vm648_vm0, %v8572_v29  ;;  %v8901_v29 = vld [vmem:[#allocation2 + $0x109] sm:$0xff] }
 0x1dc   : > { %6815 = vmatmul.mubr.msk.f32.gmra.mxu0 %vm648_vm0, %v8883_v19  ;;  %6867 = vmatmul.mubr.msk.f32.gmra.mxu1 %vm648_vm0, %v8574_v30  ;;  %v8907_v30 = vld [vmem:[#allocation2 + $0x111] sm:$0xff] }
 0x1dd   : > { %6817 = vmatprep.mubr.msk.f32.mxu0 %vm648_vm0, %v8889_v49  ;;  %6869 = vmatprep.mubr.msk.f32.mxu1 %vm648_vm0, %v8600_v4  ;;  %v8913_v4 = vld [vmem:[#allocation2 + $0x129] sm:$0xff] }
 0x1e0   : > { %6818 = vmatmul.mubr.msk.f32.gmra.mxu0 %vm648_vm0, %v8895_v52  ;;  %6870 = vmatmul.mubr.msk.f32.gmra.mxu1 %vm648_vm0, %v8602_v11  ;;  %v8919_v11 = vld [vmem:[#allocation2 + $0x131] sm:$0xff] }
 0x1e1   : > { %6820 = vmatprep.mubr.msk.f32.mxu0 %vm648_vm0, %v8901_v29  ;;  %6872 = vmatprep.mubr.msk.f32.mxu1 %vm648_vm0, %v8628_v31  ;;  %v8925_v31 = vld [vmem:[#allocation2 + $0x149] sm:$0xff] }
 0x1e4   : > { %6821 = vmatmul.mubr.msk.f32.gmra.mxu0 %vm648_vm0, %v8907_v30  ;;  %6873 = vmatmul.mubr.msk.f32.gmra.mxu1 %vm648_vm0, %v8630_v2  ;;  %v8931_v2 = vld [vmem:[#allocation2 + $0x151] sm:$0xff] }
 0x1e5   : > { %6823 = vmatprep.mubr.msk.f32.mxu0 %vm648_vm0, %v8913_v4  ;;  %6875 = vmatprep.mubr.msk.f32.mxu1 %vm648_vm0, %v8656_v28  ;;  %v8937_v28 = vld [vmem:[#allocation2 + $0x169] sm:$0xff] }
 0x1e8   : > { %6824 = vmatmul.mubr.msk.f32.gmra.mxu0 %vm648_vm0, %v8919_v11  ;;  %6876 = vmatmul.mubr.msk.f32.gmra.mxu1 %vm648_vm0, %v8658_v3  ;;  %v8943_v3 = vld [vmem:[#allocation2 + $0x171] sm:$0xff] }
 0x1e9   : > { %6826 = vmatprep.mubr.msk.f32.mxu0 %vm648_vm0, %v8925_v31  ;;  %6878 = vmatprep.mubr.msk.f32.mxu1 %vm648_vm0, %v8684_v43  ;;  %v8949_v43 = vld [vmem:[#allocation2 + $0x189] sm:$0xff] }
 0x1ec   : > { %6827 = vmatmul.mubr.msk.f32.gmra.mxu0 %vm648_vm0, %v8931_v2  ;;  %6879 = vmatmul.mubr.msk.f32.gmra.mxu1 %vm648_vm0, %v8686_v34  ;;  %v8955_v34 = vld [vmem:[#allocation2 + $0x191] sm:$0xff] }
 0x1ed   : > { %6829 = vmatprep.mubr.msk.f32.mxu0 %vm648_vm0, %v8937_v28  ;;  %6881 = vmatprep.mubr.msk.f32.mxu1 %vm648_vm0, %v8712_v16  ;;  %v8961_v16 = vld [vmem:[#allocation2 + $0x1a9] sm:$0xff] }
 0x1f0   : > { %6830 = vmatmul.mubr.msk.f32.gmra.mxu0 %vm648_vm0, %v8943_v3  ;;  %6882 = vmatmul.mubr.msk.f32.gmra.mxu1 %vm648_vm0, %v8714_v9  ;;  %v8967_v9 = vld [vmem:[#allocation2 + $0x1b1] sm:$0xff] }
 0x1f1   : > { %6832 = vmatprep.mubr.msk.f32.mxu0 %vm648_vm0, %v8949_v43  ;;  %6884 = vmatprep.mubr.msk.f32.mxu1 %vm648_vm0, %v8739_v1  ;;  %v8973_v1 = vld [vmem:[#allocation2 + $0x1c9] sm:$0xff] }
 0x1f4   : > { %6833 = vmatmul.mubr.msk.f32.gmra.mxu0 %vm648_vm0, %v8955_v34  ;;  %6885 = vmatmul.mubr.msk.f32.gmra.mxu1 %vm648_vm0, %v8741_v22  ;;  %v8979_v22 = vld [vmem:[#allocation2 + $0x207] sm:$0xff] }
 0x1f5   : > { %6835 = vmatprep.mubr.msk.f32.mxu0 %vm648_vm0, %v8961_v16  ;;  %6887 = vmatprep.mubr.msk.f32.mxu1 %vm648_vm0, %v8762_v61  ;;  %v8987_v61 = vld [vmem:[#allocation2 + $0x1e9] sm:$0xff] }
 0x1f8   : > { %6836 = vmatmul.mubr.msk.f32.gmra.mxu0 %vm648_vm0, %v8967_v9  ;;  %6888 = vmatmul.mubr.msk.f32.gmra.mxu1 %vm648_vm0, %v8764_v45  ;;  %v8993_v45 = vld [vmem:[#allocation2 + $0x20f] sm:$0xff] }
 0x1f9   : > { %6838 = vmatprep.mubr.msk.f32.mxu0 %vm648_vm0, %v8973_v1  ;;  %6890 = vmatprep.mubr.msk.f32.mxu1 %vm648_vm0, %v8783_v57  ;;  %v8995_v57 = vld [vmem:[#allocation2 + $0x1f1] sm:$0xff] }
 0x1fc   : > { %6839 = vmatmul.mubr.msk.f32.gmra.mxu0 %vm648_vm0, %v8981_v26  ;;  %6891 = vmatmul.mubr.msk.f32.gmra.mxu1 %vm648_vm0, %v8785_v54  ;;  %v3923_v54 = vld [vmem:[#allocation9 + $0x60] sm:$0xff] }
 0x1fd   : > { %6841 = vmatprep.mubr.msk.f32.mxu0 %vm648_vm0, %v8987_v61  ;;  %6893 = vmatprep.mubr.msk.f32.mxu1 %vm648_vm0, %v8979_v22 }
 0x200   : > { %6842 = vmatmul.mubr.msk.f32.gmra.mxu0 %vm648_vm0, %v8995_v57  ;;  %6894 = vmatmul.mubr.msk.f32.gmra.mxu1 %vm648_vm0, %v8993_v45 }
 0x201   : > { %6900 = vmatprep.mubr.msk.f32.mxu0 %vm648_vm0, %v8402_v6  ;;  %6952 = vmatprep.mubr.msk.f32.mxu1 %vm648_vm0, %v8807_v14  ;;  %v4311_v6 = vld [vmem:[#allocation9 + $0x70] sm:$0xff] }
 0x202   : > { %v4282_v14 = vld [vmem:[#allocation2 + $0x88] sm:$0xff] }
 0x204   : > { %6901 = vmatmul.mubr.msk.f32.vlgmr.msra.gmra.mxu0 %vm648_vm0, %v8418_v12  ;;  %6953 = vmatmul.mubr.msk.f32.vlgmr.msra.gmra.mxu1 %vm648_vm0, %v8816_v7  ;;  %v10279_v12 = vld [vmem:[#allocation52_spill] sm:$0xff] }
 0x205   : > { %7001 = vmatpush3.msra.mxu0 %v8819_v8  ;;  %6903 = vmatprep.mubr.msk.f32.mxu0 %vm648_vm0, %v8430_v20  ;;  %v10280_v20 = vld [vmem:[#allocation54_spill] sm:$0xff] }
 0x206   : > { %6955 = vmatprep.mubr.msk.f32.mxu1 %vm648_vm0, %v8825_v21  ;;  %7002 = vmatprep.subr.mxu0 %v3923_v54 }
 0x207   : > { %7003 = vmatpush3.msra.mxu0 %v3923_v54  ;;  %7053 = vmatpush3.msra.mxu1 %v8834_v23  ;;  %v4283_v23 = vld [vmem:[#allocation2 + $0x90] sm:$0xff] }
 0x208   : > { %6904 = vmatmul.mubr.msk.f32.gmra.mxu0 %vm648_vm0, %v8446_v32  ;;  %6956 = vmatmul.mubr.msk.f32.gmra.mxu1 %vm648_vm0, %v8832_v50  ;;  %v10282_v32 = vld [vmem:[#allocation58_spill] sm:$0xff]  ;;  %v3895_v50 = vld [vmem:[#allocation2 + $0x8f] sm:$0xff] }
 0x209   : > { %6906 = vmatprep.mubr.msk.f32.mxu0 %vm648_vm0, %v8458_v40  ;;  %6958 = vmatprep.mubr.msk.f32.mxu1 %vm648_vm0, %v8840_v25  ;;  %v10283_v40 = vld [vmem:[#allocation60_spill] sm:$0xff] }
 0x20a   : > { %7054 = vmatprep.subr.mxu1 %v4311_v6  ;;  %7104 = vmatprep.subr.mxu0 %v9015_v13 }
 0x20b   : > { %7055 = vmatpush3.msra.mxu1 %v4311_v6 }
 0x20c   : > { %6907 = vmatmul.mubr.msk.f32.gmra.mxu0 %vm648_vm0, %v8474_v48  ;;  %6959 = vmatmul.mubr.msk.f32.gmra.mxu1 %vm648_vm0, %v8847_v41  ;;  %v10284_v48 = vld [vmem:[#allocation62_spill] sm:$0xff] }
 0x20d   : > { %6909 = vmatprep.mubr.msk.f32.mxu0 %vm648_vm0, %v8486_v58  ;;  %6961 = vmatprep.mubr.msk.f32.mxu1 %vm648_vm0, %v8853_v53  ;;  %v9128_v58 = vld [vmem:[#allocation2 + $0x209] sm:$0xff] }
 0x20e   : > { %v3896_v53 = vld [vmem:[#allocation2 + $0xa7] sm:$0xff] }
 0x210   : > { %6910 = vmatmul.mubr.msk.f32.gmra.mxu0 %vm648_vm0, %v8502_v5  ;;  %6962 = vmatmul.mubr.msk.f32.gmra.mxu1 %vm648_vm0, %v8859_v42  ;;  %v9134_v5 = vld [vmem:[#allocation2 + $0x210] sm:$0xff]  ;;  %v4284_v42 = vld [vmem:[#allocation2 + $0xa8] sm:$0xff] }
 0x211   : > { %6912 = vmatprep.mubr.msk.f32.mxu0 %vm648_vm0, %v8514_v15  ;;  %6964 = vmatprep.mubr.msk.f32.mxu1 %vm648_vm0, %v8865_v59  ;;  %v9136_v15 = vld [vmem:[#allocation2 + $0x211] sm:$0xff] }
 0x214   : > { %6913 = vmatmul.mubr.msk.f32.gmra.mxu0 %vm648_vm0, %v8530_v35  ;;  %6965 = vmatmul.mubr.msk.f32.gmra.mxu1 %vm648_vm0, %v8871_v60  ;;  %v3890_v35 = vld [vmem:[#allocation2 + $0x47] sm:$0xff] }
 0x215   : > { %6915 = vmatprep.mubr.msk.f32.mxu0 %vm648_vm0, %v8542_v47  ;;  %6967 = vmatprep.mubr.msk.f32.mxu1 %vm648_vm0, %v8877_v18  ;;  %v3891_v47 = vld [vmem:[#allocation2 + $0x4f] sm:$0xff] }
 0x218   : > { %6916 = vmatmul.mubr.msk.f32.gmra.mxu0 %vm648_vm0, %v8558_v0  ;;  %6968 = vmatmul.mubr.msk.f32.gmra.mxu1 %vm648_vm0, %v8883_v19  ;;  %v4279_v0 = vld [vmem:[#allocation2 + $0x50] sm:$0xff] }
 0x219   : > { %6918 = vmatprep.mubr.msk.f32.mxu0 %vm648_vm0, %v8570_v17  ;;  %6970 = vmatprep.mubr.msk.f32.mxu1 %vm648_vm0, %v8889_v49  ;;  %v4699_v17 = vld [vmem:[#allocation9 + $0x80] sm:$0xff] }
 0x21a   : > { %v3897_v49 = vld [vmem:[#allocation2 + $0xaf] sm:$0xff] }
 0x21c   : > { %6919 = vmatmul.mubr.msk.f32.gmra.mxu0 %vm648_vm0, %v8586_v44  ;;  %6971 = vmatmul.mubr.msk.f32.gmra.mxu1 %vm648_vm0, %v8895_v52  ;;  %v3892_v44 = vld [vmem:[#allocation2 + $0x67] sm:$0xff]  ;;  %v4285_v52 = vld [vmem:[#allocation2 + $0xb0] sm:$0xff] }
 0x21d   : > { %6921 = vmatprep.mubr.msk.f32.mxu0 %vm648_vm0, %v8598_v10  ;;  %6973 = vmatprep.mubr.msk.f32.mxu1 %vm648_vm0, %v8901_v29  ;;  %v9148_v10 = vpop.f32.mrf.mxu0 }
 0x220   : > { %6922 = vmatmul.mubr.msk.f32.gmra.mxu0 %vm648_vm0, %v8614_v39  ;;  %6974 = vmatmul.mubr.msk.f32.gmra.mxu1 %vm648_vm0, %v8907_v30  ;;  %v9150_v39 = vpop.f32.mrf.mxu1 }
 0x221   : > { %6924 = vmatprep.mubr.msk.f32.mxu0 %vm648_vm0, %v8626_v46  ;;  %6976 = vmatprep.mubr.msk.f32.mxu1 %vm648_vm0, %v8913_v4  ;;  %v4280_v46 = vld [vmem:[#allocation2 + $0x68] sm:$0xff] }
 0x222   : > { %v3898_v4 = vld [vmem:[#allocation2 + $0xc7] sm:$0xff] }
 0x224   : > { %6925 = vmatmul.mubr.msk.f32.gmra.mxu0 %vm648_vm0, %v8642_v38  ;;  %6977 = vmatmul.mubr.msk.f32.gmra.mxu1 %vm648_vm0, %v8919_v11  ;;  %v3893_v38 = vld [vmem:[#allocation2 + $0x6f] sm:$0xff] }
 0x225   : > { %6927 = vmatprep.mubr.msk.f32.mxu0 %vm648_vm0, %v8654_v37  ;;  %6979 = vmatprep.mubr.msk.f32.mxu1 %vm648_vm0, %v8925_v31  ;;  %v4278_v37 = vld [vmem:[#allocation2 + $0x48] sm:$0xff] }
 0x226   : > { %v4286_v11 = vld [vmem:[#allocation2 + $0xc8] sm:$0xff] }
 0x228   : > { %6928 = vmatmul.mubr.msk.f32.gmra.mxu0 %vm648_vm0, %v8670_v36  ;;  %6980 = vmatmul.mubr.msk.f32.gmra.mxu1 %vm648_vm0, %v8931_v2  ;;  %v4281_v36 = vld [vmem:[#allocation2 + $0x70] sm:$0xff] }
 0x229   : > { %6930 = vmatprep.mubr.msk.f32.mxu0 %vm648_vm0, %v8682_v51  ;;  %6982 = vmatprep.mubr.msk.f32.mxu1 %vm648_vm0, %v8937_v28  ;;  %v9126_v51 = vld [vmem:[#allocation2 + $0x208] sm:$0xff] }
 0x22c   : > { %6931 = vmatmul.mubr.msk.f32.gmra.mxu0 %vm648_vm0, %v8698_v33  ;;  %6983 = vmatmul.mubr.msk.f32.gmra.mxu1 %vm648_vm0, %v8943_v3 }
 0x22d   : > { %6933 = vmatprep.mubr.msk.f32.mxu0 %vm648_vm0, %v8710_v27  ;;  %6985 = vmatprep.mubr.msk.f32.mxu1 %vm648_vm0, %v8949_v43  ;;  %v10281_v27 = vld [vmem:[#allocation56_spill] sm:$0xff] }
 0x22e   : > { %v3899_v43 = vld [vmem:[#allocation2 + $0xcf] sm:$0xff] }
 0x230   : > { %6934 = vmatmul.mubr.msk.f32.gmra.mxu0 %vm648_vm0, %v8724_v56  ;;  %6986 = vmatmul.mubr.msk.f32.gmra.mxu1 %vm648_vm0, %v8955_v34  ;;  %v4287_v34 = vld [vmem:[#allocation2 + $0xd0] sm:$0xff] }
 0x231   : > { %6936 = vmatprep.mubr.msk.f32.mxu0 %vm648_vm0, %v10279_v12  ;;  %6988 = vmatprep.mubr.msk.f32.mxu1 %vm648_vm0, %v8961_v16  ;;  %v4289_v12 = vld [vmem:[#allocation2 + $0xf0] sm:$0xff] }
 0x234   : > { %6937 = vmatmul.mubr.msk.f32.gmra.mxu0 %vm648_vm0, %v10280_v20  ;;  %6989 = vmatmul.mubr.msk.f32.gmra.mxu1 %vm648_vm0, %v8967_v9 }
 0x235   : > { %6939 = vmatprep.mubr.msk.f32.mxu0 %vm648_vm0, %v10281_v27  ;;  %6991 = vmatprep.mubr.msk.f32.mxu1 %vm648_vm0, %v8973_v1  ;;  %v3900_v1 = vld [vmem:[#allocation2 + $0xe7] sm:$0xff] }
 0x238   : > { %6940 = vmatmul.mubr.msk.f32.gmra.mxu0 %vm648_vm0, %v10282_v32  ;;  %6992 = vmatmul.mubr.msk.f32.gmra.mxu1 %vm648_vm0, %v8981_v26  ;;  %v4288_v26 = vld [vmem:[#allocation2 + $0xe8] sm:$0xff] }
 0x239   : > { %6942 = vmatprep.mubr.msk.f32.mxu0 %vm648_vm0, %v10283_v40  ;;  %6994 = vmatprep.mubr.msk.f32.mxu1 %vm648_vm0, %v8987_v61  ;;  %v3902_v32 = vld [vmem:[#allocation2 + $0x107] sm:$0xff] }
 0x23a   : > { %v4290_v40 = vld [vmem:[#allocation2 + $0x108] sm:$0xff] }
 0x23c   : > { %6943 = vmatmul.mubr.msk.f32.gmra.mxu0 %vm648_vm0, %v10284_v48  ;;  %6995 = vmatmul.mubr.msk.f32.gmra.mxu1 %vm648_vm0, %v8995_v57 }
 0x23d   : > { %6945 = vmatprep.mubr.msk.f32.mxu0 %vm648_vm0, %v9126_v51  ;;  %6997 = vmatprep.mubr.msk.f32.mxu1 %vm648_vm0, %v9128_v58 }
 0x240   : > { %6946 = vmatmul.mubr.msk.f32.gmra.mxu0 %vm648_vm0, %v9134_v5  ;;  %6998 = vmatmul.mubr.msk.f32.gmra.mxu1 %vm648_vm0, %v9136_v15 }
 0x241   : > { %7004 = vmatprep.mubr.msk.f32.mxu0 %vm648_vm0, %v3890_v35  ;;  %7056 = vmatprep.mubr.msk.f32.mxu1 %vm648_vm0, %v4278_v37 }
 0x244   : > { %7005 = vmatmul.mubr.msk.f32.vlgmr.msra.gmra.mxu0 %vm648_vm0, %v3891_v47  ;;  %7057 = vmatmul.mubr.msk.f32.vlgmr.msra.gmra.mxu1 %vm648_vm0, %v4279_v0  ;;  %v3903_v0 = vld [vmem:[#allocation2 + $0x10f] sm:$0xff] }
 0x245   : > { %7105 = vmatpush3.msra.mxu0 %v9015_v13  ;;  %7007 = vmatprep.mubr.msk.f32.mxu0 %vm648_vm0, %v3892_v44  ;;  %v3901_v13 = vld [vmem:[#allocation2 + $0xef] sm:$0xff] }
 0x246   : > { %7059 = vmatprep.mubr.msk.f32.mxu1 %vm648_vm0, %v4280_v46  ;;  %7106 = vmatprep.subr.mxu0 %v4699_v17 }
 0x247   : > { %7107 = vmatpush3.msra.mxu0 %v4699_v17  ;;  %v6697_v33 = vpop.f32.mrf.mxu0  ;;  %v4291_v17 = vld [vmem:[#allocation2 + $0x110] sm:$0xff] }
 0x248   : > { %v6749_v56 = vpop.f32.mrf.mxu1  ;;  %7008 = vmatmul.mubr.msk.f32.gmra.mxu0 %vm648_vm0, %v3893_v38  ;;  %7060 = vmatmul.mubr.msk.f32.gmra.mxu1 %vm648_vm0, %v4281_v36  ;;  %v3904_v38 = vld [vmem:[#allocation2 + $0x127] sm:$0xff] }
 0x249   : > { %v9155_v7 = vadd.f32 %v6749_v56, %v6697_v33  ;;  %7010 = vmatprep.mubr.msk.f32.mxu0 %vm648_vm0, %v3894_v24  ;;  %7062 = vmatprep.mubr.msk.f32.mxu1 %vm648_vm0, %v4282_v14  ;;  %v1867_v62 = vpop.f32.mrf.mxu0  ;;  %v4292_v36 = vld [vmem:[#allocation2 + $0x128] sm:$0xff] }
 0x24a   : > { %v2188_v8 = vpop.f32.mrf.mxu1 }
 0x24b   : > { %v9159_v21 = vadd.f32 %v2188_v8, %v1867_v62  ;;  %v6700_v25 = vpop.f32.mrf.mxu0  ;;  %v3905_v62 = vld [vmem:[#allocation2 + $0x12f] sm:$0xff] }
 0x24c   : > { %v6752_v41 = vpop.f32.mrf.mxu1  ;;  %7011 = vmatmul.mubr.msk.f32.gmra.mxu0 %vm648_vm0, %v3895_v50  ;;  %7063 = vmatmul.mubr.msk.f32.gmra.mxu1 %vm648_vm0, %v4283_v23  ;;  %v4293_v8 = vld [vmem:[#allocation2 + $0x130] sm:$0xff] }
 0x24d   : > { %v9163_v59 = vadd.f32 %v6752_v41, %v6700_v25  ;;  %7013 = vmatprep.mubr.msk.f32.mxu0 %vm648_vm0, %v3896_v53  ;;  %7065 = vmatprep.mubr.msk.f32.mxu1 %vm648_vm0, %v4284_v42  ;;  %v1877_v60 = vpop.f32.mrf.mxu0  ;;  %v3906_v25 = vld [vmem:[#allocation2 + $0x147] sm:$0xff] }
 0x24e   : > { %v2198_v18 = vpop.f32.mrf.mxu1  ;;  %v4294_v41 = vld [vmem:[#allocation2 + $0x148] sm:$0xff] }
 0x24f   : > { %v9167_v19 = vadd.f32 %v2198_v18, %v1877_v60  ;;  %v6703_v29 = vpop.f32.mrf.mxu0 }
 0x250   : > { %v6755_v30 = vpop.f32.mrf.mxu1  ;;  %7014 = vmatmul.mubr.msk.f32.gmra.mxu0 %vm648_vm0, %v3897_v49  ;;  %7066 = vmatmul.mubr.msk.f32.gmra.mxu1 %vm648_vm0, %v4285_v52  ;;  %v3907_v49 = vld [vmem:[#allocation2 + $0x14f] sm:$0xff] }
 0x251   : > { %v9171_v31 = vadd.f32 %v6755_v30, %v6703_v29  ;;  %7016 = vmatprep.mubr.msk.f32.mxu0 %vm648_vm0, %v3898_v4  ;;  %7068 = vmatprep.mubr.msk.f32.mxu1 %vm648_vm0, %v4286_v11  ;;  %v1887_v2 = vpop.f32.mrf.mxu0  ;;  %v4295_v52 = vld [vmem:[#allocation2 + $0x150] sm:$0xff]  ;;  %v3908_v4 = vld [vmem:[#allocation2 + $0x167] sm:$0xff] }
 0x252   : > { %v2208_v28 = vpop.f32.mrf.mxu1  ;;  %v4296_v11 = vld [vmem:[#allocation2 + $0x168] sm:$0xff] }
 0x253   : > { %v9175_v3 = vadd.f32 %v2208_v28, %v1887_v2  ;;  %v6706_v16 = vpop.f32.mrf.mxu0 }
 0x254   : > { %v6758_v9 = vpop.f32.mrf.mxu1  ;;  %7017 = vmatmul.mubr.msk.f32.gmra.mxu0 %vm648_vm0, %v3899_v43  ;;  %7069 = vmatmul.mubr.msk.f32.gmra.mxu1 %vm648_vm0, %v4287_v34  ;;  %v3909_v34 = vld [vmem:[#allocation2 + $0x16f] sm:$0xff] }
 0x255   : > { %v9179_v61 = vadd.f32 %v6758_v9, %v6706_v16  ;;  %7019 = vmatprep.mubr.msk.f32.mxu0 %vm648_vm0, %v3900_v1  ;;  %7071 = vmatprep.mubr.msk.f32.mxu1 %vm648_vm0, %v4288_v26  ;;  %v1897_v57 = vpop.f32.mrf.mxu0  ;;  %v4297_v16 = vld [vmem:[#allocation2 + $0x170] sm:$0xff]  ;;  %v3910_v26 = vld [vmem:[#allocation2 + $0x187] sm:$0xff] }
 0x256   : > { %v2218_v54 = vpop.f32.mrf.mxu1 }
 0x257   : > { %v9183_v6 = vadd.f32 %v2218_v54, %v1897_v57  ;;  %v6709_v20 = vpop.f32.mrf.mxu0  ;;  %v4298_v57 = vld [vmem:[#allocation2 + $0x188] sm:$0xff] }
 0x258   : > { %v6761_v27 = vpop.f32.mrf.mxu1  ;;  %7020 = vmatmul.mubr.msk.f32.gmra.mxu0 %vm648_vm0, %v3901_v13  ;;  %7072 = vmatmul.mubr.msk.f32.gmra.mxu1 %vm648_vm0, %v4289_v12 }
 0x259   : > { %v9187_v48 = vadd.f32 %v6761_v27, %v6709_v20  ;;  %7022 = vmatprep.mubr.msk.f32.mxu0 %vm648_vm0, %v3902_v32  ;;  %7074 = vmatprep.mubr.msk.f32.mxu1 %vm648_vm0, %v4290_v40  ;;  %v1907_v35 = vpop.f32.mrf.mxu0  ;;  %v3911_v20 = vld [vmem:[#allocation2 + $0x18f] sm:$0xff] }
 0x25a   : > { %v2228_v37 = vpop.f32.mrf.mxu1  ;;  %v4299_v27 = vld [vmem:[#allocation2 + $0x190] sm:$0xff] }
 0x25b   : > { %v9191_v47 = vadd.f32 %v2228_v37, %v1907_v35  ;;  %v6712_v44 = vpop.f32.mrf.mxu0  ;;  %v3912_v35 = vld [vmem:[#allocation2 + $0x1a7] sm:$0xff] }
 0x25c   : > { %v6764_v46 = vpop.f32.mrf.mxu1  ;;  %7023 = vmatmul.mubr.msk.f32.gmra.mxu0 %vm648_vm0, %v3903_v0  ;;  %7075 = vmatmul.mubr.msk.f32.gmra.mxu1 %vm648_vm0, %v4291_v17  ;;  %v4300_v37 = vld [vmem:[#allocation2 + $0x1a8] sm:$0xff] }
 0x25d   : > { %v9195_v33 = vadd.f32 %v6764_v46, %v6712_v44  ;;  %7025 = vmatprep.mubr.msk.f32.mxu0 %vm648_vm0, %v3904_v38  ;;  %7077 = vmatprep.mubr.msk.f32.mxu1 %vm648_vm0, %v4292_v36  ;;  %v1917_v56 = vpop.f32.mrf.mxu0  ;;  %v3913_v46 = vld [vmem:[#allocation2 + $0x1af] sm:$0xff] }
 0x25e   : > { %v2238_v24 = vpop.f32.mrf.mxu1  ;;  %v4301_v38 = vld [vmem:[#allocation2 + $0x1b0] sm:$0xff] }
 0x25f   : > { %v9199_v14 = vadd.f32 %v2238_v24, %v1917_v56  ;;  %v6715_v50 = vpop.f32.mrf.mxu0  ;;  %v3914_v24 = vld [vmem:[#allocation2 + $0x1c7] sm:$0xff] }
 0x260   : > { %v6767_v23 = vpop.f32.mrf.mxu1  ;;  %7026 = vmatmul.mubr.msk.f32.gmra.mxu0 %vm648_vm0, %v3905_v62  ;;  %7078 = vmatmul.mubr.msk.f32.gmra.mxu1 %vm648_vm0, %v4293_v8  ;;  %v4302_v62 = vld [vmem:[#allocation2 + $0x1c8] sm:$0xff] }
 0x261   : > { %v9203_v53 = vadd.f32 %v6767_v23, %v6715_v50  ;;  %7028 = vmatprep.mubr.msk.f32.mxu0 %vm648_vm0, %v3906_v25  ;;  %7080 = vmatprep.mubr.msk.f32.mxu1 %vm648_vm0, %v4294_v41  ;;  %v1927_v42 = vpop.f32.mrf.mxu0  ;;  %v3915_v25 = vld [vmem:[#allocation2 + $0x1cf] sm:$0xff] }
 0x262   : > { %v2248_v60 = vpop.f32.mrf.mxu1  ;;  %v4303_v41 = vld [vmem:[#allocation2 + $0x1d0] sm:$0xff] }
 0x263   : > { %v9207_v18 = vadd.f32 %v2248_v60, %v1927_v42  ;;  %v6718_v29 = vpop.f32.mrf.mxu0 }
 0x264   : > { %v6770_v30 = vpop.f32.mrf.mxu1  ;;  %7029 = vmatmul.mubr.msk.f32.gmra.mxu0 %vm648_vm0, %v3907_v49  ;;  %7081 = vmatmul.mubr.msk.f32.gmra.mxu1 %vm648_vm0, %v4295_v52  ;;  %v3916_v49 = vld [vmem:[#allocation2 + $0x1e7] sm:$0xff] }
 0x265   : > { %v9211_v2 = vadd.f32 %v6770_v30, %v6718_v29  ;;  %7031 = vmatprep.mubr.msk.f32.mxu0 %vm648_vm0, %v3908_v4  ;;  %7083 = vmatprep.mubr.msk.f32.mxu1 %vm648_vm0, %v4296_v11  ;;  %v9215_v28 = vpop.f32.mrf.mxu0  ;;  %v4304_v52 = vld [vmem:[#allocation2 + $0x1e8] sm:$0xff] }
 0x266   : > { %v9217_v43 = vpop.f32.mrf.mxu1  ;;  %v3917_v11 = vld [vmem:[#allocation2 + $0x1ef] sm:$0xff] }
 0x267   : > { %v6721_v9 = vpop.f32.mrf.mxu0 }
 0x268   : > { %v6773_v1 = vpop.f32.mrf.mxu1  ;;  %7032 = vmatmul.mubr.msk.f32.gmra.mxu0 %vm648_vm0, %v3909_v34  ;;  %7084 = vmatmul.mubr.msk.f32.gmra.mxu1 %vm648_vm0, %v4297_v16  ;;  %v4305_v34 = vld [vmem:[#allocation2 + $0x1f0] sm:$0xff] }
 0x269   : > { %v9221_v54 = vadd.f32 %v6773_v1, %v6721_v9  ;;  %7034 = vmatprep.mubr.msk.f32.mxu0 %vm648_vm0, %v3910_v26  ;;  %7086 = vmatprep.mubr.msk.f32.mxu1 %vm648_vm0, %v4298_v57  ;;  %v9225_v13 = vpop.f32.mrf.mxu0 }
 0x26a   : > { %v9227_v12 = vpop.f32.mrf.mxu1 }
 0x26b   : > { %v6724_v32 = vpop.f32.mrf.mxu0 }
 0x26c   : > { %v6776_v40 = vpop.f32.mrf.mxu1  ;;  %7035 = vmatmul.mubr.msk.f32.gmra.mxu0 %vm648_vm0, %v3911_v20  ;;  %7087 = vmatmul.mubr.msk.f32.gmra.mxu1 %vm648_vm0, %v4299_v27  ;;  %v3920_v20 = vld [vmem:[#allocation2 + $0x227] sm:$0xff] }
 0x26d   : > { %v9231_v0 = vadd.f32 %v6776_v40, %v6724_v32  ;;  %7037 = vmatprep.mubr.msk.f32.mxu0 %vm648_vm0, %v3912_v35  ;;  %7089 = vmatprep.mubr.msk.f32.mxu1 %vm648_vm0, %v4300_v37  ;;  %v9235_v17 = vpop.f32.mrf.mxu0  ;;  %v4308_v27 = vld [vmem:[#allocation2 + $0x228] sm:$0xff] }
 0x26e   : > { %v9237_v44 = vpop.f32.mrf.mxu1 }
 0x26f   : > { %v6727_v36 = vpop.f32.mrf.mxu0 }
 0x270   : > { %v6779_v56 = vpop.f32.mrf.mxu1  ;;  %7038 = vmatmul.mubr.msk.f32.gmra.mxu0 %vm648_vm0, %v3913_v46  ;;  %7090 = vmatmul.mubr.msk.f32.gmra.mxu1 %vm648_vm0, %v4301_v38 }
 0x271   : > { %v9241_v8 = vadd.f32 %v6779_v56, %v6727_v36  ;;  %7040 = vmatprep.mubr.msk.f32.mxu0 %vm648_vm0, %v3914_v24  ;;  %7092 = vmatprep.mubr.msk.f32.mxu1 %vm648_vm0, %v4302_v62  ;;  %v9245_v50 = vpop.f32.mrf.mxu0  ;;  %v4667_v62 = vld [vmem:[#allocation2 + $0x51] sm:$0xff] }
 0x272   : > { %v9247_v23 = vpop.f32.mrf.mxu1 }
 0x273   : > { %v6730_v42 = vpop.f32.mrf.mxu0 }
 0x274   : > { %v6782_v60 = vpop.f32.mrf.mxu1  ;;  %7041 = vmatmul.mubr.msk.f32.gmra.mxu0 %vm648_vm0, %v3915_v25  ;;  %7093 = vmatmul.mubr.msk.f32.gmra.mxu1 %vm648_vm0, %v4303_v41 }
 0x275   : > { %v9251_v29 = vadd.f32 %v6782_v60, %v6730_v42  ;;  %7043 = vmatprep.mubr.msk.f32.mxu0 %vm648_vm0, %v3916_v49  ;;  %7095 = vmatprep.mubr.msk.f32.mxu1 %vm648_vm0, %v4304_v52  ;;  %v9255_v30 = vpop.f32.mrf.mxu0  ;;  %v4668_v42 = vld [vmem:[#allocation2 + $0x69] sm:$0xff] }
 0x276   : > { %v9257_v4 = vpop.f32.mrf.mxu1 }
 0x277   : > { %v6733_v16 = vpop.f32.mrf.mxu0 }
 0x278   : > { %v6785_v9 = vpop.f32.mrf.mxu1  ;;  %7044 = vmatmul.mubr.msk.f32.gmra.mxu0 %vm648_vm0, %v3917_v11  ;;  %7096 = vmatmul.mubr.msk.f32.gmra.mxu1 %vm648_vm0, %v4305_v34  ;;  %v4669_v34 = vld [vmem:[#allocation2 + $0x71] sm:$0xff] }
 0x279   : > { %v9261_v1 = vadd.f32 %v6785_v9, %v6733_v16  ;;  %7046 = vmatprep.mubr.msk.f32.mxu0 %vm648_vm0, %v8979_v22  ;;  %7098 = vmatprep.mubr.msk.f32.mxu1 %vm648_vm0, %v9126_v51  ;;  %v9267_v26 = vpop.f32.mrf.mxu0  ;;  %v3921_v22 = vld [vmem:[#allocation2 + $0x22f] sm:$0xff] }
 0x27a   : > { %v9269_v57 = vpop.f32.mrf.mxu1  ;;  %v4309_v51 = vld [vmem:[#allocation2 + $0x230] sm:$0xff] }
 0x27b   : > { %v6736_v32 = vpop.f32.mrf.mxu0 }
 0x27c   : > { %v6788_v40 = vpop.f32.mrf.mxu1  ;;  %7047 = vmatmul.mubr.msk.f32.gmra.mxu0 %vm648_vm0, %v8993_v45  ;;  %7099 = vmatmul.mubr.msk.f32.gmra.mxu1 %vm648_vm0, %v9134_v5  ;;  %v4666_v45 = vld [vmem:[#allocation2 + $0x49] sm:$0xff] }
 0x27d   : > { %v9275_v35 = vadd.f32 %v6788_v40, %v6736_v32  ;;  %7049 = vmatprep.mubr.msk.f32.mxu0 %vm648_vm0, %v3920_v20  ;;  %7101 = vmatprep.mubr.msk.f32.mxu1 %vm648_vm0, %v4308_v27  ;;  %v9279_v37 = vpop.f32.mrf.mxu0  ;;  %v4670_v20 = vld [vmem:[#allocation2 + $0x89] sm:$0xff] }
 0x27e   : > { %v9281_v46 = vpop.f32.mrf.mxu1 }
 0x27f   : > { %v6739_v38 = vpop.f32.mrf.mxu0 }
 0x280   : > { %v6791_v36 = vpop.f32.mrf.mxu1  ;;  %7050 = vmatmul.mubr.msk.f32.gmra.mxu0 %vm648_vm0, %v3921_v22  ;;  %7102 = vmatmul.mubr.msk.f32.gmra.mxu1 %vm648_vm0, %v4309_v51  ;;  %v4671_v51 = vld [vmem:[#allocation2 + $0x91] sm:$0xff] }
 0x281   : > { %v9285_v5 = vadd.f32 %v6791_v36, %v6739_v38  ;;  %7108 = vmatprep.mubr.msk.f32.mxu0 %vm648_vm0, %v4666_v45  ;;  %v9288_v56 = vpop.f32.mrf.mxu0  ;;  %v4672_v45 = vld [vmem:[#allocation2 + $0xa9] sm:$0xff] }
 0x282   : > { %v9290_v24 = vpop.f32.mrf.mxu1 }
 0x283   : > { %v6798_v25 = vpop.f32.mrf.mxu0 }
 0x284   : > { %v6850_v41 = vpop.f32.mrf.mxu1  ;;  %7109 = vmatmul.mubr.msk.f32.vlgmr.msra.gmra.mxu0 %vm648_vm0, %v4667_v62  ;;  %v2694_v60 = vadd.f32 %v6798_v25, %v8809_v55 }
 0x285   : > { %7111 = vmatprep.mubr.msk.f32.mxu0 %vm648_vm0, %v4668_v42  ;;  %v9295_v49 = vpop.f32.mrf.mxu0 }
 0x286   : > { %v9297_v52 = vpop.f32.mrf.mxu1  ;;  %v9299_v11 = vadd.f32 %v6850_v41, %v2694_v60 }
 0x288   : > { %v6801_v16 = vpop.f32.mrf.mxu0  ;;  %v6853_v9 = vpop.f32.mrf.mxu1  ;;  %7112 = vmatmul.mubr.msk.f32.gmra.mxu0 %vm648_vm0, %v4669_v34 }
 0x289   : > { %v2696_v27 = vadd.f32 %v6801_v16, %v9155_v7  ;;  %7114 = vmatprep.mubr.msk.f32.mxu0 %vm648_vm0, %v4670_v20  ;;  %v4674_v16 = vld [vmem:[#allocation2 + $0xc9] sm:$0xff] }
 0x28a   : > { %v2544_v32 = vpop.f32.mrf.mxu0  ;;  %v9304_v55 = vpop.f32.mrf.mxu1 }
 0x28b   : > { %v9306_v40 = vadd.f32 %v6853_v9, %v2696_v27  ;;  %v9309_v22 = vadd.f32 %v2544_v32, %v9159_v21  ;;  %v4673_v21 = vld [vmem:[#allocation2 + $0xb1] sm:$0xff] }
 0x28c   : > { %v6804_v38 = vpop.f32.mrf.mxu0  ;;  %v6856_v36 = vpop.f32.mrf.mxu1  ;;  %7115 = vmatmul.mubr.msk.f32.gmra.mxu0 %vm648_vm0, %v4671_v51  ;;  %v5204_v51 = vld [vmem:[%s10182_s11 + $0x8] sm:$0xff] }
 0x28d   : > { %v2698_v62 = vadd.f32 %v6804_v38, %v9163_v59  ;;  %7117 = vmatprep.mubr.msk.f32.mxu0 %vm648_vm0, %v4672_v45  ;;  %7156 = vmatprep.subr.mxu1 %v5204_v51 }
 0x28e   : > { %v2554_v7 = vpop.f32.mrf.mxu0  ;;  %v9314_v25 = vpop.f32.mrf.mxu1  ;;  %7157 = vmatpush3.msra.mxu1 %v5204_v51 }
 0x28f   : > { %v9316_v41 = vadd.f32 %v6856_v36, %v2698_v62  ;;  %v9319_v42 = vadd.f32 %v2554_v7, %v9167_v19  ;;  %v4675_v19 = vld [vmem:[#allocation2 + $0xd1] sm:$0xff] }
 0x290   : > { %v6807_v60 = vpop.f32.mrf.mxu0  ;;  %v6859_v34 = vpop.f32.mrf.mxu1  ;;  %7118 = vmatmul.mubr.msk.f32.gmra.mxu0 %vm648_vm0, %v4673_v21 }
 0x291   : > { %v2700_v9 = vadd.f32 %v6807_v60, %v9171_v31  ;;  %7120 = vmatprep.mubr.msk.f32.mxu0 %vm648_vm0, %v4674_v16  ;;  %v4676_v31 = vld [vmem:[#allocation2 + $0xe9] sm:$0xff]  ;;  %v4677_v60 = vld [vmem:[#allocation2 + $0xf1] sm:$0xff] }
 0x292   : > { %v2564_v59 = vpop.f32.mrf.mxu0  ;;  %v9324_v20 = vpop.f32.mrf.mxu1 }
 0x293   : > { %v9326_v27 = vadd.f32 %v6859_v34, %v2700_v9  ;;  %v9329_v32 = vadd.f32 %v2564_v59, %v9175_v3  ;;  %v4678_v9 = vld [vmem:[#allocation2 + $0x109] sm:$0xff] }
 0x294   : > { %v6810_v38 = vpop.f32.mrf.mxu0  ;;  %v6862_v36 = vpop.f32.mrf.mxu1  ;;  %7121 = vmatmul.mubr.msk.f32.gmra.mxu0 %vm648_vm0, %v4675_v19 }
 0x295   : > { %v2702_v45 = vadd.f32 %v6810_v38, %v9179_v61  ;;  %7123 = vmatprep.mubr.msk.f32.mxu0 %vm648_vm0, %v4676_v31 }
 0x296   : > { %v2574_v62 = vpop.f32.mrf.mxu0  ;;  %v9337_v7 = vpop.f32.mrf.mxu1 }
 0x297   : > { %v9339_v3 = vadd.f32 %v6862_v36, %v2702_v45  ;;  %v9342_v21 = vadd.f32 %v2574_v62, %v9183_v6  ;;  %v4679_v6 = vld [vmem:[#allocation2 + $0x111] sm:$0xff]  ;;  %v4680_v45 = vld [vmem:[#allocation2 + $0x129] sm:$0xff] }
 0x298   : > { %v6813_v34 = vpop.f32.mrf.mxu0  ;;  %v6865_v16 = vpop.f32.mrf.mxu1  ;;  %7124 = vmatmul.mubr.msk.f32.gmra.mxu0 %vm648_vm0, %v4677_v60 }
 0x299   : > { %v2704_v59 = vadd.f32 %v6813_v34, %v9187_v48  ;;  %7126 = vmatprep.mubr.msk.f32.mxu0 %vm648_vm0, %v4678_v9 }
 0x29a   : > { %v2584_v61 = vpop.f32.mrf.mxu0  ;;  %v9347_v19 = vpop.f32.mrf.mxu1 }
 0x29b   : > { %v9349_v51 = vadd.f32 %v6865_v16, %v2704_v59  ;;  %v9352_v38 = vadd.f32 %v2584_v61, %v9191_v47  ;;  %v4681_v47 = vld [vmem:[#allocation2 + $0x131] sm:$0xff]  ;;  %v4682_v61 = vld [vmem:[#allocation2 + $0x149] sm:$0xff] }
 0x29c   : > { %v6816_v36 = vpop.f32.mrf.mxu0  ;;  %v6868_v31 = vpop.f32.mrf.mxu1  ;;  %7127 = vmatmul.mubr.msk.f32.gmra.mxu0 %vm648_vm0, %v4679_v6 }
 0x29d   : > { %v2706_v62 = vadd.f32 %v6816_v36, %v9195_v33  ;;  %7129 = vmatprep.mubr.msk.f32.mxu0 %vm648_vm0, %v4680_v45 }
 0x29e   : > { %v2594_v48 = vpop.f32.mrf.mxu0  ;;  %v9357_v60 = vpop.f32.mrf.mxu1 }
 0x29f   : > { %v9359_v34 = vadd.f32 %v6868_v31, %v2706_v62  ;;  %v9362_v16 = vadd.f32 %v2594_v48, %v9199_v14  ;;  %v4683_v14 = vld [vmem:[#allocation2 + $0x151] sm:$0xff] }
 0x2a0   : > { %v6819_v9 = vpop.f32.mrf.mxu0  ;;  %v6871_v59 = vpop.f32.mrf.mxu1  ;;  %7130 = vmatmul.mubr.msk.f32.gmra.mxu0 %vm648_vm0, %v4681_v47  ;;  %v2259_v47 = vadd.f32 %v9217_v43, %v9215_v28 }
 0x2a1   : > { %v2708_v6 = vadd.f32 %v6819_v9, %v9203_v53  ;;  %7132 = vmatprep.mubr.msk.f32.mxu0 %vm648_vm0, %v4682_v61 }
 0x2a2   : > { %v2604_v33 = vpop.f32.mrf.mxu0  ;;  %v9367_v36 = vpop.f32.mrf.mxu1 }
 0x2a3   : > { %10285 = vst [vmem:[#allocation52_spill] sm:$0xff] %v9367_v36  ;;  %v9369_v45 = vadd.f32 %v6871_v59, %v2708_v6  ;;  %v9372_v31 = vadd.f32 %v2604_v33, %v9207_v18  ;;  %v4685_v18 = vld [vmem:[#allocation2 + $0x171] sm:$0xff]  ;;  %v4686_v36 = vld [vmem:[#allocation2 + $0x189] sm:$0xff] }
 0x2a4   : > { %v6822_v62 = vpop.f32.mrf.mxu0  ;;  %v6874_v48 = vpop.f32.mrf.mxu1  ;;  %7133 = vmatmul.mubr.msk.f32.gmra.mxu0 %vm648_vm0, %v4683_v14  ;;  %v2269_v14 = vadd.f32 %v9227_v12, %v9225_v13  ;;  %v2279_v13 = vadd.f32 %v9237_v44, %v9235_v17  ;;  %v2289_v17 = vadd.f32 %v9247_v23, %v9245_v50  ;;  %v4692_v50 = vld [vmem:[#allocation2 + $0x1e9] sm:$0xff] }
 0x2a5   : > { %10286 = vst [vmem:[#allocation54_spill] sm:$0xff] %v9369_v45  ;;  %10287 = vst [vmem:[#allocation56_spill] sm:$0xff] %v9372_v31  ;;  %v2710_v53 = vadd.f32 %v6822_v62, %v9211_v2  ;;  %7135 = vmatprep.mubr.msk.f32.mxu0 %vm648_vm0, %v4684_v63 }
 0x2a6   : > { %v2614_v9 = vpop.f32.mrf.mxu0  ;;  %v3002_v61 = vpop.f32.mrf.mxu1 }
 0x2a7   : > { %v9379_v59 = vadd.f32 %v6874_v48, %v2710_v53  ;;  %v2709_v6 = vadd.f32 %v2614_v9, %v2259_v47  ;;  %v4687_v48 = vld [vmem:[#allocation2 + $0x191] sm:$0xff]  ;;  %v4688_v9 = vld [vmem:[#allocation2 + $0x1a9] sm:$0xff] }
 0x2a8   : > { %v6825_v33 = vpop.f32.mrf.mxu0  ;;  %v6877_v45 = vpop.f32.mrf.mxu1  ;;  %7136 = vmatmul.mubr.msk.f32.gmra.mxu0 %vm648_vm0, %v4685_v18  ;;  %v4689_v18 = vld [vmem:[#allocation2 + $0x1b1] sm:$0xff] }
 0x2a9   : > { %v9384_v31 = vadd.f32 %v3002_v61, %v2709_v6  ;;  %v2712_v2 = vadd.f32 %v6825_v33, %v9221_v54  ;;  %7138 = vmatprep.mubr.msk.f32.mxu0 %vm648_vm0, %v4686_v36 }
 0x2aa   : > { %v2624_v63 = vpop.f32.mrf.mxu0  ;;  %v3012_v28 = vpop.f32.mrf.mxu1 }
 0x2ab   : > { %v9388_v43 = vadd.f32 %v6877_v45, %v2712_v2  ;;  %v2711_v62 = vadd.f32 %v2624_v63, %v2269_v14  ;;  %v4690_v2 = vld [vmem:[#allocation2 + $0x1c9] sm:$0xff] }
 0x2ac   : > { %v6828_v47 = vpop.f32.mrf.mxu0  ;;  %v6880_v53 = vpop.f32.mrf.mxu1  ;;  %7139 = vmatmul.mubr.msk.f32.gmra.mxu0 %vm648_vm0, %v4687_v48 }
 0x2ad   : > { %v9393_v12 = vadd.f32 %v3012_v28, %v2711_v62  ;;  %v2714_v54 = vadd.f32 %v6828_v47, %v9231_v0  ;;  %7141 = vmatprep.mubr.msk.f32.mxu0 %vm648_vm0, %v4688_v9  ;;  %v4691_v47 = vld [vmem:[#allocation2 + $0x1d1] sm:$0xff] }
 0x2ae   : > { %v2634_v36 = vpop.f32.mrf.mxu0  ;;  %v3022_v61 = vpop.f32.mrf.mxu1 }
 0x2af   : > { %v9397_v45 = vadd.f32 %v6880_v53, %v2714_v54  ;;  %v2713_v6 = vadd.f32 %v2634_v36, %v2279_v13  ;;  %v5203_v53 = vld [vmem:[%s10182_s11] sm:$0xff] }
 0x2b0   : > { %v6831_v33 = vpop.f32.mrf.mxu0  ;;  %v6883_v14 = vpop.f32.mrf.mxu1  ;;  %7142 = vmatmul.mubr.msk.f32.gmra.mxu0 %vm648_vm0, %v4689_v18  ;;  %7158 = vmatprep.subr.mxu1 %v5203_v53 }
 0x2b1   : > { %v9402_v44 = vadd.f32 %v3022_v61, %v2713_v6  ;;  %v2716_v0 = vadd.f32 %v6831_v33, %v9241_v8  ;;  %7144 = vmatprep.mubr.msk.f32.mxu0 %vm648_vm0, %v4690_v2  ;;  %v2299_v8 = vadd.f32 %v9257_v4, %v9255_v30  ;;  %7159 = vmatpush3.msra.mxu1 %v5203_v53  ;;  %v4693_v33 = vld [vmem:[#allocation2 + $0x1f1] sm:$0xff] }
 0x2b2   : > { %v2644_v63 = vpop.f32.mrf.mxu0  ;;  %v3032_v28 = vpop.f32.mrf.mxu1  ;;  %v2309_v30 = vadd.f32 %v9269_v57, %v9267_v26  ;;  %v2319_v26 = vadd.f32 %v9281_v46, %v9279_v37  ;;  %v2329_v37 = vadd.f32 %v9290_v24, %v9288_v56 }
 0x2b3   : > { %v9406_v62 = vadd.f32 %v6883_v14, %v2716_v0  ;;  %v2715_v48 = vadd.f32 %v2644_v63, %v2289_v17  ;;  %v4696_v63 = vld [vmem:[#allocation2 + $0x229] sm:$0xff] }
 0x2b4   : > { %v6834_v9 = vpop.f32.mrf.mxu0  ;;  %v6886_v13 = vpop.f32.mrf.mxu1  ;;  %7145 = vmatmul.mubr.msk.f32.gmra.mxu0 %vm648_vm0, %v4691_v47 }
 0x2b5   : > { %v9414_v23 = vadd.f32 %v3032_v28, %v2715_v48  ;;  %v2718_v54 = vadd.f32 %v6834_v9, %v9251_v29  ;;  %7147 = vmatprep.mubr.msk.f32.mxu0 %vm648_vm0, %v4692_v50  ;;  %v2179_v50 = vadd.f32 %v9150_v39, %v9148_v10 }
 0x2b6   : > { %v2654_v36 = vpop.f32.mrf.mxu0  ;;  %v3042_v61 = vpop.f32.mrf.mxu1 }
 0x2b7   : > { %v9418_v6 = vadd.f32 %v6886_v13, %v2718_v54  ;;  %v2717_v18 = vadd.f32 %v2654_v36, %v2299_v8 }
 0x2b8   : > { %v6837_v14 = vpop.f32.mrf.mxu0  ;;  %v6889_v2 = vpop.f32.mrf.mxu1  ;;  %7148 = vmatmul.mubr.msk.f32.gmra.mxu0 %vm648_vm0, %v4693_v33 }
 0x2b9   : > { %v9423_v4 = vadd.f32 %v3042_v61, %v2717_v18  ;;  %v2720_v29 = vadd.f32 %v6837_v14, %v9261_v1  ;;  %7150 = vmatprep.mubr.msk.f32.mxu0 %vm648_vm0, %v9128_v58  ;;  %v4697_v58 = vld [vmem:[#allocation2 + $0x231] sm:$0xff] }
 0x2ba   : > { %v2664_v17 = vpop.f32.mrf.mxu0  ;;  %v3052_v0 = vpop.f32.mrf.mxu1 }
 0x2bb   : > { %v9428_v28 = vadd.f32 %v6889_v2, %v2720_v29  ;;  %v2719_v48 = vadd.f32 %v2664_v17, %v2309_v30 }
 0x2bc   : > { %v6840_v47 = vpop.f32.mrf.mxu0  ;;  %v6892_v53 = vpop.f32.mrf.mxu1  ;;  %7151 = vmatmul.mubr.msk.f32.gmra.mxu0 %vm648_vm0, %v9136_v15 }
 0x2bd   : > { %v9434_v57 = vadd.f32 %v3052_v0, %v2719_v48  ;;  %v2722_v1 = vadd.f32 %v6840_v47, %v9275_v35  ;;  %7153 = vmatprep.mubr.msk.f32.mxu0 %vm648_vm0, %v4696_v63  ;;  %v2693_v35 = vadd.f32 %v9295_v49, %v2179_v50  ;;  %v3083_v63 = vadd.f32 %v9304_v55, %v9309_v22 }
 0x2be   : > { %v2674_v9 = vpop.f32.mrf.mxu0  ;;  %v3062_v13 = vpop.f32.mrf.mxu1  ;;  %v3087_v50 = vadd.f32 %v9324_v20, %v9329_v32 }
 0x2bf   : > { %v9440_v8 = vadd.f32 %v6892_v53, %v2722_v1  ;;  %v2721_v54 = vadd.f32 %v2674_v9, %v2319_v26  ;;  %v3081_v30 = vadd.f32 %v9297_v52, %v2693_v35  ;;  %v3085_v1 = vadd.f32 %v9314_v25, %v9319_v42 }
 0x2c0   : > { %v6843_v36 = vpop.f32.mrf.mxu0  ;;  %v6895_v15 = vpop.f32.mrf.mxu1  ;;  %7154 = vmatmul.mubr.msk.f32.gmra.mxu0 %vm648_vm0, %v4697_v58 }
 0x2c1   : > { %v9446_v46 = vadd.f32 %v3062_v13, %v2721_v54  ;;  %v2724_v61 = vadd.f32 %v6843_v36, %v9285_v5 }
 0x2c2   : > { %v2684_v18 = vpop.f32.mrf.mxu0  ;;  %v3072_v33 = vpop.f32.mrf.mxu1 }
 0x2c3   : > { %v9449_v14 = vadd.f32 %v6895_v15, %v2724_v61  ;;  %v2723_v10 = vadd.f32 %v2684_v18, %v2329_v37  ;;  %v3089_v37 = vadd.f32 %v9337_v7, %v9342_v21 }
 0x2c4   : > { %v6902_v39 = vpop.f32.mrf.mxu0  ;;  %v9451_v2 = vpop.f32.mrf.mxu1 }
 0x2c5   : > { %v9454_v29 = vadd.f32 %v3072_v33, %v2723_v10  ;;  %v9457_v56 = vadd.f32 %v6902_v39, %v9299_v11  ;;  %v3091_v10 = vadd.f32 %v9347_v19, %v9352_v38 }
 0x2c6   : > { %v3310_v24 = vpop.f32.mrf.mxu0  ;;  %v9459_v49 = vpop.f32.mrf.mxu1 }
 0x2c7   : > { %v9461_v17 = vadd.f32 %v3310_v24, %v3081_v30 }
 0x2c8   : > { %v6905_v5 = vpop.f32.mrf.mxu0  ;;  %v9463_v0 = vpop.f32.mrf.mxu1 }
 0x2c9   : > { %v9468_v48 = vadd.f32 %v6905_v5, %v9306_v40 }
 0x2ca   : > { %v3320_v52 = vpop.f32.mrf.mxu0  ;;  %v9470_v47 = vpop.f32.mrf.mxu1 }
 0x2cb   : > { %v9472_v53 = vadd.f32 %v3320_v52, %v3083_v63  ;;  %v3093_v63 = vadd.f32 %v9357_v60, %v9362_v16 }
 0x2cc   : > { %v6908_v11 = vpop.f32.mrf.mxu0  ;;  %v9474_v26 = vpop.f32.mrf.mxu1 }
 0x2cd   : > { %v9479_v58 = vadd.f32 %v6908_v11, %v9316_v41 }
 0x2ce   : > { %v3330_v9 = vpop.f32.mrf.mxu0  ;;  %v9481_v13 = vpop.f32.mrf.mxu1 }
 0x2cf   : > { %v9483_v55 = vadd.f32 %v3330_v9, %v3085_v1 }
 0x2d0   : > { %v6911_v40 = vpop.f32.mrf.mxu0  ;;  %v9485_v22 = vpop.f32.mrf.mxu1 }
 0x2d1   : > { %v9490_v54 = vadd.f32 %v6911_v40, %v9326_v27  ;;  %v10288_v40 = vld [vmem:[#allocation56_spill] sm:$0xff] }
 0x2d2   : > { %v3340_v36 = vpop.f32.mrf.mxu0  ;;  %v9492_v15 = vpop.f32.mrf.mxu1 }
 0x2d3   : > { %v9494_v25 = vadd.f32 %v3340_v36, %v3087_v50  ;;  %v10289_v50 = vld [vmem:[#allocation52_spill] sm:$0xff] }
 0x2d4   : > { %v6914_v41 = vpop.f32.mrf.mxu0  ;;  %v6966_v42 = vpop.f32.mrf.mxu1  ;;  %v3095_v36 = vadd.f32 %v10289_v50, %v10288_v40 }
 0x2d5   : > { %v3478_v35 = vadd.f32 %v6914_v41, %v9339_v3  ;;  %v10290_v41 = vld [vmem:[#allocation54_spill] sm:$0xff] }
 0x2d6   : > { %v3350_v61 = vpop.f32.mrf.mxu0  ;;  %v9499_v18 = vpop.f32.mrf.mxu1 }
 0x2d7   : > { %v9501_v33 = vadd.f32 %v6966_v42, %v3478_v35  ;;  %v9503_v20 = vadd.f32 %v3350_v61, %v3089_v37 }
 0x2d8   : > { %v6917_v27 = vpop.f32.mrf.mxu0  ;;  %v6969_v32 = vpop.f32.mrf.mxu1 }
 0x2d9   : > { %v3480_v39 = vadd.f32 %v6917_v27, %v9349_v51 }
 0x2da   : > { %v3360_v30 = vpop.f32.mrf.mxu0  ;;  %v9508_v24 = vpop.f32.mrf.mxu1 }
 0x2db   : > { %v9510_v7 = vadd.f32 %v6969_v32, %v3480_v39  ;;  %v9512_v3 = vadd.f32 %v3360_v30, %v3091_v10 }
 0x2dc   : > { %v6920_v21 = vpop.f32.mrf.mxu0  ;;  %v6972_v5 = vpop.f32.mrf.mxu1 }
 0x2dd   : > { %v3482_v52 = vadd.f32 %v6920_v21, %v9359_v34 }
 0x2de   : > { %v3370_v11 = vpop.f32.mrf.mxu0  ;;  %v9517_v1 = vpop.f32.mrf.mxu1 }
 0x2df   : > { %v9519_v19 = vadd.f32 %v6972_v5, %v3482_v52  ;;  %v9521_v51 = vadd.f32 %v3370_v11, %v3093_v63 }
 0x2e0   : > { %v6923_v38 = vpop.f32.mrf.mxu0  ;;  %v6975_v9 = vpop.f32.mrf.mxu1 }
 0x2e1   : > { %v3484_v42 = vadd.f32 %v6923_v38, %v10290_v41 }
 0x2e2   : > { %v3380_v37 = vpop.f32.mrf.mxu0  ;;  %v9526_v35 = vpop.f32.mrf.mxu1 }
 0x2e3   : > { %10291 = vst [vmem:[#allocation58_spill] sm:$0xff] %v9526_v35  ;;  %v9528_v60 = vadd.f32 %v6975_v9, %v3484_v42  ;;  %v9530_v34 = vadd.f32 %v3380_v37, %v3095_v36 }
 0x2e4   : > { %v6926_v16 = vpop.f32.mrf.mxu0  ;;  %v6978_v61 = vpop.f32.mrf.mxu1 }
 0x2e5   : > { %v3486_v27 = vadd.f32 %v6926_v16, %v9379_v59 }
 0x2e6   : > { %v3390_v32 = vpop.f32.mrf.mxu0  ;;  %v9533_v10 = vpop.f32.mrf.mxu1 }
 0x2e7   : > { %10292 = vst [vmem:[#allocation60_spill] sm:$0xff] %v9533_v10  ;;  %v9535_v39 = vadd.f32 %v6978_v61, %v3486_v27  ;;  %v9538_v30 = vadd.f32 %v3390_v32, %v9384_v31 }
 0x2e8   : > { %v6929_v21 = vpop.f32.mrf.mxu0  ;;  %v6981_v5 = vpop.f32.mrf.mxu1 }
 0x2e9   : > { %10293 = vst [vmem:[#allocation62_spill] sm:$0xff] %v9538_v30  ;;  %v3488_v63 = vadd.f32 %v6929_v21, %v9388_v43 }
 0x2ea   : > { %v3400_v52 = vpop.f32.mrf.mxu0  ;;  %v9541_v11 = vpop.f32.mrf.mxu1 }
 0x2eb   : > { %10294 = vst [vmem:[#allocation56_spill] sm:$0xff] %v9541_v11  ;;  %v9543_v38 = vadd.f32 %v6981_v5, %v3488_v63  ;;  %v9546_v9 = vadd.f32 %v3400_v52, %v9393_v12 }
 0x2ec   : > { %v6932_v59 = vpop.f32.mrf.mxu0  ;;  %v6984_v40 = vpop.f32.mrf.mxu1 }
 0x2ed   : > { %10295 = vst [vmem:[#allocation52_spill] sm:$0xff] %v9546_v9  ;;  %v3490_v50 = vadd.f32 %v6932_v59, %v9397_v45 }
 0x2ee   : > { %v3410_v36 = vpop.f32.mrf.mxu0  ;;  %v9549_v41 = vpop.f32.mrf.mxu1 }
 0x2ef   : > { %10296 = vst [vmem:[#allocation54_spill] sm:$0xff] %v9549_v41  ;;  %v9551_v31 = vadd.f32 %v6984_v40, %v3490_v50  ;;  %v9554_v42 = vadd.f32 %v3410_v36, %v9402_v44 }
 0x2f0   : > { %v6935_v43 = vpop.f32.mrf.mxu0  ;;  %v6987_v37 = vpop.f32.mrf.mxu1 }
 0x2f1   : > { %10297 = vst [vmem:[#allocation64_spill] sm:$0xff] %v9554_v42  ;;  %v3492_v16 = vadd.f32 %v6935_v43, %v9406_v62 }
 0x2f2   : > { %v3420_v61 = vpop.f32.mrf.mxu0  ;;  %v9557_v27 = vpop.f32.mrf.mxu1 }
 0x2f3   : > { %10298 = vst [vmem:[#allocation65_spill] sm:$0xff] %v9557_v27  ;;  %v9559_v12 = vadd.f32 %v6987_v37, %v3492_v16  ;;  %v9562_v32 = vadd.f32 %v3420_v61, %v9414_v23 }
 0x2f4   : > { %v6938_v45 = vpop.f32.mrf.mxu0  ;;  %v6990_v21 = vpop.f32.mrf.mxu1 }
 0x2f5   : > { %10299 = vst [vmem:[#allocation66_spill] sm:$0xff] %v9562_v32  ;;  %v3494_v5 = vadd.f32 %v6938_v45, %v9418_v6 }
 0x2f6   : > { %v3430_v63 = vpop.f32.mrf.mxu0  ;;  %v9565_v52 = vpop.f32.mrf.mxu1 }
 0x2f7   : > { %10300 = vst [vmem:[#allocation67_spill] sm:$0xff] %v9565_v52  ;;  %v9567_v44 = vadd.f32 %v6990_v21, %v3494_v5  ;;  %v9570_v59 = vadd.f32 %v3430_v63, %v9423_v4 }
 0x2f8   : > { %v6941_v62 = vpop.f32.mrf.mxu0  ;;  %v6993_v40 = vpop.f32.mrf.mxu1 }
 0x2f9   : > { %10301 = vst [vmem:[#allocation68_spill] sm:$0xff] %v9570_v59  ;;  %v3496_v50 = vadd.f32 %v6941_v62, %v9428_v28 }
 0x2fa   : > { %v3440_v36 = vpop.f32.mrf.mxu0  ;;  %v9573_v43 = vpop.f32.mrf.mxu1 }
 0x2fb   : > { %10302 = vst [vmem:[#allocation69_spill] sm:$0xff] %v9573_v43  ;;  %v9575_v23 = vadd.f32 %v6993_v40, %v3496_v50  ;;  %v9578_v37 = vadd.f32 %v3440_v36, %v9434_v57 }
 0x2fc   : > { %v6944_v6 = vpop.f32.mrf.mxu0  ;;  %v6996_v16 = vpop.f32.mrf.mxu1 }
 0x2fd   : > { %10303 = vst [vmem:[#allocation70_spill] sm:$0xff] %v9578_v37  ;;  %v3498_v61 = vadd.f32 %v6944_v6, %v9440_v8 }
 0x2fe   : > { %v3450_v45 = vpop.f32.mrf.mxu0  ;;  %v9581_v21 = vpop.f32.mrf.mxu1 }
 0x2ff   : > { %10304 = vst [vmem:[#allocation71_spill] sm:$0xff] %v9581_v21  ;;  %v9583_v4 = vadd.f32 %v6996_v16, %v3498_v61  ;;  %v9586_v5 = vadd.f32 %v3450_v45, %v9446_v46 }
 0x300   : > { %v6947_v28 = vpop.f32.mrf.mxu0  ;;  %v6999_v63 = vpop.f32.mrf.mxu1 }
 0x301   : > { %10305 = vst [vmem:[#allocation72_spill] sm:$0xff] %v9586_v5  ;;  %v3500_v62 = vadd.f32 %v6947_v28, %v9449_v14 }
 0x302   : > { %v3460_v40 = vpop.f32.mrf.mxu0  ;;  %v9589_v50 = vpop.f32.mrf.mxu1 }
 0x303   : > { %10306 = vst [vmem:[#allocation73_spill] sm:$0xff] %v9589_v50  ;;  %v9591_v57 = vadd.f32 %v6999_v63, %v3500_v62  ;;  %v9594_v36 = vadd.f32 %v3460_v40, %v9454_v29 }
 0x304   : > { %v7006_v8 = vpop.f32.mrf.mxu0  ;;  %v9596_v6 = vpop.f32.mrf.mxu1 }
 0x305   : > { %10307 = vst [vmem:[#allocation74_spill] sm:$0xff] %v9594_v36 }
 0x306   : > { %v4087_v16 = vpop.f32.mrf.mxu0  ;;  %v9598_v61 = vpop.f32.mrf.mxu1 }
 0x308   : > { %v9600_v46 = vpop.f32.mrf.mxu0  ;;  %v9604_v21 = vpop.f32.mrf.mxu1 }
 0x30a   : > { %v9602_v45 = vpop.f32.mrf.mxu0  ;;  %v9610_v63 = vpop.f32.mrf.mxu1 }
 0x30c   : > { %v9606_v14 = vpop.f32.mrf.mxu0  ;;  %v9616_v40 = vpop.f32.mrf.mxu1 }
 0x30e   : > { %v9608_v28 = vpop.f32.mrf.mxu0  ;;  %v9623_v43 = vpop.f32.mrf.mxu1 }
 0x310   : > { %v9612_v29 = vpop.f32.mrf.mxu0  ;;  %v9630_v27 = vpop.f32.mrf.mxu1 }
 0x312   : > { %v9614_v62 = vpop.f32.mrf.mxu0 }
 0x314   : > { %v7018_v50 = vpop.f32.mrf.mxu0 }
 0x315   : > { %v9619_v36 = vadd.f32 %v7018_v50, %v9501_v33  ;;  %v9637_v33 = vpop.f32.mrf.mxu1 }
 0x316   : > { %v9621_v5 = vpop.f32.mrf.mxu0 }
 0x318   : > { %v7021_v37 = vpop.f32.mrf.mxu0 }
 0x319   : > { %v9626_v52 = vadd.f32 %v7021_v37, %v9510_v7  ;;  %v9644_v7 = vpop.f32.mrf.mxu1 }
 0x31a   : > { %v9628_v59 = vpop.f32.mrf.mxu0 }
 0x31c   : > { %v7024_v32 = vpop.f32.mrf.mxu0 }
 0x31d   : > { %v9633_v41 = vadd.f32 %v7024_v32, %v9519_v19  ;;  %v9651_v19 = vpop.f32.mrf.mxu1 }
 0x31e   : > { %v9635_v42 = vpop.f32.mrf.mxu0 }
 0x31f   : > { %10308 = vst [vmem:[#allocation75_spill] sm:$0xff] %v9633_v41 }
 0x320   : > { %v7027_v50 = vpop.f32.mrf.mxu0 }
 0x321   : > { %v9640_v11 = vadd.f32 %v7027_v50, %v9528_v60  ;;  %v9658_v60 = vpop.f32.mrf.mxu1 }
 0x322   : > { %v9642_v9 = vpop.f32.mrf.mxu0 }
 0x323   : > { %10309 = vst [vmem:[#allocation76_spill] sm:$0xff] %v9640_v11  ;;  %10310 = vst [vmem:[#allocation77_spill] sm:$0xff] %v9642_v9 }
 0x324   : > { %v7030_v37 = vpop.f32.mrf.mxu0 }
 0x325   : > { %v9647_v10 = vadd.f32 %v7030_v37, %v9535_v39  ;;  %v9665_v39 = vpop.f32.mrf.mxu1 }
 0x326   : > { %v9649_v30 = vpop.f32.mrf.mxu0 }
 0x327   : > { %10311 = vst [vmem:[#allocation78_spill] sm:$0xff] %v9647_v10  ;;  %10312 = vst [vmem:[#allocation79_spill] sm:$0xff] %v9649_v30 }
 0x328   : > { %v7033_v32 = vpop.f32.mrf.mxu0 }
 0x329   : > { %v9654_v41 = vadd.f32 %v7033_v32, %v9543_v38  ;;  %v9672_v38 = vpop.f32.mrf.mxu1 }
 0x32a   : > { %v9656_v35 = vpop.f32.mrf.mxu0 }
 0x32b   : > { %10313 = vst [vmem:[#allocation80_spill] sm:$0xff] %v9654_v41  ;;  %10314 = vst [vmem:[#allocation81_spill] sm:$0xff] %v9656_v35 }
 0x32c   : > { %v7036_v50 = vpop.f32.mrf.mxu0 }
 0x32d   : > { %v9661_v11 = vadd.f32 %v7036_v50, %v9551_v31  ;;  %v9679_v31 = vpop.f32.mrf.mxu1 }
 0x32e   : > { %v9663_v9 = vpop.f32.mrf.mxu0 }
 0x32f   : > { %10315 = vst [vmem:[#allocation82_spill] sm:$0xff] %v9661_v11  ;;  %10316 = vst [vmem:[#allocation83_spill] sm:$0xff] %v9663_v9 }
 0x330   : > { %v7039_v37 = vpop.f32.mrf.mxu0 }
 0x331   : > { %v9668_v10 = vadd.f32 %v7039_v37, %v9559_v12  ;;  %v9686_v12 = vpop.f32.mrf.mxu1 }
 0x332   : > { %v9670_v30 = vpop.f32.mrf.mxu0 }
 0x333   : > { %10317 = vst [vmem:[#allocation84_spill] sm:$0xff] %v9668_v10  ;;  %10318 = vst [vmem:[#allocation85_spill] sm:$0xff] %v9670_v30  ;;  %v3858_v10 = vadd.f32 %v9451_v2, %v9457_v56  ;;  %v3859_v56 = vadd.f32 %v9470_v47, %v9472_v53  ;;  %v3861_v47 = vadd.f32 %v9481_v13, %v9483_v55  ;;  %v9720_v53 = vld [vmem:[#allocation12] ss:$0 sm:$0xff] }
 0x334   : > { %v7042_v32 = vpop.f32.mrf.mxu0 }
 0x335   : > { %v9675_v35 = vadd.f32 %v7042_v32, %v9567_v44  ;;  %v3857_v32 = vadd.f32 %v9459_v49, %v9461_v17 }
 0x336   : > { %v9677_v41 = vpop.f32.mrf.mxu0 }
 0x337   : > { %10319 = vst [vmem:[#allocation86_spill] sm:$0xff] %v9675_v35  ;;  %10320 = vst [vmem:[#allocation87_spill] sm:$0xff] %v9677_v41  ;;  %v4247_v35 = vadd.f32 %v7006_v8, %v3858_v10  ;;  %v9697_v41 = vpop.f32.mrf.mxu1  ;;  %v9712_v8 = vld [vmem:[#allocation11] ss:$0 sm:$0xff] }
 0x338   : > { %v7045_v50 = vpop.f32.mrf.mxu0 }
 0x339   : > { %v9682_v11 = vadd.f32 %v7045_v50, %v9575_v23  ;;  %v3860_v50 = vadd.f32 %v9463_v0, %v9468_v48  ;;  %v9710_v17 = vpop.f32.mrf.mxu1  ;;  %v4248_v48 = vadd.f32 %v9602_v45, %v3859_v56  ;;  %v9732_v45 = vld [vmem:[#allocation14] ss:$0 sm:$0xff] }
 0x33a   : > { %v9684_v9 = vpop.f32.mrf.mxu0 }
 0x33b   : > { %10321 = vst [vmem:[#allocation88_spill] sm:$0xff] %v9682_v11  ;;  %10322 = vst [vmem:[#allocation89_spill] sm:$0xff] %v9684_v9  ;;  %v4246_v11 = vadd.f32 %v4087_v16, %v3857_v32  ;;  %v4249_v49 = vadd.f32 %v9600_v46, %v3860_v50  ;;  %v3862_v16 = vadd.f32 %v9474_v26, %v9479_v58  ;;  %v9723_v46 = vpop.f32.mrf.mxu1 }
 0x33c   : > { %v7048_v37 = vpop.f32.mrf.mxu0  ;;  %v4250_v26 = vadd.f32 %v9608_v28, %v3861_v47  ;;  %v4636_v13 = vadd.f32 %v9610_v63, %v4248_v48  ;;  %v3863_v50 = vadd.f32 %v9492_v15, %v9494_v25 }
 0x33d   : > { %v9691_v30 = vadd.f32 %v7048_v37, %v9583_v4  ;;  %v4635_v4 = vadd.f32 %v9596_v6, %v4247_v35  ;;  %v4634_v0 = vadd.f32 %v9598_v61, %v4246_v11  ;;  %v4637_v6 = vadd.f32 %v9604_v21, %v4249_v49 }
 0x33e   : > { %v9693_v44 = vpop.f32.mrf.mxu0  ;;  %v3864_v11 = vadd.f32 %v9485_v22, %v9490_v54  ;;  %v4251_v61 = vadd.f32 %v9606_v14, %v3862_v16  ;;  %v9738_v54 = vpop.f32.mrf.mxu1  ;;  %v4638_v49 = vadd.f32 %v9623_v43, %v4250_v26  ;;  %v4252_v48 = vadd.f32 %v9614_v62, %v3863_v50 }
 0x340   : > { %v7051_v23 = vpop.f32.mrf.mxu0  ;;  %v4253_v22 = vadd.f32 %v9612_v29, %v3864_v11  ;;  %v4640_v26 = vadd.f32 %v9637_v33, %v4252_v48 }
 0x341   : > { %v9702_v9 = vadd.f32 %v7051_v23, %v9591_v57 }
 0x342   : > { %v9704_v2 = vpop.f32.mrf.mxu0  ;;  %v4641_v47 = vadd.f32 %v9630_v27, %v4253_v22 }
 0x344   : > { %v7110_v10 = vpop.f32.mrf.mxu0 }
 0x345   : > { %v5023_v57 = vadd.f32 %v7110_v10, %v4635_v4  ;;  %v4639_v4 = vadd.f32 %v9616_v40, %v4251_v61 }
 0x346   : > { %v4863_v35 = vpop.f32.mrf.mxu0 }
 0x347   : > { %v5062_v37 = vadd.f32 %v9712_v8, %v5023_v57  ;;  %v5022_v32 = vadd.f32 %v4863_v35, %v4634_v0  ;;  %v9750_v35 = vpop.f32.mrf.mxu1 }
 0x348   : > { %v7113_v58 = vpop.f32.mrf.mxu0 }
 0x349   : > { %v5101_v55 = vmul.f32 %v9720_v53, %v5062_v37  ;;  %v5061_v21 = vadd.f32 %v9712_v8, %v5022_v32  ;;  %v5025_v23 = vadd.f32 %v7113_v58, %v4637_v6  ;;  %v3865_v37 = vadd.f32 %v9499_v18, %v9503_v20  ;;  %v9768_v33 = vpop.f32.mrf.mxu1 }
 0x34a   : > { %v4873_v56 = vpop.f32.mrf.mxu0  ;;  %v4643_v18 = vadd.f32 %v9644_v7, %v9619_v36 }
 0x34b   : > { %v5100_v14 = vmul.f32 %v9720_v53, %v5061_v21  ;;  %v5064_v28 = vadd.f32 %v9712_v8, %v5025_v23  ;;  %v5024_v63 = vadd.f32 %v4873_v56, %v4636_v13  ;;  %v5140_v10 = vadd.f32 %v9732_v45, %v5101_v55  ;;  %v9784_v48 = vpop.f32.mrf.mxu1 }
 0x34c   : > { %v7116_v0 = vpop.f32.mrf.mxu0  ;;  %v3867_v55 = vadd.f32 %v9508_v24, %v9512_v3  ;;  %v4254_v20 = vadd.f32 %v9621_v5, %v3865_v37 }
 0x34d   : > { %v5139_v15 = vadd.f32 %v9732_v45, %v5100_v14  ;;  %v5103_v25 = vmul.f32 %v9720_v53, %v5064_v28  ;;  %v5063_v29 = vadd.f32 %v9712_v8, %v5024_v63  ;;  %v5027_v57 = vadd.f32 %v7116_v0, %v4639_v4 }
 0x34e   : > { %v4883_v16 = vpop.f32.mrf.mxu0  ;;  %v5172_v62 = vmax.f32 %v5140_v10, 0.0  ;;  %v4256_v24 = vadd.f32 %v9628_v59, %v3867_v55  ;;  %v4642_v10 = vadd.f32 %v9651_v19, %v4254_v20  ;;  %v4645_v59 = vadd.f32 %v9658_v60, %v9626_v52 }
 0x34f   : > { %v5171_v40 = vmax.f32 %v5139_v15, 0.0  ;;  %v5102_v43 = vmul.f32 %v9720_v53, %v5063_v29  ;;  %v5026_v6 = vadd.f32 %v4883_v16, %v4638_v49  ;;  %v5142_v32 = vadd.f32 %v9732_v45, %v5103_v25 }
 0x350   : > { %v5066_v11 = vadd.f32 %v9712_v8, %v5027_v57  ;;  %v7119_v61 = vpop.f32.mrf.mxu0  ;;  %v3869_v49 = vadd.f32 %v9517_v1, %v9521_v51  ;;  %v4644_v57 = vadd.f32 %v9665_v39, %v4256_v24 }
 0x351   : > { %v5141_v58 = vadd.f32 %v9732_v45, %v5102_v43  ;;  %v5065_v27 = vadd.f32 %v9712_v8, %v5026_v6  ;;  %v5029_v13 = vadd.f32 %v7119_v61, %v4641_v47  ;;  %7160 = vmatprep.mubr.msk.f32.mxu1 %vm648_vm0, %v5171_v40  ;;  %v5174_v3 = vmax.f32 %v5142_v32, 0.0  ;;  %v10323_v43 = vld [vmem:[#allocation58_spill] sm:$0xff] }
 0x352   : > { %v5105_v21 = vmul.f32 %v9720_v53, %v5066_v11  ;;  %v4893_v23 = vpop.f32.mrf.mxu0  ;;  %7161 = vmatmul.mubr.msk.f32.vlgmr.msra.gmra.mxu1 %vm648_vm0, %v5172_v62  ;;  %v4258_v47 = vadd.f32 %v9635_v42, %v3869_v49  ;;  %v3871_v6 = vadd.f32 %v10323_v43, %v9530_v34  ;;  %v10324_v62 = vld [vmem:[#allocation75_spill] sm:$0xff]  ;;  %v9800_v11 = vpop.f32.mrf.mxu1 }
 0x353   : > { %v5173_v50 = vmax.f32 %v5141_v58, 0.0  ;;  %v5104_v56 = vmul.f32 %v9720_v53, %v5065_v27  ;;  %v5068_v22 = vadd.f32 %v9712_v8, %v5029_v13  ;;  %v5028_v14 = vadd.f32 %v4893_v23, %v4640_v26  ;;  %v10325_v58 = vld [vmem:[#allocation77_spill] sm:$0xff] }
 0x354   : > { %v5144_v36 = vadd.f32 %v9732_v45, %v5105_v21  ;;  %v7122_v7 = vpop.f32.mrf.mxu0  ;;  %v4647_v32 = vadd.f32 %v9672_v38, %v10324_v62  ;;  %v4260_v27 = vadd.f32 %v10325_v58, %v3871_v6  ;;  %v4646_v20 = vadd.f32 %v9679_v31, %v4258_v47  ;;  %v10334_v58 = vld [vmem:[#allocation54_spill] sm:$0xff] }
 0x355   : > { %v5143_v5 = vadd.f32 %v9732_v45, %v5104_v56  ;;  %v5107_v28 = vmul.f32 %v9720_v53, %v5068_v22  ;;  %v5067_v63 = vadd.f32 %v9712_v8, %v5028_v14  ;;  %v5031_v4 = vadd.f32 %v7122_v7, %v4643_v18  ;;  %7163 = vmatprep.mubr.msk.f32.mxu1 %vm648_vm0, %v5173_v50  ;;  %v10326_v50 = vld [vmem:[#allocation62_spill] sm:$0xff]  ;;  %v10327_v56 = vld [vmem:[#allocation60_spill] sm:$0xff]  ;;  %v9816_v7 = vpop.f32.mrf.mxu1 }
 0x356   : > { %v4903_v0 = vpop.f32.mrf.mxu0  ;;  %7164 = vmatmul.mubr.msk.f32.gmra.mxu1 %vm648_vm0, %v5174_v3  ;;  %v5176_v16 = vmax.f32 %v5144_v36, 0.0  ;;  %v3873_v22 = vadd.f32 %v10327_v56, %v10326_v50  ;;  %v10328_v3 = vld [vmem:[#allocation76_spill] sm:$0xff] }
 0x357   : > { %v5175_v15 = vmax.f32 %v5143_v5, 0.0  ;;  %v5106_v25 = vmul.f32 %v9720_v53, %v5067_v63  ;;  %v5070_v29 = vadd.f32 %v9712_v8, %v5031_v4  ;;  %v5146_v1 = vadd.f32 %v9732_v45, %v5107_v28  ;;  %v10329_v4 = vld [vmem:[#allocation79_spill] sm:$0xff] }
 0x358   : > { %v5030_v51 = vadd.f32 %v4903_v0, %v4642_v10  ;;  %v7125_v19 = vpop.f32.mrf.mxu0  ;;  %v4649_v36 = vadd.f32 %v9686_v12, %v10328_v3  ;;  %v4648_v63 = vadd.f32 %v9697_v41, %v4260_v27  ;;  %v4262_v49 = vadd.f32 %v10329_v4, %v3873_v22  ;;  %v10337_v22 = vld [vmem:[#allocation83_spill] sm:$0xff]  ;;  %v10339_v4 = vld [vmem:[#allocation65_spill] sm:$0xff] }
 0x359   : > { %v5145_v40 = vadd.f32 %v9732_v45, %v5106_v25  ;;  %v5109_v52 = vmul.f32 %v9720_v53, %v5070_v29  ;;  %v5033_v60 = vadd.f32 %v7125_v19, %v4645_v59  ;;  %7166 = vmatprep.mubr.msk.f32.mxu1 %vm648_vm0, %v5175_v15  ;;  %v5178_v13 = vmax.f32 %v5146_v1, 0.0  ;;  %v10330_v1 = vld [vmem:[#allocation78_spill] sm:$0xff] }
 0x35a   : > { %v5069_v37 = vadd.f32 %v9712_v8, %v5030_v51  ;;  %v4913_v39 = vpop.f32.mrf.mxu0  ;;  %7167 = vmatmul.mubr.msk.f32.gmra.mxu1 %vm648_vm0, %v5176_v16  ;;  %v4651_v41 = vadd.f32 %v9710_v17, %v10330_v1  ;;  %v9829_v51 = vpop.f32.mrf.mxu1  ;;  %v4650_v6 = vadd.f32 %v9723_v46, %v4262_v49  ;;  %v10336_v46 = vld [vmem:[#allocation81_spill] sm:$0xff] }
 0x35b   : > { %v5177_v42 = vmax.f32 %v5145_v40, 0.0  ;;  %v5072_v61 = vadd.f32 %v9712_v8, %v5033_v60  ;;  %v5032_v26 = vadd.f32 %v4913_v39, %v4644_v57  ;;  %v5148_v55 = vadd.f32 %v9732_v45, %v5109_v52  ;;  %v10331_v52 = vld [vmem:[#allocation52_spill] sm:$0xff]  ;;  %v10341_v1 = vld [vmem:[#allocation85_spill] sm:$0xff] }
 0x35c   : > { %v5108_v34 = vmul.f32 %v9720_v53, %v5069_v37  ;;  %v7128_v18 = vpop.f32.mrf.mxu0  ;;  %v10332_v60 = vld [vmem:[#allocation56_spill] sm:$0xff] }
 0x35d   : > { %v5111_v21 = vmul.f32 %v9720_v53, %v5072_v61  ;;  %v5071_v38 = vadd.f32 %v9712_v8, %v5032_v26  ;;  %v5035_v23 = vadd.f32 %v7128_v18, %v4647_v32  ;;  %7169 = vmatprep.mubr.msk.f32.mxu1 %vm648_vm0, %v5177_v42  ;;  %v5180_v10 = vmax.f32 %v5148_v55, 0.0  ;;  %v10333_v26 = vld [vmem:[#allocation64_spill] sm:$0xff] }
 0x35e   : > { %v5147_v14 = vadd.f32 %v9732_v45, %v5108_v34  ;;  %v4923_v24 = vpop.f32.mrf.mxu0  ;;  %7170 = vmatmul.mubr.msk.f32.gmra.mxu1 %vm648_vm0, %v5178_v13  ;;  %v3875_v43 = vadd.f32 %v10332_v60, %v10331_v52  ;;  %v3877_v27 = vadd.f32 %v10334_v58, %v10333_v26  ;;  %v10335_v13 = vld [vmem:[#allocation80_spill] sm:$0xff] }
 0x35f   : > { %v5110_v31 = vmul.f32 %v9720_v53, %v5071_v38  ;;  %v5074_v5 = vadd.f32 %v9712_v8, %v5035_v23  ;;  %v5034_v28 = vadd.f32 %v4923_v24, %v4646_v20  ;;  %v5150_v15 = vadd.f32 %v9732_v45, %v5111_v21  ;;  %v4595_v21 = vpop.f32.mrf.mxu1 }
 0x360   : > { %v5179_v0 = vmax.f32 %v5147_v14, 0.0  ;;  %v7131_v59 = vpop.f32.mrf.mxu0  ;;  %v4653_v55 = vadd.f32 %v9738_v54, %v10335_v13  ;;  %v4264_v34 = vadd.f32 %v10336_v46, %v3875_v43  ;;  %v4266_v14 = vadd.f32 %v10337_v22, %v3877_v27  ;;  %v10342_v43 = vld [vmem:[#allocation68_spill] sm:$0xff]  ;;  %v10345_v27 = vld [vmem:[#allocation87_spill] sm:$0xff] }
 0x361   : > { %v5149_v25 = vadd.f32 %v9732_v45, %v5110_v31  ;;  %v5113_v12 = vmul.f32 %v9720_v53, %v5074_v5  ;;  %v5073_v29 = vadd.f32 %v9712_v8, %v5034_v28  ;;  %v5037_v57 = vadd.f32 %v7131_v59, %v4649_v36  ;;  %v10340_v59 = vld [vmem:[#allocation82_spill] sm:$0xff] }
 0x362   : > { %7172 = vmatprep.mubr.msk.f32.mxu1 %vm648_vm0, %v5179_v0  ;;  %v4933_v16 = vpop.f32.mrf.mxu0  ;;  %v5182_v32 = vmax.f32 %v5150_v15, 0.0  ;;  %v4655_v15 = vadd.f32 %v9768_v33, %v10340_v59 }
 0x363   : > { %v5181_v19 = vmax.f32 %v5149_v25, 0.0  ;;  %v5112_v47 = vmul.f32 %v9720_v53, %v5073_v29  ;;  %v5036_v40 = vadd.f32 %v4933_v16, %v4648_v63  ;;  %7173 = vmatmul.mubr.msk.f32.gmra.mxu1 %vm648_vm0, %v5180_v10  ;;  %v5152_v37 = vadd.f32 %v9732_v45, %v5113_v12  ;;  %v10338_v63 = vld [vmem:[#allocation66_spill] sm:$0xff]  ;;  %v7097_v25 = vpop.f32.mrf.mxu1 }
 0x364   : > { %v5076_v39 = vadd.f32 %v9712_v8, %v5037_v57  ;;  %v7134_v62 = vpop.f32.mrf.mxu0  ;;  %v3879_v49 = vadd.f32 %v10339_v4, %v10338_v63  ;;  %v4652_v10 = vadd.f32 %v9750_v35, %v4264_v34  ;;  %v4654_v16 = vadd.f32 %v9784_v48, %v4266_v14  ;;  %v10348_v14 = vld [vmem:[#allocation86_spill] sm:$0xff] }
 0x365   : > { %v5151_v17 = vadd.f32 %v9732_v45, %v5112_v47  ;;  %v5075_v42 = vadd.f32 %v9712_v8, %v5036_v40  ;;  %v5039_v61 = vadd.f32 %v7134_v62, %v4651_v41  ;;  %7175 = vmatprep.mubr.msk.f32.mxu1 %vm648_vm0, %v5181_v19  ;;  %v5184_v24 = vmax.f32 %v5152_v37, 0.0  ;;  %v10344_v62 = vld [vmem:[#allocation84_spill] sm:$0xff] }
 0x366   : > { %v5115_v18 = vmul.f32 %v9720_v53, %v5076_v39  ;;  %v4943_v20 = vpop.f32.mrf.mxu0  ;;  %v4268_v41 = vadd.f32 %v10341_v1, %v3879_v49 }
 0x367   : > { %v5183_v38 = vmax.f32 %v5151_v17, 0.0  ;;  %v5114_v23 = vmul.f32 %v9720_v53, %v5075_v42  ;;  %v5078_v50 = vadd.f32 %v9712_v8, %v5039_v61  ;;  %v5038_v56 = vadd.f32 %v4943_v20, %v4650_v6  ;;  %7176 = vmatmul.mubr.msk.f32.gmra.mxu1 %vm648_vm0, %v5182_v32  ;;  %v10343_v6 = vld [vmem:[#allocation67_spill] sm:$0xff]  ;;  %v4605_v17 = vpop.f32.mrf.mxu1 }
 0x368   : > { %v5154_v3 = vadd.f32 %v9732_v45, %v5115_v18  ;;  %v7137_v54 = vpop.f32.mrf.mxu0  ;;  %v3881_v37 = vadd.f32 %v10343_v6, %v10342_v43  ;;  %v4657_v32 = vadd.f32 %v9800_v11, %v10344_v62  ;;  %v4656_v58 = vadd.f32 %v9816_v7, %v4268_v41  ;;  %v10353_v62 = vld [vmem:[#allocation74_spill] sm:$0xff] }
 0x369   : > { %v5153_v36 = vadd.f32 %v9732_v45, %v5114_v23  ;;  %v5117_v31 = vmul.f32 %v9720_v53, %v5078_v50  ;;  %v5077_v5 = vadd.f32 %v9712_v8, %v5038_v56  ;;  %v5041_v28 = vadd.f32 %v7137_v54, %v4653_v55  ;;  %7178 = vmatprep.mubr.msk.f32.mxu1 %vm648_vm0, %v5183_v38  ;;  %v10346_v23 = vld [vmem:[#allocation70_spill] sm:$0xff]  ;;  %v10347_v50 = vld [vmem:[#allocation69_spill] sm:$0xff] }
 0x36a   : > { %v4953_v0 = vpop.f32.mrf.mxu0  ;;  %v5186_v19 = vmax.f32 %v5154_v3, 0.0  ;;  %v4270_v13 = vadd.f32 %v10345_v27, %v3881_v37  ;;  %v3883_v56 = vadd.f32 %v10347_v50, %v10346_v23  ;;  %v7100_v3 = vpop.f32.mrf.mxu1 }
 0x36b   : > { %v5185_v12 = vmax.f32 %v5153_v36, 0.0  ;;  %v5116_v29 = vmul.f32 %v9720_v53, %v5077_v5  ;;  %v5080_v57 = vadd.f32 %v9712_v8, %v5041_v28  ;;  %7179 = vmatmul.mubr.msk.f32.gmra.mxu1 %vm648_vm0, %v5184_v24  ;;  %v5040_v47 = vadd.f32 %v4953_v0, %v4652_v10  ;;  %v10349_v28 = vld [vmem:[#allocation89_spill] sm:$0xff] }
 0x36c   : > { %v7140_v40 = vpop.f32.mrf.mxu0  ;;  %v5156_v35 = vadd.f32 %v9732_v45, %v5117_v31  ;;  %v4659_v24 = vadd.f32 %v9829_v51, %v10348_v14  ;;  %v4658_v5 = vadd.f32 %v4595_v21, %v4270_v13  ;;  %v4272_v63 = vadd.f32 %v10349_v28, %v3883_v56  ;;  %v4615_v21 = vpop.f32.mrf.mxu1 }
 0x36d   : > { %v5155_v52 = vadd.f32 %v9732_v45, %v5116_v29  ;;  %v5119_v33 = vmul.f32 %v9720_v53, %v5080_v57  ;;  %v5043_v60 = vadd.f32 %v7140_v40, %v4655_v15  ;;  %7181 = vmatprep.mubr.msk.f32.mxu1 %vm648_vm0, %v5185_v12  ;;  %v5079_v39 = vadd.f32 %v9712_v8, %v5040_v47  ;;  %v10350_v57 = vld [vmem:[#allocation88_spill] sm:$0xff]  ;;  %v10352_v40 = vld [vmem:[#allocation71_spill] sm:$0xff] }
 0x36e   : > { %v4963_v48 = vpop.f32.mrf.mxu0  ;;  %v5188_v18 = vmax.f32 %v5156_v35, 0.0  ;;  %v10351_v47 = vld [vmem:[#allocation72_spill] sm:$0xff]  ;;  %v7103_v6 = vpop.f32.mrf.mxu1 }
 0x36f   : > { %v5187_v42 = vmax.f32 %v5155_v52, 0.0  ;;  %v5082_v61 = vadd.f32 %v9712_v8, %v5043_v60  ;;  %v5042_v26 = vadd.f32 %v4963_v48, %v4654_v16  ;;  %7182 = vmatmul.mubr.msk.f32.gmra.mxu1 %vm648_vm0, %v5186_v19  ;;  %v5158_v55 = vadd.f32 %v9732_v45, %v5119_v33 }
 0x370   : > { %v5118_v46 = vmul.f32 %v9720_v53, %v5079_v39  ;;  %v7143_v34 = vpop.f32.mrf.mxu0  ;;  %v4661_v16 = vadd.f32 %v7097_v25, %v10350_v57  ;;  %v3885_v35 = vadd.f32 %v10352_v40, %v10351_v47  ;;  %v4660_v52 = vadd.f32 %v4605_v17, %v4272_v63 }
 0x371   : > { %v5121_v20 = vmul.f32 %v9720_v53, %v5082_v61  ;;  %v5081_v11 = vadd.f32 %v9712_v8, %v5042_v26  ;;  %v5045_v38 = vadd.f32 %v7143_v34, %v4657_v32  ;;  %7184 = vmatprep.mubr.msk.f32.mxu1 %vm648_vm0, %v5187_v42  ;;  %v5190_v4 = vmax.f32 %v5158_v55, 0.0  ;;  %v10354_v32 = vld [vmem:[#allocation73_spill] sm:$0xff] }
 0x372   : > { %v5157_v7 = vadd.f32 %v9732_v45, %v5118_v46  ;;  %v4973_v22 = vpop.f32.mrf.mxu0  ;;  %v3887_v42 = vadd.f32 %v10354_v32, %v10353_v62  ;;  %v4663_v61 = vadd.f32 %v7100_v3, %v9691_v30  ;;  %v4274_v17 = vadd.f32 %v9693_v44, %v3885_v35  ;;  %v4625_v30 = vpop.f32.mrf.mxu1  ;;  %v10358_v62 = vld [vmem:[#allocation28_spill] sm:$0xff] }
 0x373   : > { %v5120_v54 = vmul.f32 %v9720_v53, %v5081_v11  ;;  %v5084_v36 = vadd.f32 %v9712_v8, %v5045_v38  ;;  %v5044_v31 = vadd.f32 %v4973_v22, %v4656_v58  ;;  %7185 = vmatmul.mubr.msk.f32.gmra.mxu1 %vm648_vm0, %v5188_v18  ;;  %v5160_v0 = vadd.f32 %v9732_v45, %v5121_v20 }
 0x374   : > { %v5189_v49 = vmax.f32 %v5157_v7, 0.0  ;;  %v7146_v10 = vpop.f32.mrf.mxu0  ;;  %v4276_v34 = vadd.f32 %v9704_v2, %v3887_v42  ;;  %v4662_v56 = vadd.f32 %v4615_v21, %v4274_v17  ;;  %v4665_v22 = vadd.f32 %v7103_v6, %v9702_v9  ;;  %v10357_v6 = vld [vmem:[#allocation27_spill] sm:$0xff] }
 0x375   : > { %v5159_v59 = vadd.f32 %v9732_v45, %v5120_v54  ;;  %v5123_v51 = vmul.f32 %v9720_v53, %v5084_v36  ;;  %v5083_v15 = vadd.f32 %v9712_v8, %v5044_v31  ;;  %v5047_v12 = vadd.f32 %v7146_v10, %v4659_v24 }
 0x376   : > { %7187 = vmatprep.mubr.msk.f32.mxu1 %vm648_vm0, %v5189_v49  ;;  %v4983_v29 = vpop.f32.mrf.mxu0  ;;  %v5192_v37 = vmax.f32 %v5160_v0, 0.0  ;;  %v4664_v3 = vadd.f32 %v4625_v30, %v4276_v34  ;;  %v10361_v30 = vld [vmem:[#allocation31_spill] sm:$0xff] }
 0x377   : > { %v5191_v1 = vmax.f32 %v5159_v59, 0.0  ;;  %v5122_v41 = vmul.f32 %v9720_v53, %v5083_v15  ;;  %v5046_v19 = vadd.f32 %v4983_v29, %v4658_v5  ;;  %7188 = vmatmul.mubr.msk.f32.gmra.mxu1 %vm648_vm0, %v5190_v4  ;;  %v5162_v33 = vadd.f32 %v9732_v45, %v5123_v51 }
 0x378   : > { %v5086_v60 = vadd.f32 %v9712_v8, %v5047_v12  ;;  %v7149_v43 = vpop.f32.mrf.mxu0 }
 0x379   : > { %v5161_v25 = vadd.f32 %v9732_v45, %v5122_v41  ;;  %v5085_v39 = vadd.f32 %v9712_v8, %v5046_v19  ;;  %v5049_v48 = vadd.f32 %v7149_v43, %v4661_v16  ;;  %7190 = vmatprep.mubr.msk.f32.mxu1 %vm648_vm0, %v5191_v1  ;;  %v5194_v18 = vmax.f32 %v5162_v33, 0.0 }
 0x37a   : > { %v5125_v26 = vmul.f32 %v9720_v53, %v5086_v60  ;;  %v4993_v58 = vpop.f32.mrf.mxu0 }
 0x37b   : > { %v5193_v27 = vmax.f32 %v5161_v25, 0.0  ;;  %v5124_v13 = vmul.f32 %v9720_v53, %v5085_v39  ;;  %v5088_v55 = vadd.f32 %v9712_v8, %v5049_v48  ;;  %v5048_v46 = vadd.f32 %v4993_v58, %v4660_v52  ;;  %7191 = vmatmul.mubr.msk.f32.gmra.mxu1 %vm648_vm0, %v5192_v37  ;;  %v10356_v52 = vld [vmem:[#allocation26_spill] sm:$0xff] }
 0x37c   : > { %v5164_v20 = vadd.f32 %v9732_v45, %v5125_v26  ;;  %v7152_v11 = vpop.f32.mrf.mxu0  ;;  %v10359_v26 = vld [vmem:[#allocation29_spill] sm:$0xff] }
 0x37d   : > { %v5163_v44 = vadd.f32 %v9732_v45, %v5124_v13  ;;  %v5127_v38 = vmul.f32 %v9720_v53, %v5088_v55  ;;  %v5087_v23 = vadd.f32 %v9712_v8, %v5048_v46  ;;  %v5051_v50 = vadd.f32 %v7152_v11, %v4663_v61  ;;  %7193 = vmatprep.mubr.msk.f32.mxu1 %vm648_vm0, %v5193_v27  ;;  %v10360_v46 = vld [vmem:[#allocation30_spill] sm:$0xff] }
 0x37e   : > { %v5003_v7 = vpop.f32.mrf.mxu0  ;;  %v5196_v54 = vmax.f32 %v5164_v20, 0.0 }
 0x37f   : > { %v5195_v14 = vmax.f32 %v5163_v44, 0.0  ;;  %v5126_v2 = vmul.f32 %v9720_v53, %v5087_v23  ;;  %v5090_v24 = vadd.f32 %v9712_v8, %v5051_v50  ;;  %7194 = vmatmul.mubr.msk.f32.gmra.mxu1 %vm648_vm0, %v5194_v18  ;;  %v5050_v36 = vadd.f32 %v5003_v7, %v4662_v56  ;;  %v10362_v56 = vld [vmem:[#allocation32_spill] sm:$0xff] }
 0x380   : > { %v7155_v31 = vpop.f32.mrf.mxu0  ;;  %v5166_v5 = vadd.f32 %v9732_v45, %v5127_v38 }
 0x381   : > { %v5165_v28 = vadd.f32 %v9732_v45, %v5126_v2  ;;  %v5129_v63 = vmul.f32 %v9720_v53, %v5090_v24  ;;  %v5053_v4 = vadd.f32 %v7155_v31, %v4665_v22  ;;  %7196 = vmatprep.mubr.msk.f32.mxu1 %vm648_vm0, %v5195_v14  ;;  %v5089_v9 = vadd.f32 %v9712_v8, %v5050_v36  ;;  %v10363_v24 = vld [vmem:[#allocation33_spill] sm:$0xff] }
 0x382   : > { %v5013_v49 = vpop.f32.mrf.mxu0  ;;  %v5198_v15 = vmax.f32 %v5166_v5, 0.0 }
 0x383   : > { %v5197_v10 = vmax.f32 %v5165_v28, 0.0  ;;  %v5092_v0 = vadd.f32 %v9712_v8, %v5053_v4  ;;  %v5052_v59 = vadd.f32 %v5013_v49, %v4664_v3  ;;  %7197 = vmatmul.mubr.msk.f32.gmra.mxu1 %vm648_vm0, %v5196_v54  ;;  %v5128_v51 = vmul.f32 %v9720_v53, %v5089_v9  ;;  %v10364_v28 = vld [vmem:[#allocation34_spill] sm:$0xff]  ;;  %v10365_v49 = vld [vmem:[#allocation35_spill] sm:$0xff] }
 0x384   : > { %v5168_v12 = vadd.f32 %v9732_v45, %v5129_v63 }
 0x385   : > { %v5131_v29 = vmul.f32 %v9720_v53, %v5092_v0  ;;  %v5091_v57 = vadd.f32 %v9712_v8, %v5052_v59  ;;  %7199 = vmatprep.mubr.msk.f32.mxu1 %vm648_vm0, %v5197_v10  ;;  %v5167_v16 = vadd.f32 %v9732_v45, %v5128_v51 }
 0x386   : > { %v5200_v41 = vmax.f32 %v5168_v12, 0.0 }
 0x387   : > { %v5130_v21 = vmul.f32 %v9720_v53, %v5091_v57  ;;  %7200 = vmatmul.mubr.msk.f32.gmra.mxu1 %vm648_vm0, %v5198_v15  ;;  %v5199_v1 = vmax.f32 %v5167_v16, 0.0  ;;  %v5170_v19 = vadd.f32 %v9732_v45, %v5131_v29  ;;  %v9950_v53 = vld [vmem:[%s10185_s14] ss:$0 sm:$0xff]  ;;  %v10366_v15 = vld [vmem:[#allocation36_spill] sm:$0xff] }
 0x388   : > { %v817_v33 = vadd.f32 %v10356_v52, %v9950_v53  ;;  %v812_v37 = vadd.f32 %v9950_v53, %v10357_v6  ;;  %v827_v32 = vadd.f32 %v10358_v62, %v9950_v53  ;;  %v822_v58 = vadd.f32 %v9950_v53, %v10359_v26 }
 0x389   : > { %v5169_v47 = vadd.f32 %v9732_v45, %v5130_v21  ;;  %7202 = vmatprep.mubr.msk.f32.mxu1 %vm648_vm0, %v5199_v1  ;;  %v5202_v8 = vmax.f32 %v5170_v19, 0.0  ;;  %v9955_v45 = vld [vmem:[%s10355_s9] ss:$0 sm:$0xff]  ;;  %v837_v34 = vadd.f32 %v10360_v46, %v9950_v53  ;;  %v832_v44 = vadd.f32 %v9950_v53, %v10361_v30  ;;  %v10367_v21 = vld [vmem:[#allocation37_spill] sm:$0xff] }
 0x38a   : > { %v847_v7 = vadd.f32 %v10362_v56, %v9950_v53  ;;  %v842_v3 = vadd.f32 %v9950_v53, %v10363_v24  ;;  %v857_v63 = vadd.f32 %v10364_v28, %v9950_v53  ;;  %v852_v10 = vadd.f32 %v9950_v53, %v10365_v49 }
 0x38b   : > { %v5201_v40 = vmax.f32 %v5169_v47, 0.0  ;;  %7203 = vmatmul.mubr.msk.f32.gmra.mxu1 %vm648_vm0, %v5200_v41  ;;  %v867_v12 = vadd.f32 %v10366_v15, %v9950_v53  ;;  %v862_v1 = vadd.f32 %v9950_v53, %v10367_v21 }
 0x38d   : > { %7205 = vmatprep.mubr.msk.f32.mxu1 %vm648_vm0, %v5201_v40  ;;  %v10368_v40 = vld [vmem:[#allocation38_spill] sm:$0xff] }
 0x38f   : > { %7206 = vmatmul.mubr.msk.f32.gmra.mxu1 %vm648_vm0, %v5202_v8  ;;  %v877_v8 = vadd.f32 %v10368_v40, %v9950_v53 }
 0x412   : > { %v7162_v35 = vpop.f32.mrf.mxu1 }
 0x413   : > { %v5380_v60 = vadd.f32 %v7162_v35, %v9955_v45 }
 0x414   : > { %v5374_v43 = vpop.f32.mrf.mxu1 }
 0x415   : > { %v5534_v25 = vadd.f32 %v5380_v60, %v817_v33  ;;  %v5375_v39 = vadd.f32 %v9955_v45, %v5374_v43  ;;  %v10369_v60 = vld [vmem:[#allocation39_spill] sm:$0xff] }
 0x416   : > { %v7165_v48 = vpop.f32.mrf.mxu1  ;;  %v872_v43 = vadd.f32 %v9950_v53, %v10369_v60 }
 0x417   : > { %5567 = vst.msk [vmem:[%s9967_s10 + $0x8] sm:$0xff] %vm5565_vm2, %v5534_v25  ;;  %v5533_v42 = vadd.f32 %v5375_v39, %v812_v37  ;;  %v5390_v61 = vadd.f32 %v7165_v48, %v9955_v45  ;;  %v10370_v39 = vld [vmem:[#allocation40_spill] sm:$0xff] }
 0x418   : > { %v5384_v17 = vpop.f32.mrf.mxu1  ;;  %v887_v48 = vadd.f32 %v10370_v39, %v9950_v53 }
 0x419   : > { %5566 = vst.msk [vmem:[%s9967_s10] sm:$0xff] %vm5565_vm2, %v5533_v42  ;;  %v5536_v27 = vadd.f32 %v5390_v61, %v827_v32  ;;  %v5385_v13 = vadd.f32 %v9955_v45, %v5384_v17  ;;  %v10371_v61 = vld [vmem:[#allocation41_spill] sm:$0xff] }
 0x41a   : > { %v7168_v55 = vpop.f32.mrf.mxu1  ;;  %v882_v17 = vadd.f32 %v9950_v53, %v10371_v61 }
 0x41b   : > { %5569 = vst.msk [vmem:[%s9967_s10 + $0x18] sm:$0xff] %vm5565_vm2, %v5536_v27  ;;  %v5535_v18 = vadd.f32 %v5385_v13, %v822_v58  ;;  %v5400_v20 = vadd.f32 %v7168_v55, %v9955_v45  ;;  %v10372_v13 = vld [vmem:[#allocation42_spill] sm:$0xff] }
 0x41c   : > { %v5394_v11 = vpop.f32.mrf.mxu1  ;;  %v897_v55 = vadd.f32 %v10372_v13, %v9950_v53 }
 0x41d   : > { %5568 = vst.msk [vmem:[%s9967_s10 + $0x10] sm:$0xff] %vm5565_vm2, %v5535_v18  ;;  %v5538_v38 = vadd.f32 %v5400_v20, %v837_v34  ;;  %v5395_v23 = vadd.f32 %v9955_v45, %v5394_v11  ;;  %v10373_v20 = vld [vmem:[#allocation43_spill] sm:$0xff] }
 0x41e   : > { %v7171_v50 = vpop.f32.mrf.mxu1  ;;  %v892_v11 = vadd.f32 %v9950_v53, %v10373_v20 }
 0x41f   : > { %5571 = vst.msk [vmem:[%s9967_s10 + $0x28] sm:$0xff] %vm5565_vm2, %v5538_v38  ;;  %v5537_v22 = vadd.f32 %v5395_v23, %v832_v44  ;;  %v5410_v14 = vadd.f32 %v7171_v50, %v9955_v45  ;;  %v10374_v23 = vld [vmem:[#allocation44_spill] sm:$0xff] }
 0x420   : > { %v5404_v2 = vpop.f32.mrf.mxu1  ;;  %v907_v50 = vadd.f32 %v10374_v23, %v9950_v53 }
 0x421   : > { %5570 = vst.msk [vmem:[%s9967_s10 + $0x20] sm:$0xff] %vm5565_vm2, %v5537_v22  ;;  %v5540_v54 = vadd.f32 %v5410_v14, %v847_v7  ;;  %v5405_v36 = vadd.f32 %v9955_v45, %v5404_v2  ;;  %v10375_v14 = vld [vmem:[#allocation45_spill] sm:$0xff] }
 0x422   : > { %v902_v2 = vadd.f32 %v9950_v53, %v10375_v14 }
 0x423   : > { %5573 = vst.msk [vmem:[%s9967_s10 + $0x38] sm:$0xff] %vm5565_vm2, %v5540_v54  ;;  %v5539_v31 = vadd.f32 %v5405_v36, %v842_v3  ;;  %v7174_v5 = vpop.f32.mrf.mxu1  ;;  %v10376_v36 = vld [vmem:[#allocation46_spill] sm:$0xff] }
 0x424   : > { %v5420_v4 = vadd.f32 %v7174_v5, %v9955_v45 }
 0x425   : > { %5572 = vst.msk [vmem:[%s9967_s10 + $0x30] sm:$0xff] %vm5565_vm2, %v5539_v31  ;;  %v5414_v9 = vpop.f32.mrf.mxu1  ;;  %v917_v31 = vadd.f32 %v10376_v36, %v9950_v53 }
 0x426   : > { %v5542_v0 = vadd.f32 %v5420_v4, %v857_v63  ;;  %v5415_v59 = vadd.f32 %v9955_v45, %v5414_v9  ;;  %v10377_v4 = vld [vmem:[#allocation47_spill] sm:$0xff] }
 0x427   : > { %v7177_v51 = vpop.f32.mrf.mxu1  ;;  %v912_v9 = vadd.f32 %v9950_v53, %v10377_v4 }
 0x428   : > { %5575 = vst.msk [vmem:[%s9967_s10 + $0x48] sm:$0xff] %vm5565_vm2, %v5542_v0  ;;  %v5541_v29 = vadd.f32 %v5415_v59, %v852_v10  ;;  %v5430_v57 = vadd.f32 %v7177_v51, %v9955_v45  ;;  %v10378_v59 = vld [vmem:[#allocation48_spill] sm:$0xff] }
 0x429   : > { %v5424_v16 = vpop.f32.mrf.mxu1  ;;  %v927_v51 = vadd.f32 %v10378_v59, %v9950_v53 }
 0x42a   : > { %5574 = vst.msk [vmem:[%s9967_s10 + $0x40] sm:$0xff] %vm5565_vm2, %v5541_v29  ;;  %v5544_v41 = vadd.f32 %v5430_v57, %v867_v12  ;;  %v5425_v19 = vadd.f32 %v9955_v45, %v5424_v16  ;;  %v10379_v57 = vld [vmem:[#allocation49_spill] sm:$0xff] }
 0x42b   : > { %v7180_v47 = vpop.f32.mrf.mxu1  ;;  %v922_v16 = vadd.f32 %v9950_v53, %v10379_v57 }
 0x42c   : > { %5577 = vst.msk [vmem:[%s9967_s10 + $0x58] sm:$0xff] %vm5565_vm2, %v5544_v41  ;;  %v5543_v35 = vadd.f32 %v5425_v19, %v862_v1  ;;  %v5440_v52 = vadd.f32 %v7180_v47, %v9955_v45  ;;  %v10380_v19 = vld [vmem:[#allocation50_spill] sm:$0xff] }
 0x42d   : > { %v5434_v33 = vpop.f32.mrf.mxu1  ;;  %v937_v47 = vadd.f32 %v10380_v19, %v9950_v53 }
 0x42e   : > { %5576 = vst.msk [vmem:[%s9967_s10 + $0x50] sm:$0xff] %vm5565_vm2, %v5543_v35  ;;  %v5546_v6 = vadd.f32 %v5440_v52, %v877_v8  ;;  %v5435_v37 = vadd.f32 %v9955_v45, %v5434_v33  ;;  %v10381_v52 = vld [vmem:[#allocation51_spill] sm:$0xff] }
 0x42f   : > { %v7183_v25 = vpop.f32.mrf.mxu1  ;;  %v932_v33 = vadd.f32 %v9950_v53, %v10381_v52 }
 0x430   : > { %5579 = vst.msk [vmem:[%s9967_s10 + $0x68] sm:$0xff] %vm5565_vm2, %v5546_v6  ;;  %v5545_v62 = vadd.f32 %v5435_v37, %v872_v43  ;;  %v5450_v32 = vadd.f32 %v7183_v25, %v9955_v45  ;;  %v10382_v37 = vld [vmem:[#allocation53_spill] sm:$0xff] }
 0x431   : > { %v5444_v42 = vpop.f32.mrf.mxu1  ;;  %v947_v25 = vadd.f32 %v10382_v37, %v9950_v53 }
 0x432   : > { %5578 = vst.msk [vmem:[%s9967_s10 + $0x60] sm:$0xff] %vm5565_vm2, %v5545_v62  ;;  %v5548_v26 = vadd.f32 %v5450_v32, %v887_v48  ;;  %v5445_v58 = vadd.f32 %v9955_v45, %v5444_v42  ;;  %v10383_v32 = vld [vmem:[#allocation55_spill] sm:$0xff] }
 0x433   : > { %v7186_v27 = vpop.f32.mrf.mxu1  ;;  %v942_v42 = vadd.f32 %v9950_v53, %v10383_v32 }
 0x434   : > { %5581 = vst.msk [vmem:[%s9967_s10 + $0x78] sm:$0xff] %vm5565_vm2, %v5548_v26  ;;  %v5547_v46 = vadd.f32 %v5445_v58, %v882_v17  ;;  %v5460_v34 = vadd.f32 %v7186_v27, %v9955_v45  ;;  %v10384_v58 = vld [vmem:[#allocation57_spill] sm:$0xff] }
 0x435   : > { %v5454_v18 = vpop.f32.mrf.mxu1  ;;  %v957_v27 = vadd.f32 %v10384_v58, %v9950_v53 }
 0x436   : > { %5580 = vst.msk [vmem:[%s9967_s10 + $0x70] sm:$0xff] %vm5565_vm2, %v5547_v46  ;;  %v5550_v30 = vadd.f32 %v5460_v34, %v897_v55  ;;  %v5455_v44 = vadd.f32 %v9955_v45, %v5454_v18  ;;  %v10385_v34 = vld [vmem:[#allocation59_spill] sm:$0xff] }
 0x437   : > { %v7189_v38 = vpop.f32.mrf.mxu1  ;;  %v952_v18 = vadd.f32 %v9950_v53, %v10385_v34 }
 0x438   : > { %5583 = vst.msk [vmem:[%s9967_s10 + $0x88] sm:$0xff] %vm5565_vm2, %v5550_v30  ;;  %v5549_v56 = vadd.f32 %v5455_v44, %v892_v11  ;;  %v5470_v7 = vadd.f32 %v7189_v38, %v9955_v45  ;;  %v10386_v44 = vld [vmem:[#allocation61_spill] sm:$0xff] }
 0x439   : > { %v5464_v22 = vpop.f32.mrf.mxu1  ;;  %v967_v38 = vadd.f32 %v10386_v44, %v9950_v53 }
 0x43a   : > { %5582 = vst.msk [vmem:[%s9967_s10 + $0x80] sm:$0xff] %vm5565_vm2, %v5549_v56  ;;  %v5552_v24 = vadd.f32 %v5470_v7, %v907_v50  ;;  %v5465_v3 = vadd.f32 %v9955_v45, %v5464_v22  ;;  %v10387_v7 = vld [vmem:[#allocation63_spill] sm:$0xff] }
 0x43b   : > { %v7192_v54 = vpop.f32.mrf.mxu1  ;;  %v962_v22 = vadd.f32 %v9950_v53, %v10387_v7 }
 0x43c   : > { %5585 = vst.msk [vmem:[%s9967_s10 + $0x98] sm:$0xff] %vm5565_vm2, %v5552_v24  ;;  %v5551_v5 = vadd.f32 %v5465_v3, %v902_v2  ;;  %v5480_v28 = vadd.f32 %v7192_v54, %v9955_v45 }
 0x43d   : > { %v5474_v63 = vpop.f32.mrf.mxu1 }
 0x43e   : > { %5584 = vst.msk [vmem:[%s9967_s10 + $0x90] sm:$0xff] %vm5565_vm2, %v5551_v5  ;;  %v5554_v49 = vadd.f32 %v5480_v28, %v917_v31  ;;  %v5475_v10 = vadd.f32 %v9955_v45, %v5474_v63 }
 0x43f   : > { %v7195_v0 = vpop.f32.mrf.mxu1 }
 0x440   : > { %5587 = vst.msk [vmem:[%s9967_s10 + $0xa8] sm:$0xff] %vm5565_vm2, %v5554_v49  ;;  %v5553_v15 = vadd.f32 %v5475_v10, %v912_v9  ;;  %v5490_v12 = vadd.f32 %v7195_v0, %v9955_v45 }
 0x441   : > { %v5484_v29 = vpop.f32.mrf.mxu1 }
 0x442   : > { %5586 = vst.msk [vmem:[%s9967_s10 + $0xa0] sm:$0xff] %vm5565_vm2, %v5553_v15  ;;  %v5556_v21 = vadd.f32 %v5490_v12, %v927_v51  ;;  %v5485_v1 = vadd.f32 %v9955_v45, %v5484_v29 }
 0x443   : > { %v7198_v41 = vpop.f32.mrf.mxu1 }
 0x444   : > { %5589 = vst.msk [vmem:[%s9967_s10 + $0xb8] sm:$0xff] %vm5565_vm2, %v5556_v21  ;;  %v5555_v40 = vadd.f32 %v5485_v1, %v922_v16  ;;  %v5500_v8 = vadd.f32 %v7198_v41, %v9955_v45 }
 0x445   : > { %v5494_v35 = vpop.f32.mrf.mxu1 }
 0x446   : > { %5588 = vst.msk [vmem:[%s9967_s10 + $0xb0] sm:$0xff] %vm5565_vm2, %v5555_v40  ;;  %v5558_v60 = vadd.f32 %v5500_v8, %v937_v47  ;;  %v5495_v43 = vadd.f32 %v9955_v45, %v5494_v35 }
 0x447   : > { %v7201_v6 = vpop.f32.mrf.mxu1 }
 0x448   : > { %5591 = vst.msk [vmem:[%s9967_s10 + $0xc8] sm:$0xff] %vm5565_vm2, %v5558_v60  ;;  %v5557_v39 = vadd.f32 %v5495_v43, %v932_v33  ;;  %v5510_v48 = vadd.f32 %v7201_v6, %v9955_v45 }
 0x449   : > { %v5504_v62 = vpop.f32.mrf.mxu1 }
 0x44a   : > { %5590 = vst.msk [vmem:[%s9967_s10 + $0xc0] sm:$0xff] %vm5565_vm2, %v5557_v39  ;;  %v5560_v61 = vadd.f32 %v5510_v48, %v947_v25  ;;  %v5505_v17 = vadd.f32 %v9955_v45, %v5504_v62 }
 0x44b   : > { %v7204_v26 = vpop.f32.mrf.mxu1 }
 0x44c   : > { %5593 = vst.msk [vmem:[%s9967_s10 + $0xd8] sm:$0xff] %vm5565_vm2, %v5560_v61  ;;  %v5559_v13 = vadd.f32 %v5505_v17, %v942_v42  ;;  %v5520_v55 = vadd.f32 %v7204_v26, %v9955_v45 }
 0x44d   : > { %v5514_v46 = vpop.f32.mrf.mxu1 }
 0x44e   : > { %5592 = vst.msk [vmem:[%s9967_s10 + $0xd0] sm:$0xff] %vm5565_vm2, %v5559_v13  ;;  %v5562_v20 = vadd.f32 %v5520_v55, %v957_v27  ;;  %v5515_v11 = vadd.f32 %v9955_v45, %v5514_v46 }
 0x44f   : > { %v7207_v30 = vpop.f32.mrf.mxu1 }
 0x450   : > { %5595 = vst.msk [vmem:[%s9967_s10 + $0xe8] sm:$0xff] %vm5565_vm2, %v5562_v20  ;;  %v5561_v23 = vadd.f32 %v5515_v11, %v952_v18  ;;  %v5530_v50 = vadd.f32 %v7207_v30, %v9955_v45 }
 0x451   : > { %v5524_v56 = vpop.f32.mrf.mxu1 }
 0x452   : > { %5594 = vst.msk [vmem:[%s9967_s10 + $0xe0] sm:$0xff] %vm5565_vm2, %v5561_v23  ;;  %v5564_v14 = vadd.f32 %v5530_v50, %v967_v38  ;;  %v5525_v2 = vadd.f32 %v9955_v45, %v5524_v56 }
 0x454   : > { %5597 = vst.msk [vmem:[%s9967_s10 + $0xf8] sm:$0xff] %vm5565_vm2, %v5564_v14  ;;  %v5563_v24 = vadd.f32 %v5525_v2, %v962_v22 }
 0x456   : > { %5596 = vst.msk [vmem:[%s9967_s10 + $0xf0] sm:$0xff] %vm5565_vm2, %v5563_v24 }
 0x457   : > { %7553 = shalt.err (!%p7550_p0)
}
 0x458   : > { %s7554_s6 = scalar_lea.hbm %s10122_s15, 4096  ;;  %s7558_s7 = scalar_lea.hbm %s10388_s26, 8192 }
 0x459   : > { %p7555_p13 = scmp.ne.s32.totalorder %s10122_s15, %s7554_s6  ;;  %p7559_p4 = scmp.lt.s32.totalorder %s10122_s15, %s10388_s26 }
 0x45a   : > { %p7560_p8 = scmp.lt.s32.totalorder %s7558_s7, %s7554_s6 }
 0x45b   : > { %p7556_p5 = pnand %p7555_p13, %p10389_p12 }
 0x45c   : > { %p7561_p9 = por %p7560_p8, %p7559_p4 }
 0x45d   : > { %p7557_p1 = pneg %p7556_p5 }
 0x45f   : > { %p7562_p11 = pnand %p7561_p9, %p7557_p1 }
 0x461   : > { %7565 = shalt.err (!%p7562_p11)
}
 0x462   : > { %s7634_s20 = smov 128   ;;  %s7635_s17 = smov 8  }
 0x463   : > { %7238 = dma.vmem_to_hbm [thread:$0]  (%p10389_p12), %s10124_s25, 4096, %s10122_s15, %s5599_s24, %s7634_s20, %s7634_s20, %s7635_s17  }
 0x464 PF: > { %s5627_s27 = sand.u32 1, %s7608_s18   ;;  %p10390_p2 = scmp.ne.s32.totalorder %s10229_s23, 0 }
 0x465   : > { %p10391_p7 = scmp.ge.s32.totalorder %s7620_s21, 2  ;;  %s5628_s30 = scalar_lea.sflag [#allocation5], %s5627_s27 }
 0x467   : > { %p7267_p3 = pnand %p10391_p7, %p10390_p2 }
 0x469   : > { %p7268_p10 = pneg %p7267_p3 }
 0x46b   : > { %7603 = dma.done.wait (%p7268_p10), %s5628_s30, 4096  }
 0x46c   : > { %7605 = vsyncadd (%p7268_p10), %s5628_s30, 4294963200  ;;  %s10392_s8 = sld [smem:[#allocation24_spill]]  ;;  %p32_p6 = scmp.ge.s32.totalorder %s7836_s16, 4  }
 0x46d   : > { %s10393_s20 = sld [smem:[#allocation25_spill]]  ;;  %s10394_s18 = smov %s7612_s19 }
 0x46e   : > { %s10396_s21 = smov %s7836_s16  ;;  %34 = sbr.rel (!%p32_p6) target bundleno = 19 (0x13), region = 163 }
 0x472   : > { %s10395_s19 = smov %s10392_s8 }
 0x473   :  { %5633 = vsyncpa [#allocation4], 1 }
 0x474   :  { %5635 = vsyncpa [#allocation4 + $0x1], 1 }
 0x475   :  { %5636 = vsyncpa [#allocation7], 1 }
 0x476   :  { %5637 = vsyncpa [#allocation10], 1 }
 0x477   :  { %5638 = vsyncpa [#allocation13], 1 }
 0x478   :  { %5639 = vsyncpa [#allocation16], 1 }
 0x479   :  { %5640 = vsyncpa [#allocation5], 1 }
 0x47a   :  { %5642 = vsyncpa [#allocation5 + $0x1], 1 }

</bundles_post_ra>
